<compile_context>
chip_gen: v6e
topology: v6e:2x2x1
jax: 0.10.0
libtpu: 0.0.40
codegen_flags: <defaults>
</compile_context>

<pallas_src>
import functools

import jax
import jax.numpy as jnp
from jax.experimental import pallas as pl
from jax.experimental.pallas import tpu as pltpu

PI = 3.14159265359  # same constant as the PyTorch module


def _fourier_kernel(x_ref, b_ref, o_ref, *, nfeat):
    # x_ref: (TB, 2) f32
    # b_ref: (2, nfeat) f32, with 2*pi already folded in
    # o_ref: (TB, 2*nfeat) f32
    x0 = x_ref[:, 0:1]                            # (TB, 1)
    x1 = x_ref[:, 1:2]                            # (TB, 1)
    # VPU broadcast FMA instead of a K=2 MXU matmul.
    z = x0 * b_ref[0:1, :] + x1 * b_ref[1:2, :]   # (TB, nfeat) f32
    # Direct slice stores (no concatenate => no extra VMEM copy). Lane-dense
    # when nfeat % 128 == 0.
    # TODO(synk): if a bundle dump shows sin/cos lowering to VALU polynomial
    # sequences (not EUP ops), share a single range reduction between them.
    o_ref[:, :nfeat] = jnp.sin(z)
    o_ref[:, nfeat:] = jnp.cos(z)


def _pick_block_b(B, nfeat):
    """Choose (block_b, padded_B).

    * Single tile (block_b = B) whenever the whole batch fits the VMEM budget
      -> no per-step grid overhead, no pad, no slice.
    * Otherwise the largest multiple-of-8 divisor of B under the budget
      -> still no pad/slice round trip.
    * Pad + slice only as a last-resort fallback (ragged B with no divisor).
    """
    bytes_per_row = 2 * nfeat * 4                  # one f32 output row
    budget = 24 * 1024 * 1024                      # double-buffered output tile budget
    cap = max(8, budget // max(1, bytes_per_row * 2))
    cap = max(8, cap - cap % 8)

    if B <= cap:
        return B, B                                # one tile == whole batch

    # Largest multiple-of-8 divisor of B that fits the budget.
    best = 0
    d = 1
    while d * d <= B:
        if B % d == 0:
            for cand in (d, B // d):
                if cand % 8 == 0 and cand <= cap and cand > best:
                    best = cand
        d += 1
    if best >= 8:
        return best, B

    # Fallback (rare): ragged batch, pad up to a multiple of the tile.
    bb = cap
    return bb, pl.cdiv(B, bb) * bb


def fourier(x, b, *, block_b=None):
    """Pallas implementation of Fourier.forward.

    x: (B, 2) float32
    b: (2, nfeat) float32 (non-trainable random projection)
    returns: (B, 2*nfeat) float32  ==  cat([sin(2*pi*x@b), cos(2*pi*x@b)], -1)
    """
    B, C = x.shape
    assert C == 2, "Fourier expects 2-D coordinates (bc, c=2)"
    C2, nfeat = b.shape
    assert C2 == 2

    x = x.astype(jnp.float32)
    # Fold the 2*pi scale into the fixed projection once (host side).
    b_scaled = (2.0 * PI) * b.astype(jnp.float32)

    if block_b is None:
        block_b, B_pad = _pick_block_b(B, nfeat)
    else:
        if block_b != B and block_b % 8:
            block_b = max(8, block_b - block_b % 8)
        block_b = min(block_b, B)
        B_pad = pl.cdiv(B, block_b) * block_b

    n_tiles = B_pad // block_b
    x_in = x if B_pad == B else jnp.pad(x, ((0, B_pad - B), (0, 0)))

    kernel = functools.partial(_fourier_kernel, nfeat=nfeat)

    # Actual VMEM footprint (double-buffered x/out tiles + replicated b);
    # declare the scoped-VMEM limit explicitly instead of relying on the
    # 16/32/32 MiB chip defaults. Capped at 48 MiB to stay safe on v7x.
    tile_bytes = (block_b * 2 + 2 * nfeat + block_b * 2 * nfeat) * 4 * 2
    vmem_limit = min(48 * 1024 * 1024,
                     max(32 * 1024 * 1024, int(tile_bytes * 1.25) + (1 << 20)))

    cost = pl.CostEstimate(
        flops=3 * B_pad * nfeat,                        # 2 mul + 1 add per z elem
        transcendentals=2 * B_pad * nfeat,              # sin + cos
        bytes_accessed=4 * (B_pad * 2 + 2 * nfeat + B_pad * 2 * nfeat),
    )

    out = pl.pallas_call(
        kernel,
        out_shape=jax.ShapeDtypeStruct((B_pad, 2 * nfeat), jnp.float32),
        grid_spec=pltpu.PrefetchScalarGridSpec(
            num_scalar_prefetch=0,
            grid=(n_tiles,),
            in_specs=[
                pl.BlockSpec((block_b, 2), lambda i: (i, 0)),   # x tile
                pl.BlockSpec((2, nfeat), lambda i: (0, 0)),     # b (replicated)
            ],
            out_specs=pl.BlockSpec((block_b, 2 * nfeat), lambda i: (i, 0)),
        ),
        compiler_params=pltpu.CompilerParams(
            dimension_semantics=("parallel",),
            vmem_limit_bytes=vmem_limit,
        ),
        cost_estimate=cost,
    )(x_in, b_scaled)

    return out if B_pad == B else out[:B]


def fourier_ref(x, b):
    """Pure-JAX reference matching the PyTorch forward exactly."""
    z = jnp.einsum("bc,cf->bf", 2.0 * PI * x, b)
    return jnp.concatenate([jnp.sin(z), jnp.cos(z)], axis=-1)


if __name__ == "__main__":
    key = jax.random.PRNGKey(0)
    k_b, k_x = jax.random.split(key)

    nfeat = 128      # multiple of 128 -> lane-dense output stores
    scale = 10.0
    batch = 256      # fits a single tile -> one grid step, no pad/slice

    # Deterministic parameter init: b = randn(2, nfeat) * scale (non-trainable).
    b = jax.random.normal(k_b, (2, nfeat), dtype=jnp.float32) * scale
    x = jax.random.normal(k_x, (batch, 2), dtype=jnp.float32)

    out = fourier(x, b)
    out = jax.block_until_ready(out)

    ref = fourier_ref(x, b)
    assert out.shape == (batch, 2 * nfeat)
    # (2*pi folded into b vs into x differs by ~ulps of z; sin/cos of large z
    # amplifies that slightly, hence 1e-3 tolerances.)
    assert jnp.allclose(out, ref, atol=1e-3, rtol=1e-3)

    print("KERNEL_OK")
</pallas_src>

<mosaic_0001>
module attributes {stable_mosaic.version = 11 : i64} {
  func.func @_fourier_kernel(%arg0: i32, %arg1: memref<256x2xf32, #tpu.memory_space<vmem>>, %arg2: memref<2x128xf32, #tpu.memory_space<vmem>>, %arg3: memref<256x256xf32, #tpu.memory_space<vmem>>) attributes {dimension_semantics = [#tpu.dimension_semantics<parallel>], iteration_bounds = array<i64: 1>, scalar_prefetch = 0 : i64, scratch_operands = 0 : i64, tpu.core_type = #tpu.core_type<tc>, window_params = [{transform_indices = @transform_0, window_bounds = array<i64: 256, 2>}, {pipeline_mode = #tpu.pipeline_mode<synchronous>, transform_indices = @transform_1, window_bounds = array<i64: 2, 128>}, {transform_indices = @transform_2, window_bounds = array<i64: 256, 256>}]} {
    %c0 = arith.constant 0 : index
    %c0_0 = arith.constant 0 : index
    %0 = vector.load %arg1[%c0, %c0_0] : memref<256x2xf32, #tpu.memory_space<vmem>>, vector<256x1xf32>
    %c0_1 = arith.constant 0 : index
    %c1 = arith.constant 1 : index
    %1 = vector.load %arg1[%c0_1, %c1] : memref<256x2xf32, #tpu.memory_space<vmem>>, vector<256x1xf32>
    %c0_2 = arith.constant 0 : index
    %c0_3 = arith.constant 0 : index
    %2 = vector.load %arg2[%c0_2, %c0_3] : memref<2x128xf32, #tpu.memory_space<vmem>>, vector<1x128xf32>
    %3 = vector.broadcast %0 : vector<256x1xf32> to vector<256x128xf32>
    %4 = vector.broadcast %2 : vector<1x128xf32> to vector<256x128xf32>
    %5 = arith.mulf %3, %4 : vector<256x128xf32>
    %c1_4 = arith.constant 1 : index
    %c0_5 = arith.constant 0 : index
    %6 = vector.load %arg2[%c1_4, %c0_5] : memref<2x128xf32, #tpu.memory_space<vmem>>, vector<1x128xf32>
    %7 = vector.broadcast %1 : vector<256x1xf32> to vector<256x128xf32>
    %8 = vector.broadcast %6 : vector<1x128xf32> to vector<256x128xf32>
    %9 = arith.mulf %7, %8 : vector<256x128xf32>
    %10 = arith.addf %5, %9 : vector<256x128xf32>
    %11 = math.sin %10 : vector<256x128xf32>
    %c0_6 = arith.constant 0 : index
    %c0_7 = arith.constant 0 : index
    %12 = vector.load %arg3[%c0_6, %c0_7] : memref<256x256xf32, #tpu.memory_space<vmem>>, vector<256x128xf32>
    tpu.vector_store %arg3[%c0_6, %c0_7], %11 {strides = array<i32>} : memref<256x256xf32, #tpu.memory_space<vmem>>, vector<256x128xf32>,
    %13 = math.cos %10 : vector<256x128xf32>
    %c0_8 = arith.constant 0 : index
    %c128 = arith.constant 128 : index
    %14 = vector.load %arg3[%c0_8, %c128] : memref<256x256xf32, #tpu.memory_space<vmem>>, vector<256x128xf32>
    tpu.vector_store %arg3[%c0_8, %c128], %13 {strides = array<i32>} : memref<256x256xf32, #tpu.memory_space<vmem>>, vector<256x128xf32>,
    return
  }
  func.func @transform_0(%arg0: i32) -> (i32, i32) {
    %c0_i32 = arith.constant 0 : i32
    %c0_i32_0 = arith.constant 0 : i32
    return %arg0, %c0_i32 : i32, i32
  }
  func.func @transform_1(%arg0: i32) -> (i32, i32) {
    %c0_i32 = arith.constant 0 : i32
    %c0_i32_0 = arith.constant 0 : i32
    %c0_i32_1 = arith.constant 0 : i32
    return %c0_i32, %c0_i32_0 : i32, i32
  }
  func.func @transform_2(%arg0: i32) -> (i32, i32) {
    %c0_i32 = arith.constant 0 : i32
    %c0_i32_0 = arith.constant 0 : i32
    return %arg0, %c0_i32 : i32, i32
  }
}

</mosaic_0001>

<bundles_post_ra>
// kernel: tpu_custom_call.1
= control target key start
LH: loop header
LB: loop body
LE: loop exit
PB: predicated region body
PF: predicated region fallthrough
CT: control target
= control target key end

     0   :  { %v7698_v2 = vmov 0   ;;  %s11011_s0 = inlined_call_operand.vmem [shape: f32[256,2], index: 0, kind: input, shape index: {}]   ;;  %s11012_s1 = inlined_call_operand.vmem [shape: f32[2,128], index: 1, kind: input, shape index: {}]   ;;  %s11013_s2 = inlined_call_operand.hbm [shape: f32[256,256], index: 2, kind: output, shape index: {}]  }
   0x1   :  { %v7727_v0 = vld [vmem:[%s11011_s0 + $0x10] sm:$0xff]  ;;  %v7732_v1 = vld [vmem:[%s11011_s0] sm:$0xff]  ;;  %7540 = vset.pattern.permute.xlu1 %v7698_v2  ;;  %7539 = vset.pattern.permute.xlu0 %v7698_v2  ;;  %v7739_v3 = vld [vmem:[%s11011_s0 + $0x18] sm:$0xff] }
   0x2   :  { %57 = vperm.xlu1 %7540, %v7727_v0   ;;  %47 = vperm.xlu0 %7539, %v7732_v1   ;;  %v13_v4 = vld [vmem:[%s11011_s0 + $0x8] sm:$0xff]  ;;  %v16_v6 = vld [vmem:[%s11011_s0 + $0x20] sm:$0xff]  ;;  %v19_v7 = vld [vmem:[%s11011_s0 + $0x38] sm:$0xff] }
   0x3   :  { %v7748_v5 = vld [vmem:[%s11011_s0 + $0x28] sm:$0xff]  ;;  %v18_v8 = vld [vmem:[%s11011_s0 + $0x30] sm:$0xff] }
   0x6   :  { %62 = vperm.xlu1 %7540, %v7739_v3   ;;  %52 = vperm.xlu0 %7539, %v13_v4  }
   0xa   :  { %72 = vperm.xlu1 %7540, %v7748_v5   ;;  %67 = vperm.xlu0 %7539, %v16_v6  }
   0xb   :  { %7 = vsyncpa [#allocation3], 0  ;;  %v21_v9 = vld [vmem:[%s11011_s0 + $0x48] sm:$0xff]  ;;  %v20_v10 = vld [vmem:[%s11011_s0 + $0x40] sm:$0xff]  ;;  %v7699_v33 = vmov 1  }
   0xc   :  { %v23_v11 = vld [vmem:[%s11011_s0 + $0x58] sm:$0xff]  ;;  %v22_v12 = vld [vmem:[%s11011_s0 + $0x50] sm:$0xff]  ;;  %v25_v13 = vld [vmem:[%s11011_s0 + $0x68] sm:$0xff] }
   0xd   :  { %v24_v14 = vld [vmem:[%s11011_s0 + $0x60] sm:$0xff]  ;;  %v27_v15 = vld [vmem:[%s11011_s0 + $0x78] sm:$0xff]  ;;  %v26_v16 = vld [vmem:[%s11011_s0 + $0x70] sm:$0xff] }
   0xe   :  { %82 = vperm.xlu1 %7540, %v19_v7   ;;  %77 = vperm.xlu0 %7539, %v18_v8   ;;  %v29_v17 = vld [vmem:[%s11011_s0 + $0x88] sm:$0xff]  ;;  %v28_v18 = vld [vmem:[%s11011_s0 + $0x80] sm:$0xff]  ;;  %v31_v19 = vld [vmem:[%s11011_s0 + $0x98] sm:$0xff] }
   0xf   :  { %v30_v20 = vld [vmem:[%s11011_s0 + $0x90] sm:$0xff]  ;;  %v33_v21 = vld [vmem:[%s11011_s0 + $0xa8] sm:$0xff]  ;;  %v32_v22 = vld [vmem:[%s11011_s0 + $0xa0] sm:$0xff] }
  0x10   :  { %v35_v23 = vld [vmem:[%s11011_s0 + $0xb8] sm:$0xff]  ;;  %v34_v24 = vld [vmem:[%s11011_s0 + $0xb0] sm:$0xff]  ;;  %v37_v25 = vld [vmem:[%s11011_s0 + $0xc8] sm:$0xff] }
  0x11   :  { %v36_v26 = vld [vmem:[%s11011_s0 + $0xc0] sm:$0xff]  ;;  %v39_v27 = vld [vmem:[%s11011_s0 + $0xd8] sm:$0xff]  ;;  %v38_v28 = vld [vmem:[%s11011_s0 + $0xd0] sm:$0xff] }
  0x12   :  { %92 = vperm.xlu1 %7540, %v21_v9   ;;  %87 = vperm.xlu0 %7539, %v20_v10   ;;  %v41_v29 = vld [vmem:[%s11011_s0 + $0xe8] sm:$0xff]  ;;  %v40_v30 = vld [vmem:[%s11011_s0 + $0xe0] sm:$0xff]  ;;  %v43_v31 = vld [vmem:[%s11011_s0 + $0xf8] sm:$0xff] }
  0x13   :  { %v42_v32 = vld [vmem:[%s11011_s0 + $0xf0] sm:$0xff]  ;;  %v7843_v36 = vld [vmem:[%s11012_s1] ss:$0 sm:$0xff] }
  0x16   :  { %102 = vperm.xlu1 %7540, %v23_v11   ;;  %97 = vperm.xlu0 %7539, %v22_v12  }
  0x1a   :  { %112 = vperm.xlu1 %7540, %v25_v13   ;;  %107 = vperm.xlu0 %7539, %v24_v14  }
  0x1e   :  { %122 = vperm.xlu1 %7540, %v27_v15   ;;  %117 = vperm.xlu0 %7539, %v26_v16  }
  0x22   :  { %132 = vperm.xlu1 %7540, %v29_v17   ;;  %127 = vperm.xlu0 %7539, %v28_v18  }
  0x26   :  { %142 = vperm.xlu1 %7540, %v31_v19   ;;  %137 = vperm.xlu0 %7539, %v30_v20  }
  0x2a   :  { %152 = vperm.xlu1 %7540, %v33_v21   ;;  %147 = vperm.xlu0 %7539, %v32_v22  }
  0x2e   :  { %162 = vperm.xlu1 %7540, %v35_v23   ;;  %157 = vperm.xlu0 %7539, %v34_v24  }
  0x32   :  { %172 = vperm.xlu1 %7540, %v37_v25   ;;  %167 = vperm.xlu0 %7539, %v36_v26  }
  0x36   :  { %182 = vperm.xlu1 %7540, %v39_v27   ;;  %177 = vperm.xlu0 %7539, %v38_v28  }
  0x3a   :  { %192 = vperm.xlu1 %7540, %v41_v29   ;;  %187 = vperm.xlu0 %7539, %v40_v30  }
  0x3e   :  { %202 = vperm.xlu1 %7540, %v43_v31   ;;  %197 = vperm.xlu0 %7539, %v42_v32  }
  0x42   :  { %7542 = vset.pattern.permute.xlu1 %v7699_v33  ;;  %7541 = vset.pattern.permute.xlu0 %v7699_v33 }
  0x43   :  { %247 = vperm.xlu1 %7542, %v13_v4   ;;  %243 = vperm.xlu0 %7541, %v7732_v1  }
  0x47   :  { %251 = vperm.xlu1 %7542, %v7727_v0   ;;  %255 = vperm.xlu0 %7541, %v7739_v3  }
  0x4b   :  { %259 = vperm.xlu1 %7542, %v16_v6   ;;  %263 = vperm.xlu0 %7541, %v7748_v5  }
  0x4f   :  { %267 = vperm.xlu1 %7542, %v18_v8   ;;  %271 = vperm.xlu0 %7541, %v19_v7  }
  0x53   :  { %275 = vperm.xlu1 %7542, %v20_v10   ;;  %279 = vperm.xlu0 %7541, %v21_v9  }
  0x57   :  { %283 = vperm.xlu1 %7542, %v22_v12   ;;  %287 = vperm.xlu0 %7541, %v23_v11  }
  0x5b   :  { %291 = vperm.xlu1 %7542, %v24_v14   ;;  %295 = vperm.xlu0 %7541, %v25_v13  }
  0x5f   :  { %299 = vperm.xlu1 %7542, %v26_v16   ;;  %303 = vperm.xlu0 %7541, %v27_v15  }
  0x63   :  { %307 = vperm.xlu1 %7542, %v28_v18   ;;  %311 = vperm.xlu0 %7541, %v29_v17  }
  0x67   :  { %315 = vperm.xlu1 %7542, %v30_v20   ;;  %319 = vperm.xlu0 %7541, %v31_v19  }
  0x6b   :  { %323 = vperm.xlu1 %7542, %v32_v22   ;;  %327 = vperm.xlu0 %7541, %v33_v21  }
  0x6f   :  { %331 = vperm.xlu1 %7542, %v34_v24   ;;  %335 = vperm.xlu0 %7541, %v35_v23  }
  0x73   :  { %339 = vperm.xlu1 %7542, %v36_v26   ;;  %343 = vperm.xlu0 %7541, %v37_v25  }
  0x77   :  { %347 = vperm.xlu1 %7542, %v38_v28   ;;  %351 = vperm.xlu0 %7541, %v39_v27  }
  0x7b   :  { %355 = vperm.xlu1 %7542, %v40_v30   ;;  %359 = vperm.xlu0 %7541, %v41_v29  }
  0x7d   :  { %v7836_v34 = vpop.permute.xlu1 %57  ;;  %v7838_v35 = vpop.permute.xlu0 %47 }
  0x7f   :  { %363 = vperm.xlu1 %7542, %v42_v32   ;;  %367 = vperm.xlu0 %7541, %v43_v31   ;;  %v7935_v32 = vld [vmem:[%s11012_s1 + $0x1] ss:$0 sm:$0xff] }
  0x81   :  { %v63_v37 = vpop.permute.xlu1 %62  ;;  %v53_v38 = vpop.permute.xlu0 %52 }
  0x82   :  { %v7846_v39 = vmul.f32 %v7843_v36, %v63_v37 }
  0x85   :  { %v73_v40 = vpop.permute.xlu1 %72  ;;  %v68_v41 = vpop.permute.xlu0 %67 }
  0x86   :  { %v7849_v42 = vmul.f32 %v7843_v36, %v73_v40  ;;  %v7852_v43 = vmul.f32 %v7843_v36, %v68_v41  ;;  %v209_v40 = vmul.f32 %v7843_v36, %v7838_v35  ;;  %v210_v41 = vmul.f32 %v7843_v36, %v53_v38 }
  0x87   :  { %v211_v35 = vmul.f32 %v7843_v36, %v7836_v34 }
  0x89   :  { %v83_v44 = vpop.permute.xlu1 %82  ;;  %v78_v45 = vpop.permute.xlu0 %77 }
  0x8a   :  { %v7855_v46 = vmul.f32 %v7843_v36, %v83_v44  ;;  %v7858_v47 = vmul.f32 %v7843_v36, %v78_v45 }
  0x8d   :  { %v93_v48 = vpop.permute.xlu1 %92  ;;  %v88_v49 = vpop.permute.xlu0 %87 }
  0x8e   :  { %v7861_v50 = vmul.f32 %v7843_v36, %v93_v48  ;;  %v7864_v51 = vmul.f32 %v7843_v36, %v88_v49 }
  0x91   :  { %v103_v52 = vpop.permute.xlu1 %102  ;;  %v98_v53 = vpop.permute.xlu0 %97 }
  0x92   :  { %v7867_v54 = vmul.f32 %v7843_v36, %v103_v52  ;;  %v7870_v55 = vmul.f32 %v7843_v36, %v98_v53 }
  0x95   :  { %v113_v56 = vpop.permute.xlu1 %112  ;;  %v108_v57 = vpop.permute.xlu0 %107 }
  0x96   :  { %v7873_v58 = vmul.f32 %v7843_v36, %v113_v56  ;;  %v7876_v59 = vmul.f32 %v7843_v36, %v108_v57 }
  0x99   :  { %v123_v60 = vpop.permute.xlu1 %122  ;;  %v118_v61 = vpop.permute.xlu0 %117 }
  0x9a   :  { %v7879_v62 = vmul.f32 %v7843_v36, %v123_v60  ;;  %v7882_v63 = vmul.f32 %v7843_v36, %v118_v61 }
  0x9d   :  { %v133_v0 = vpop.permute.xlu1 %132  ;;  %v128_v1 = vpop.permute.xlu0 %127 }
  0x9e   :  { %v7885_v2 = vmul.f32 %v7843_v36, %v133_v0  ;;  %v7888_v3 = vmul.f32 %v7843_v36, %v128_v1 }
  0xa1   :  { %v143_v4 = vpop.permute.xlu1 %142  ;;  %v138_v5 = vpop.permute.xlu0 %137 }
  0xa2   :  { %v7891_v6 = vmul.f32 %v7843_v36, %v143_v4  ;;  %v7894_v7 = vmul.f32 %v7843_v36, %v138_v5 }
  0xa4   :  { %11028 = vst [vmem:[#allocation5_spill] sm:$0xff] %v7891_v6 }
  0xa5   :  { %v153_v8 = vpop.permute.xlu1 %152  ;;  %v148_v9 = vpop.permute.xlu0 %147 }
  0xa6   :  { %v7897_v10 = vmul.f32 %v7843_v36, %v153_v8  ;;  %v7900_v11 = vmul.f32 %v7843_v36, %v148_v9 }
  0xa8   :  { %11029 = vst [vmem:[#allocation6_spill] sm:$0xff] %v7897_v10  ;;  %11030 = vst [vmem:[#allocation7_spill] sm:$0xff] %v7900_v11 }
  0xa9   :  { %v163_v12 = vpop.permute.xlu1 %162  ;;  %v158_v13 = vpop.permute.xlu0 %157 }
  0xaa   :  { %v7903_v14 = vmul.f32 %v7843_v36, %v163_v12  ;;  %v7906_v15 = vmul.f32 %v7843_v36, %v158_v13 }
  0xac   :  { %11031 = vst [vmem:[#allocation8_spill] sm:$0xff] %v7903_v14  ;;  %11032 = vst [vmem:[#allocation9_spill] sm:$0xff] %v7906_v15 }
  0xad   :  { %v173_v16 = vpop.permute.xlu1 %172  ;;  %v168_v17 = vpop.permute.xlu0 %167 }
  0xae   :  { %v7909_v18 = vmul.f32 %v7843_v36, %v173_v16  ;;  %v7912_v19 = vmul.f32 %v7843_v36, %v168_v17 }
  0xb0   :  { %11033 = vst [vmem:[#allocation10_spill] sm:$0xff] %v7909_v18  ;;  %11034 = vst [vmem:[#allocation11_spill] sm:$0xff] %v7912_v19 }
  0xb1   :  { %v183_v20 = vpop.permute.xlu1 %182  ;;  %v178_v21 = vpop.permute.xlu0 %177 }
  0xb2   :  { %v7915_v22 = vmul.f32 %v7843_v36, %v183_v20  ;;  %v7918_v23 = vmul.f32 %v7843_v36, %v178_v21 }
  0xb4   :  { %11035 = vst [vmem:[#allocation12_spill] sm:$0xff] %v7915_v22  ;;  %11036 = vst [vmem:[#allocation13_spill] sm:$0xff] %v7918_v23 }
  0xb5   :  { %v193_v24 = vpop.permute.xlu1 %192  ;;  %v188_v25 = vpop.permute.xlu0 %187 }
  0xb6   :  { %v7921_v26 = vmul.f32 %v7843_v36, %v193_v24  ;;  %v7924_v27 = vmul.f32 %v7843_v36, %v188_v25 }
  0xb8   :  { %11037 = vst [vmem:[#allocation14_spill] sm:$0xff] %v7921_v26  ;;  %11038 = vst [vmem:[#allocation15_spill] sm:$0xff] %v7924_v27 }
  0xb9   :  { %v203_v28 = vpop.permute.xlu1 %202  ;;  %v198_v29 = vpop.permute.xlu0 %197 }
  0xba   :  { %v7927_v30 = vmul.f32 %v7843_v36, %v203_v28  ;;  %v7930_v31 = vmul.f32 %v7843_v36, %v198_v29 }
  0xbc   :  { %11039 = vst [vmem:[#allocation16_spill] sm:$0xff] %v7927_v30  ;;  %11040 = vst [vmem:[#allocation17_spill] sm:$0xff] %v7930_v31 }
  0xbe   :  { %v248_v33 = vpop.permute.xlu1 %247  ;;  %v244_v37 = vpop.permute.xlu0 %243 }
  0xbf   :  { %v375_v44 = vmul.f32 %v7935_v32, %v248_v33  ;;  %v374_v45 = vmul.f32 %v7935_v32, %v244_v37 }
  0xc1   :  { %v7942_v48 = vadd.f32 %v375_v44, %v210_v41  ;;  %v7944_v49 = vadd.f32 %v374_v45, %v209_v40  ;;  %v11024_v41 = vmov 683565275  }
  0xc2   :  { %v252_v52 = vpop.permute.xlu1 %251  ;;  %v256_v26 = vpop.permute.xlu0 %255 }
  0xc3   :  { %v11015_v53 = vand.u32 2147483647, %v7942_v48  ;;  %v545_v56 = vand.u32 2139095040, %v7942_v48  ;;  %v11014_v57 = vand.u32 2147483647, %v7944_v49  ;;  %v441_v60 = vand.u32 2139095040, %v7944_v49 }
  0xc4   :  { %v376_v61 = vmul.f32 %v7935_v32, %v252_v52  ;;  %vm544_vm14 = vcmp.lt.s32.totalorder %v7942_v48, 0 }
  0xc5   :  { %v546_v38 = vshrl.u32 %v545_v56, 23  ;;  %v549_v0 = vand.u32 8388607, %v11015_v53  ;;  %v442_v1 = vshrl.u32 %v441_v60, 23  ;;  %v445_v4 = vand.u32 8388607, %v11014_v57 }
  0xc6   :  { %v7957_v8 = vadd.f32 %v376_v61, %v211_v35  ;;  %v11020_v56 = vmov 2475754826   ;;  %v11018_v35 = vmov 2131351028   ;;  %v11016_v61 = vmov 2102212464  }
  0xc7   :  { %v7148_v5 = vadd.s32 4294967169, %v546_v38  ;;  %v7144_v9 = vadd.s32 4294967169, %v442_v1  ;;  %v550_v13 = vor.u32 8388608, %v549_v0  ;;  %v446_v16 = vor.u32 8388608, %v445_v4 }
  0xc8   :  { %v649_v34 = vand.u32 2139095040, %v7957_v8  ;;  %v11022_v1 = vmov 920167782  }
  0xc9   :  { %v552_v12 = vadd.s32 1, %v7148_v5  ;;  %v448_v17 = vadd.s32 1, %v7144_v9  ;;  %v7960_v28 = vshll.u32 %v550_v13, 8  ;;  %v7964_v33 = vshll.u32 %v446_v16, 8 }
  0xca   :  { %v650_v20 = vshrl.u32 %v649_v34, 23 }
  0xcb   :  { %vm553_vm0 = vcmp.gt.s32.totalorder %v552_v12, 0  ;;  %vm449_vm1 = vcmp.gt.s32.totalorder %v448_v17, 0 }
  0xcc   :  { %v554_v36 = vsel %vm553_vm0, %v552_v12, 0  ;;  %v450_v25 = vsel %vm449_vm1, %v448_v17, 0  ;;  %v7968_v52 = vadd.s32 4294967169, %v650_v20  ;;  %v11026_v17 = vmov 1326507024  }
  0xcd   :  { %v555_v21 = vshrl.u32 %v554_v36, 5  ;;  %v556_v24 = vand.u32 31, %v554_v36  ;;  %v7962_v29 = vshrl.u32 %v450_v25, 5  ;;  %v452_v45 = vand.u32 31, %v450_v25 }
  0xcf   :  { %v557_v40 = vsub.s32 32, %v556_v24  ;;  %v559_v44 = vshll.u32 %v11024_v41, %v556_v24  ;;  %v562_v60 = vshll.u32 %v11020_v56, %v556_v24  ;;  %v565_v38 = vshll.u32 %v11018_v35, %v556_v24 }
  0xd0   :  { %v568_v0 = vshll.u32 %v11016_v61, %v556_v24  ;;  %v571_v4 = vshll.u32 %v11022_v1, %v556_v24  ;;  %vm574_vm2 = vcmp.lt.s32.totalorder %v555_v21, 1  ;;  %vm575_vm3 = vcmp.lt.s32.totalorder %v555_v21, 2 }
  0xd1   :  { %v560_v5 = vshrl.u32 %v11020_v56, %v557_v40  ;;  %v563_v9 = vshrl.u32 %v11018_v35, %v557_v40  ;;  %v566_v12 = vshrl.u32 %v11016_v61, %v557_v40  ;;  %v558_v13 = vshrl.u32 %v11024_v41, %v557_v40 }
  0xd2   :  { %v569_v16 = vshrl.u32 %v11022_v1, %v557_v40  ;;  %v572_v34 = vshrl.u32 %v11026_v17, %v557_v40  ;;  %v453_v57 = vsub.s32 32, %v452_v45  ;;  %vm576_vm4 = vcmp.lt.s32.totalorder %v555_v21, 3 }
  0xd3   :  { %v561_v36 = vor.u32 %v560_v5, %v559_v44  ;;  %v564_v20 = vor.u32 %v563_v9, %v562_v60  ;;  %v567_v25 = vor.u32 %v566_v12, %v565_v38  ;;  %vm577_vm5 = vcmp.lt.s32.totalorder %v555_v21, 4 }
  0xd4   :  { %v570_v24 = vor.u32 %v569_v16, %v568_v0  ;;  %v573_v53 = vor.u32 %v572_v34, %v571_v4  ;;  %v11041_v40 = vmov 683565275   ;;  %v11042_v38 = vmov 2475754826  }
  0xd5   :  { %v578_v37 = vsel %vm574_vm2, %v558_v13, %v561_v36  ;;  %v579_v61 = vsel %vm577_vm5, %v567_v25, 2102212464  ;;  %v582_v35 = vsel %vm574_vm2, %v561_v36, %v564_v20  ;;  %v586_v56 = vsel %vm574_vm2, %v564_v20, %v567_v25 }
  0xd6   :  { %v580_v1 = vsel %vm576_vm4, %v564_v20, %v579_v61  ;;  %v583_v41 = vsel %vm577_vm5, %v570_v24, 920167782  ;;  %v587_v30 = vsel %vm577_vm5, %v573_v53, 1326507024  ;;  %v455_v17 = vshll.u32 %v11041_v40, %v452_v45 }
  0xd7   :  { %v584_v44 = vsel %vm576_vm4, %v567_v25, %v583_v41  ;;  %v588_v60 = vsel %vm576_vm4, %v570_v24, %v587_v30  ;;  %v456_v5 = vshrl.u32 %v11042_v38, %v453_v57  ;;  %v458_v0 = vshll.u32 %v11042_v38, %v452_v45 }
  0xd8   :  { %v581_v4 = vsel %vm575_vm3, %v578_v37, %v580_v1  ;;  %v585_v9 = vsel %vm575_vm3, %v582_v35, %v584_v44  ;;  %v589_v12 = vsel %vm575_vm3, %v586_v56, %v588_v60  ;;  %v11043_v13 = vmov 2131351028  }
  0xd9   :  { %v459_v16 = vshrl.u32 %v11043_v13, %v453_v57  ;;  %v7991_v61 = vmul.u32.u64.low %v7960_v28, %v589_v12  ;;  %v7992_v34 = vmul.u32.u64.high %v7960_v28, %v589_v12, %v7991_v61  ;;  %v457_v30 = vor.u32 %v456_v5, %v455_v17 }
  0xda   :  { %v7995_v53 = vmul.u32.u64.low %v7960_v28, %v585_v9  ;;  %v7996_v41 = vmul.u32.u64.high %v7960_v28, %v585_v9, %v7995_v53  ;;  %v461_v20 = vshll.u32 %v11043_v13, %v452_v45  ;;  %v11044_v37 = vmov 2102212464  }
  0xdb   :  { %v460_v36 = vor.u32 %v459_v16, %v458_v0  ;;  %v462_v1 = vshrl.u32 %v11044_v37, %v453_v57  ;;  %v454_v21 = vshrl.u32 %v11041_v40, %v453_v57  ;;  %v464_v56 = vshll.u32 %v11044_v37, %v452_v45 }
  0xdc   :  { %v11045_v35 = vmov 920167782   ;;  %v11046_v24 = vmov 1326507024   ;;  %v597_v60 = vmul.u32 %v7960_v28, %v581_v4  ;;  %vm470_vm6 = vcmp.lt.s32.totalorder %v7962_v29, 1 }
  0xdd   :  { %v465_v25 = vshrl.u32 %v11045_v35, %v453_v57  ;;  %v468_v44 = vshrl.u32 %v11046_v24, %v453_v57  ;;  %v463_v12 = vor.u32 %v462_v1, %v461_v20  ;;  %v467_v9 = vshll.u32 %v11045_v35, %v452_v45 }
  0xde   :  { %vm599_vm7 = vc.u32 %v7992_v34, %v7995_v53  ;;  %v600_v17 = vadd.s32 1, %v7996_v41  ;;  %vm471_vm8 = vcmp.lt.s32.totalorder %v7962_v29, 2  ;;  %vm472_vm9 = vcmp.lt.s32.totalorder %v7962_v29, 3 }
  0xdf   :  { %v466_v5 = vor.u32 %v465_v25, %v464_v56  ;;  %v469_v0 = vor.u32 %v468_v44, %v467_v9  ;;  %vm473_vm10 = vcmp.lt.s32.totalorder %v7962_v29, 4  ;;  %v478_v57 = vsel %vm470_vm6, %v457_v30, %v460_v36 }
  0xe0   :  { %v601_v28 = vsel %vm599_vm7, %v600_v17, %v7996_v41  ;;  %v475_v4 = vsel %vm473_vm10, %v463_v12, 2102212464  ;;  %v482_v16 = vsel %vm470_vm6, %v460_v36, %v463_v12  ;;  %v474_v20 = vsel %vm470_vm6, %v454_v21, %v457_v30 }
  0xe1   :  { %v479_v45 = vsel %vm473_vm10, %v466_v5, 920167782  ;;  %v602_v61 = vadd.s32 %v601_v28, %v597_v60  ;;  %v483_v31 = vsel %vm473_vm10, %v469_v0, 1326507024  ;;  %v476_v27 = vsel %vm472_vm9, %v460_v36, %v475_v4 }
  0xe2   :  { %v480_v1 = vsel %vm472_vm9, %v463_v12, %v479_v45  ;;  %v484_v25 = vsel %vm472_vm9, %v466_v5, %v483_v31  ;;  %v656_v44 = vadd.s32 1, %v7968_v52  ;;  %v377_v36 = vmul.f32 %v7935_v32, %v256_v26 }
  0xe3   :  { %v481_v56 = vsel %vm471_vm8, %v478_v57, %v480_v1  ;;  %v603_v9 = vadd.s32 536870912, %v602_v61  ;;  %v485_v22 = vsel %vm471_vm8, %v482_v16, %v484_v25  ;;  %v477_v31 = vsel %vm471_vm8, %v474_v20, %v476_v27 }
  0xe4   :  { %v8021_v41 = vmul.u32.u64.low %v7964_v33, %v481_v56  ;;  %v8022_v17 = vmul.u32.u64.high %v7964_v33, %v481_v56, %v8021_v41  ;;  %v8025_v30 = vmul.u32.u64.low %v7964_v33, %v485_v22  ;;  %v8026_v21 = vmul.u32.u64.high %v7964_v33, %v485_v22, %v8025_v30 }
  0xe5   :  { %vm657_vm11 = vcmp.gt.s32.totalorder %v656_v44, 0  ;;  %v604_v60 = vshrl.u32 %v603_v9, 30  ;;  %v11047_v0 = vand.u32 2147483647, %v7957_v8  ;;  %v493_v28 = vmul.u32 %v7964_v33, %v477_v31 }
  0xe6   :  { %v658_v52 = vsel %vm657_vm11, %v656_v44, 0  ;;  %v496_v5 = vadd.s32 1, %v8022_v17  ;;  %vm495_vm12 = vc.u32 %v8026_v21, %v8021_v41  ;;  %v8037_v22 = vadd.f32 %v377_v36, %v7846_v39 }
  0xe7   :  { %v605_v12 = vshll.u32 %v604_v60, 30  ;;  %v653_v57 = vand.u32 8388607, %v11047_v0  ;;  %v660_v45 = vand.u32 31, %v658_v52  ;;  %v628_v20 = vsub.s32 4, %v604_v60 }
  0xe8   :  { %v497_v26 = vsel %vm495_vm12, %v496_v5, %v8022_v17  ;;  %v753_v56 = vand.u32 2139095040, %v8037_v22  ;;  %v11048_v33 = vand.u32 2147483647, %v7942_v48  ;;  %v8052_v30 = vshrl.u32 %v658_v52, 5 }
  0xe9   :  { %v606_v4 = vsub.s32 %v602_v61, %v605_v12  ;;  %v498_v29 = vadd.s32 %v497_v26, %v493_v28  ;;  %v654_v16 = vor.u32 8388608, %v653_v57  ;;  %v661_v44 = vsub.s32 32, %v660_v45 }
  0xea   :  { %vm8043_vm13 = vcmp.le.f32.partialorder %v11048_v33, 0.7853982  ;;  %v598_v61 = vadd.s32 %v7995_v53, %v7992_v34  ;;  %v629_v31 = vsel %vm544_vm14, %v628_v20, %v604_v60  ;;  %v494_v12 = vadd.s32 %v8021_v41, %v8026_v21 }
  0xeb   :  { %v608_v27 = vsub.s32 0, %v606_v4  ;;  %v499_v1 = vadd.s32 536870912, %v498_v29  ;;  %v8054_v36 = vshll.u32 %v654_v16, 8  ;;  %v754_v0 = vshrl.u32 %v753_v56, 23 }
  0xec   :  { %v663_v28 = vshll.u32 %v11041_v40, %v660_v45  ;;  %v664_v26 = vshrl.u32 %v11042_v38, %v661_v44  ;;  %v667_v34 = vshrl.u32 %v11043_v13, %v661_v44  ;;  %v666_v52 = vshll.u32 %v11042_v38, %v660_v45 }
  0xed   :  { %v7149_v25 = vmin.u32 %v608_v27, %v606_v4  ;;  %v8048_v39 = vshrl.u32 %v499_v1, 30  ;;  %v670_v27 = vshrl.u32 %v11044_v37, %v661_v44  ;;  %v673_v60 = vshrl.u32 %v11045_v35, %v661_v44 }
  0xee   :  { %v8070_v41 = vsel %vm8043_vm13, 0, %v629_v31  ;;  %v662_v21 = vshrl.u32 %v11041_v40, %v661_v44  ;;  %v669_v16 = vshll.u32 %v11043_v13, %v660_v45  ;;  %v676_v56 = vshrl.u32 %v11046_v24, %v661_v44 }
  0xef   :  { %v610_v17 = vclz %v7149_v25  ;;  %v501_v5 = vshll.u32 %v8048_v39, 30  ;;  %v675_v19 = vshll.u32 %v11045_v35, %v660_v45  ;;  %vm678_vm0 = vcmp.lt.s32.totalorder %v8052_v30, 1 }
  0xf0   :  { %v671_v18 = vor.u32 %v670_v27, %v669_v16  ;;  %vm679_vm1 = vcmp.lt.s32.totalorder %v8052_v30, 2  ;;  %vm681_vm2 = vcmp.lt.s32.totalorder %v8052_v30, 4  ;;  %vm680_vm3 = vcmp.lt.s32.totalorder %v8052_v30, 3 }
  0xf1   :  { %v7150_v57 = vadd.s32 4294967294, %v610_v17  ;;  %v8063_v53 = vsub.s32 %v498_v29, %v501_v5  ;;  %v672_v29 = vshll.u32 %v11044_v37, %v660_v45  ;;  %v665_v17 = vor.u32 %v664_v26, %v663_v28 }
  0xf2   :  { %v668_v5 = vor.u32 %v667_v34, %v666_v52  ;;  %v677_v6 = vor.u32 %v676_v56, %v675_v19  ;;  %v683_v52 = vsel %vm681_vm2, %v671_v18, 2102212464  ;;  %v7156_v16 = vadd.s32 4294967169, %v754_v0 }
  0xf3   :  { %vm7151_vm15 = vcmp.lt.s32.totalorder %v7150_v57, 0  ;;  %v504_v1 = vsub.s32 0, %v8063_v53  ;;  %v674_v31 = vor.u32 %v673_v60, %v672_v29  ;;  %v682_v45 = vsel %vm678_vm0, %v662_v21, %v665_v17 }
  0xf4   :  { %v613_v20 = vsel %vm7151_vm15, 0, %v7150_v57  ;;  %v524_v57 = vsub.s32 4, %v8048_v39  ;;  %v686_v26 = vsel %vm678_vm0, %v665_v17, %v668_v5  ;;  %v690_v19 = vsel %vm678_vm0, %v668_v5, %v671_v18 }
  0xf5   :  { %v614_v25 = vsub.s32 32, %v613_v20  ;;  %v618_v33 = vsub.s32 4294967266, %v613_v20  ;;  %v7145_v23 = vmin.u32 %v504_v1, %v8063_v53  ;;  %v615_v14 = vshll.u32 %v606_v4, %v613_v20 }
  0xf6   :  { %v687_v4 = vsel %vm681_vm2, %v674_v31, 920167782  ;;  %v684_v1 = vsel %vm680_vm3, %v668_v5, %v683_v52  ;;  %vm440_vm5 = vcmp.lt.s32.totalorder %v7944_v49, 0  ;;  %v750_v5 = vand.u32 2147483647, %v8037_v22 }
  0xf7   :  { %v616_v15 = vshrl.u32 %v598_v61, %v614_v25  ;;  %v619_v10 = vadd.s32 127, %v618_v33  ;;  %v506_v11 = vclz %v7145_v23  ;;  %v688_v23 = vsel %vm680_vm3, %v671_v18, %v687_v4 }
  0xf8   :  { %v685_v4 = vsel %vm679_vm1, %v682_v45, %v684_v1  ;;  %v635_v52 = vadd.s32 3, %v8070_v41  ;;  %v260_v45 = vpop.permute.xlu1 %259  ;;  %vm634_vm15 = vweird.f32 %v7942_v48 }
  0xf9   :  { %v617_v44 = vor.u32 %v616_v15, %v615_v14  ;;  %v620_v28 = vshll.u32 %v619_v10, 23  ;;  %v7146_v34 = vadd.s32 4294967294, %v506_v11  ;;  %v689_v14 = vsel %vm679_vm1, %v686_v26, %v688_v23 }
  0xfa   :  { %v691_v10 = vsel %vm681_vm2, %v677_v6, 1326507024  ;;  %v11051_v26 = vand.u32 2147483647, %v7944_v49  ;;  %v8133_v1 = vand.u32 3, %v635_v52 }
  0xfb   :  { %v621_v61 = vor.u32 4788187, %v620_v28  ;;  %v624_v27 = vcvt.s32.f32 %v617_v44  ;;  %vm7147_vm4 = vcmp.lt.s32.totalorder %v7146_v34, 0  ;;  %v692_v11 = vsel %vm680_vm3, %v674_v31, %v691_v10 }
  0xfc   :  { %v509_v60 = vsel %vm7147_vm4, 0, %v7146_v34  ;;  %v693_v18 = vsel %vm679_vm1, %v690_v19, %v692_v11  ;;  %v8100_v31 = vmul.u32.u64.low %v8054_v36, %v689_v14  ;;  %v8101_v0 = vmul.u32.u64.high %v8054_v36, %v689_v14, %v8100_v31 }
  0xfd   :  { %v622_v15 = vand.u32 2147483647, %v621_v61  ;;  %v510_v21 = vsub.s32 32, %v509_v60  ;;  %v514_v20 = vsub.s32 4294967266, %v509_v60  ;;  %v511_v56 = vshll.u32 %v8063_v53, %v509_v60 }
  0xfe   :  { %v8096_v25 = vmul.u32.u64.low %v8054_v36, %v693_v18  ;;  %v8097_v6 = vmul.u32.u64.high %v8054_v36, %v693_v18, %v8096_v25  ;;  %v760_v28 = vadd.s32 1, %v7156_v16  ;;  %vm8108_vm6 = vcmp.le.f32.partialorder %v11051_v26, 0.7853982  ;;  %v264_v16 = vpop.permute.xlu0 %263 }
  0xff   :  { %v625_v29 = vmul.f32 %v624_v27, %v622_v15  ;;  %v512_v33 = vshrl.u32 %v494_v12, %v510_v21  ;;  %v515_v17 = vadd.s32 127, %v514_v20  ;;  %v525_v27 = vsel %vm440_vm5, %v524_v57, %v8048_v39 }
 0x100   :  { %vm703_vm7 = vc.u32 %v8097_v6, %v8100_v31  ;;  %vm761_vm8 = vcmp.gt.s32.totalorder %v760_v28, 0  ;;  %v704_v30 = vadd.s32 1, %v8101_v0  ;;  %v701_v14 = vmul.u32 %v8054_v36, %v685_v4 }
 0x101   :  { %v626_v44 = vxor.u32 2147483648, %v625_v29  ;;  %v513_v34 = vor.u32 %v512_v33, %v511_v56  ;;  %v516_v12 = vshll.u32 %v515_v17, 23  ;;  %v757_v10 = vand.u32 8388607, %v750_v5 }
 0x102   :  { %v762_v15 = vsel %vm761_vm8, %v760_v28, 0  ;;  %v705_v9 = vsel %vm703_vm7, %v704_v30, %v8101_v0  ;;  %v527_v21 = vsel %vm8108_vm6, 0, %v525_v27  ;;  %v378_v20 = vmul.f32 %v7935_v32, %v260_v45 }
 0x103   :  { %v627_v61 = vsel %vm544_vm14, %v626_v44, %v625_v29  ;;  %v517_v19 = vor.u32 4788187, %v516_v12  ;;  %v520_v11 = vcvt.s32.f32 %v513_v34  ;;  %v706_v39 = vadd.s32 %v705_v9, %v701_v14 }
 0x104   :  { %v630_v23 = vsel %vm8043_vm13, %v7942_v48, %v627_v61  ;;  %v764_v57 = vand.u32 31, %v762_v15  ;;  %v8136_v36 = vand.u32 3, %v8070_v41  ;;  %v8139_v25 = vmul.f32 %v7935_v32, %v264_v16 }
 0x105   :  { %7543 = vcosq.f32 %v630_v23  ;;  %v518_v60 = vand.u32 2147483647, %v517_v19  ;;  %v707_v29 = vadd.s32 536870912, %v706_v39  ;;  %v531_v17 = vadd.s32 3, %v527_v21 }
 0x106   :  { %7545 = vsinq.f32 %v630_v23  ;;  %v765_v56 = vsub.s32 32, %v764_v57  ;;  %v8141_v0 = vand.u32 3, %v527_v21  ;;  %v758_v44 = vor.u32 8388608, %v757_v10 }
 0x107   :  { %v521_v18 = vmul.f32 %v520_v11, %v518_v60  ;;  %v8143_v28 = vshrl.u32 %v707_v29, 30  ;;  %v8145_v26 = vshrl.u32 %v762_v15, 5  ;;  %v8149_v41 = vadd.f32 %v378_v20, %v7852_v43 }
 0x108   :  { %v768_v34 = vshrl.u32 %v11042_v38, %v765_v56  ;;  %vm641_vm9 = vcmp.eq.s32.totalorder %v8133_v1, 2  ;;  %vm3999_vm10 = vcmp.eq.s32.totalorder %v8136_v36, 2  ;;  %v771_v4 = vshrl.u32 %v11043_v13, %v765_v56 }
 0x109   :  { %v522_v33 = vxor.u32 2147483648, %v521_v18  ;;  %v774_v61 = vshrl.u32 %v11044_v37, %v765_v56  ;;  %v777_v52 = vshrl.u32 %v11045_v35, %v765_v56  ;;  %vm638_vm11 = vcmp.eq.s32.totalorder %v8133_v1, 0 }
 0x10a   :  { %vm3996_vm12 = vcmp.eq.s32.totalorder %v8136_v36, 0  ;;  %v709_v23 = vshll.u32 %v8143_v28, 30  ;;  %v773_v19 = vshll.u32 %v11043_v13, %v764_v57  ;;  %v780_v27 = vshrl.u32 %v11046_v24, %v765_v56 }
 0x10b   :  { %v523_v12 = vsel %vm440_vm5, %v522_v33, %v521_v18  ;;  %vm637_vm13 = vcmp.lt.s32.totalorder %v8133_v1, 2  ;;  %vm3995_vm14 = vcmp.lt.s32.totalorder %v8136_v36, 2  ;;  %v767_v30 = vshll.u32 %v11041_v40, %v764_v57 }
 0x10c   :  { %v526_v43 = vsel %vm8108_vm6, %v7944_v49, %v523_v12  ;;  %v770_v45 = vshll.u32 %v11042_v38, %v764_v57  ;;  %v776_v14 = vshll.u32 %v11044_v37, %v764_v57  ;;  %v8172_v53 = vsub.s32 %v706_v39, %v709_v23 }
 0x10d   :  { %7547 = vcosq.f32 %v526_v43  ;;  %v775_v10 = vor.u32 %v774_v61, %v773_v19  ;;  %v779_v15 = vshll.u32 %v11045_v35, %v764_v57  ;;  %v8175_v60 = vand.u32 3, %v531_v17 }
 0x10e   :  { %7549 = vsinq.f32 %v526_v43  ;;  %v769_v11 = vor.u32 %v768_v34, %v767_v30  ;;  %v772_v9 = vor.u32 %v771_v4, %v770_v45  ;;  %v778_v16 = vor.u32 %v777_v52, %v776_v14 }
 0x10f   :  { %v712_v21 = vsub.s32 0, %v8172_v53  ;;  %v781_v20 = vor.u32 %v780_v27, %v779_v15  ;;  %v8178_v18 = vshll.u32 %v758_v44, 8  ;;  %v857_v29 = vand.u32 2139095040, %v8149_v41 }
 0x110   :  { %v766_v12 = vshrl.u32 %v11041_v40, %v765_v56  ;;  %vm782_vm0 = vcmp.lt.s32.totalorder %v8145_v26, 1  ;;  %vm783_vm1 = vcmp.lt.s32.totalorder %v8145_v26, 2  ;;  %vm785_vm2 = vcmp.lt.s32.totalorder %v8145_v26, 4 }
 0x111   :  { %v7153_v17 = vmin.u32 %v712_v21, %v8172_v53  ;;  %vm784_vm3 = vcmp.lt.s32.totalorder %v8145_v26, 3  ;;  %v787_v34 = vsel %vm785_vm2, %v775_v10, 2102212464  ;;  %v790_v56 = vsel %vm782_vm0, %v769_v11, %v772_v9 }
 0x112   :  { %v7544_v33 = vpop.eup %7543  ;;  %v786_v4 = vsel %vm782_vm0, %v766_v12, %v769_v11  ;;  %v791_v61 = vsel %vm785_vm2, %v778_v16, 920167782  ;;  %vm3896_vm4 = vcmp.eq.s32.totalorder %v8141_v0, 2  ;;  %v795_v19 = vsel %vm785_vm2, %v781_v20, 1326507024 }
 0x113   :  { %v7546_v39 = vpop.eup %7545  ;;  %v642_v57 = vxor.u32 2147483648, %v7544_v33  ;;  %v714_v23 = vclz %v7153_v17  ;;  %vm534_vm5 = vcmp.eq.s32.totalorder %v8175_v60, 0  ;;  %vm3893_vm6 = vcmp.eq.s32.totalorder %v8141_v0, 0 }
 0x114   :  { %v639_v44 = vxor.u32 2147483648, %v7546_v39  ;;  %v788_v45 = vsel %vm784_vm3, %v772_v9, %v787_v34  ;;  %v794_v14 = vsel %vm782_vm0, %v772_v9, %v775_v10  ;;  %vm533_vm7 = vcmp.lt.s32.totalorder %v8175_v60, 2 }
 0x115   :  { %v643_v52 = vsel %vm641_vm9, %v642_v57, %v7546_v39  ;;  %v4001_v43 = vsel %vm3999_vm10, %v642_v57, %v7546_v39  ;;  %vm3892_vm8 = vcmp.lt.s32.totalorder %v8141_v0, 2  ;;  %v7154_v21 = vadd.s32 4294967294, %v714_v23 }
 0x116   :  { %v640_v27 = vsel %vm638_vm11, %v7544_v33, %v639_v44  ;;  %v3998_v30 = vsel %vm3996_vm12, %v7544_v33, %v639_v44  ;;  %v792_v20 = vsel %vm784_vm3, %v775_v10, %v791_v61  ;;  %vm530_vm9 = vweird.f32 %v7944_v49 }
 0x117   :  { %v644_v15 = vsel %vm637_vm13, %v640_v27, %v643_v52  ;;  %v4002_v11 = vsel %vm3995_vm14, %v3998_v30, %v4001_v43  ;;  %v793_v1 = vsel %vm783_vm1, %v790_v56, %v792_v20  ;;  %v796_v36 = vsel %vm784_vm3, %v778_v16, %v795_v19 }
 0x118   :  { %v645_v33 = vsel %vm634_vm15, nan, %v644_v15  ;;  %v4003_v9 = vsel %vm634_vm15, nan, %v4002_v11  ;;  %vm648_vm10 = vcmp.lt.s32.totalorder %v7957_v8, 0  ;;  %vm7155_vm11 = vcmp.lt.s32.totalorder %v7154_v21, 0 }
 0x119   :  { %3767 = vst [vmem:[#allocation2 + $0x10] sm:$0xff] %v645_v33  ;;  %7095 = vst [vmem:[#allocation2 + $0x18] sm:$0xff] %v4003_v9  ;;  %v797_v10 = vsel %vm783_vm1, %v794_v14, %v796_v36  ;;  %v8227_v12 = vmul.u32.u64.low %v8178_v18, %v793_v1  ;;  %v8228_v48 = vmul.u32.u64.high %v8178_v18, %v793_v1, %v8227_v12  ;;  %vm537_vm12 = vcmp.eq.s32.totalorder %v8175_v60, 2 }
 0x11a   :  { %v717_v39 = vsel %vm7155_vm11, 0, %v7154_v21  ;;  %v8233_v57 = vmul.u32.u64.low %v8178_v18, %v797_v10  ;;  %v8234_v17 = vmul.u32.u64.high %v8178_v18, %v797_v10, %v8233_v57  ;;  %v7548_v16 = vpop.eup %7547  ;;  %v702_v34 = vadd.s32 %v8100_v31, %v8097_v6 }
 0x11b   :  { %v718_v44 = vsub.s32 32, %v717_v39  ;;  %v722_v56 = vsub.s32 4294967266, %v717_v39  ;;  %v789_v61 = vsel %vm783_vm1, %v786_v4, %v788_v45  ;;  %v7550_v52 = vpop.eup %7549  ;;  %v538_v43 = vxor.u32 2147483648, %v7548_v16 }
 0x11c   :  { %v719_v23 = vshll.u32 %v8172_v53, %v717_v39  ;;  %v732_v19 = vsub.s32 4, %v8143_v28  ;;  %v858_v27 = vshrl.u32 %v857_v29, 23  ;;  %v535_v30 = vxor.u32 2147483648, %v7550_v52 }
 0x11d   :  { %v720_v14 = vshrl.u32 %v702_v34, %v718_v44  ;;  %v723_v15 = vadd.s32 127, %v722_v56  ;;  %v808_v11 = vadd.s32 1, %v8228_v48  ;;  %v539_v6 = vsel %vm537_vm12, %v538_v43, %v7550_v52 }
 0x11e   :  { %v3898_v31 = vsel %vm3896_vm4, %v538_v43, %v7550_v52  ;;  %v805_v26 = vmul.u32 %v8178_v18, %v789_v61  ;;  %vm807_vm13 = vc.u32 %v8234_v17, %v8227_v12  ;;  %v536_v53 = vsel %vm534_vm5, %v7548_v16, %v535_v30 }
 0x11f   :  { %v3895_v29 = vsel %vm3893_vm6, %v7548_v16, %v535_v30  ;;  %v721_v4 = vor.u32 %v720_v14, %v719_v23  ;;  %v724_v45 = vshll.u32 %v723_v15, 23  ;;  %v540_v21 = vsel %vm533_vm7, %v536_v53, %v539_v6 }
 0x120   :  { %v3899_v20 = vsel %vm3892_vm8, %v3895_v29, %v3898_v31  ;;  %v809_v33 = vsel %vm807_vm13, %v808_v11, %v8228_v48  ;;  %v7160_v18 = vadd.s32 4294967169, %v858_v27  ;;  %v541_v9 = vsel %vm530_vm9, nan, %v540_v21 }
 0x121   :  { %v3900_v1 = vsel %vm530_vm9, nan, %v3899_v20  ;;  %v725_v36 = vor.u32 4788187, %v724_v45  ;;  %v8265_v10 = vadd.f32 %v8139_v25, %v7849_v42  ;;  %3766 = vst [vmem:[#allocation2] sm:$0xff] %v541_v9  ;;  %v733_v0 = vsel %vm648_vm10, %v732_v19, %v8143_v28 }
 0x122   :  { %7094 = vst [vmem:[#allocation2 + $0x8] sm:$0xff] %v3900_v1  ;;  %v810_v60 = vadd.s32 %v809_v33, %v805_v26  ;;  %v854_v48 = vand.u32 2147483647, %v8149_v41  ;;  %v864_v39 = vadd.s32 1, %v7160_v18  ;;  %v728_v16 = vcvt.s32.f32 %v721_v4 }
 0x123   :  { %v726_v57 = vand.u32 2147483647, %v725_v36  ;;  %v11054_v49 = vand.u32 2147483647, %v7957_v8  ;;  %v961_v43 = vand.u32 2139095040, %v8265_v10  ;;  %vm752_vm0 = vcmp.lt.s32.totalorder %v8037_v22, 0 }
 0x124   :  { %v811_v42 = vadd.s32 536870912, %v810_v60  ;;  %vm865_vm15 = vcmp.gt.s32.totalorder %v864_v39, 0  ;;  %v861_v61 = vand.u32 8388607, %v854_v48  ;;  %vm738_vm11 = vweird.f32 %v7957_v8 }
 0x125   :  { %vm8273_vm14 = vcmp.le.f32.partialorder %v11054_v49, 0.7853982  ;;  %v729_v25 = vmul.f32 %v728_v16, %v726_v57  ;;  %v866_v56 = vsel %vm865_vm15, %v864_v39, 0  ;;  %v962_v26 = vshrl.u32 %v961_v43, 23 }
 0x126   :  { %v735_v44 = vsel %vm8273_vm14, 0, %v733_v0  ;;  %v8279_v28 = vshrl.u32 %v811_v42, 30  ;;  %v868_v52 = vand.u32 31, %v866_v56  ;;  %v862_v31 = vor.u32 8388608, %v861_v61 }
 0x127   :  { %v730_v23 = vxor.u32 2147483648, %v729_v25  ;;  %v739_v14 = vadd.s32 3, %v735_v44  ;;  %v8287_v15 = vand.u32 3, %v735_v44  ;;  %v867_v53 = vshrl.u32 %v866_v56, 5 }
 0x128   :  { %v813_v19 = vshll.u32 %v8279_v28, 30  ;;  %v869_v27 = vsub.s32 32, %v868_v52  ;;  %v871_v21 = vshll.u32 %v11041_v40, %v868_v52  ;;  %v874_v20 = vshll.u32 %v11042_v38, %v868_v52 }
 0x129   :  { %v731_v30 = vsel %vm648_vm10, %v730_v23, %v729_v25  ;;  %v877_v33 = vshll.u32 %v11043_v13, %v868_v52  ;;  %v880_v9 = vshll.u32 %v11044_v37, %v868_v52  ;;  %v8303_v36 = vand.u32 3, %v739_v14 }
 0x12a   :  { %v734_v11 = vsel %vm8273_vm14, %v7957_v8, %v731_v30  ;;  %v8292_v6 = vsub.s32 %v810_v60, %v813_v19  ;;  %v872_v29 = vshrl.u32 %v11042_v38, %v869_v27  ;;  %v875_v4 = vshrl.u32 %v11043_v13, %v869_v27 }
 0x12b   :  { %7551 = vcosq.f32 %v734_v11  ;;  %v878_v18 = vshrl.u32 %v11044_v37, %v869_v27  ;;  %v881_v1 = vshrl.u32 %v11045_v35, %v869_v27  ;;  %v806_v57 = vadd.s32 %v8227_v12, %v8234_v17 }
 0x12c   :  { %7553 = vsinq.f32 %v734_v11  ;;  %v816_v45 = vsub.s32 0, %v8292_v6  ;;  %v873_v60 = vor.u32 %v872_v29, %v871_v21  ;;  %v876_v39 = vor.u32 %v875_v4, %v874_v20 }
 0x12d   :  { %v879_v16 = vor.u32 %v878_v18, %v877_v33  ;;  %v882_v49 = vor.u32 %v881_v1, %v880_v9  ;;  %v8308_v34 = vshll.u32 %v862_v31, 8  ;;  %v836_v25 = vsub.s32 4, %v8279_v28 }
 0x12e   :  { %v7157_v0 = vmin.u32 %v816_v45, %v8292_v6  ;;  %v870_v44 = vshrl.u32 %v11041_v40, %v869_v27  ;;  %v7164_v56 = vadd.s32 4294967169, %v962_v26  ;;  %v883_v61 = vshll.u32 %v11045_v35, %v868_v52 }
 0x12f   :  { %v884_v43 = vshrl.u32 %v11046_v24, %v869_v27  ;;  %vm886_vm1 = vcmp.lt.s32.totalorder %v867_v53, 1  ;;  %vm887_vm2 = vcmp.lt.s32.totalorder %v867_v53, 2  ;;  %vm4102_vm3 = vcmp.eq.s32.totalorder %v8287_v15, 2 }
 0x130   :  { %v818_v42 = vclz %v7157_v0  ;;  %vm888_vm4 = vcmp.lt.s32.totalorder %v867_v53, 3  ;;  %vm889_vm5 = vcmp.lt.s32.totalorder %v867_v53, 4  ;;  %v894_v17 = vsel %vm886_vm1, %v873_v60, %v876_v39 }
 0x131   :  { %vm742_vm6 = vcmp.eq.s32.totalorder %v8303_v36, 0  ;;  %vm4099_vm7 = vcmp.eq.s32.totalorder %v8287_v15, 0  ;;  %v885_v23 = vor.u32 %v884_v43, %v883_v61  ;;  %v890_v19 = vsel %vm886_vm1, %v870_v44, %v873_v60 }
 0x132   :  { %v7158_v12 = vadd.s32 4294967294, %v818_v42  ;;  %v891_v52 = vsel %vm889_vm5, %v879_v16, 2102212464  ;;  %v895_v27 = vsel %vm889_vm5, %v882_v49, 920167782  ;;  %vm741_vm8 = vcmp.lt.s32.totalorder %v8303_v36, 2 }
 0x133   :  { %vm4098_vm9 = vcmp.lt.s32.totalorder %v8287_v15, 2  ;;  %v892_v30 = vsel %vm888_vm4, %v876_v39, %v891_v52  ;;  %v896_v14 = vsel %vm888_vm4, %v879_v16, %v895_v27  ;;  %v898_v11 = vsel %vm886_vm1, %v876_v39, %v879_v16 }
 0x134   :  { %vm7159_vm10 = vcmp.lt.s32.totalorder %v7158_v12, 0  ;;  %v897_v26 = vsel %vm887_vm2, %v894_v17, %v896_v14  ;;  %v899_v29 = vsel %vm889_vm5, %v885_v23, 1326507024  ;;  %v968_v4 = vadd.s32 1, %v7164_v56 }
 0x135   :  { %v821_v31 = vsel %vm7159_vm10, 0, %v7158_v12  ;;  %v893_v20 = vsel %vm887_vm2, %v890_v19, %v892_v30  ;;  %v900_v33 = vsel %vm888_vm4, %v882_v49, %v899_v29  ;;  %vm745_vm12 = vcmp.eq.s32.totalorder %v8303_v36, 2 }
 0x136   :  { %v822_v45 = vsub.s32 32, %v821_v31  ;;  %v826_v21 = vsub.s32 4294967266, %v821_v31  ;;  %v823_v18 = vshll.u32 %v8292_v6, %v821_v31  ;;  %v901_v9 = vsel %vm887_vm2, %v898_v11, %v900_v33 }
 0x137   :  { %v8335_v1 = vmul.u32.u64.low %v8308_v34, %v897_v26  ;;  %v8336_v0 = vmul.u32.u64.high %v8308_v34, %v897_v26, %v8335_v1  ;;  %v8340_v42 = vmul.u32.u64.low %v8308_v34, %v901_v9  ;;  %v8341_v44 = vmul.u32.u64.high %v8308_v34, %v901_v9, %v8340_v42 }
 0x138   :  { %v7552_v60 = vpop.eup %7551  ;;  %v824_v39 = vshrl.u32 %v806_v57, %v822_v45  ;;  %v827_v16 = vadd.s32 127, %v826_v21  ;;  %v958_v6 = vand.u32 2147483647, %v8265_v10  ;;  %vm969_vm13 = vcmp.gt.s32.totalorder %v968_v4, 0 }
 0x139   :  { %v7554_v56 = vpop.eup %7553  ;;  %v746_v49 = vxor.u32 2147483648, %v7552_v60  ;;  %v837_v12 = vsel %vm752_vm0, %v836_v25, %v8279_v28  ;;  %v909_v23 = vmul.u32 %v8308_v34, %v893_v20  ;;  %v912_v19 = vadd.s32 1, %v8336_v0  ;;  %v268_v34 = vpop.permute.xlu1 %267 }
 0x13a   :  { %v743_v53 = vxor.u32 2147483648, %v7554_v56  ;;  %v825_v61 = vor.u32 %v824_v39, %v823_v18  ;;  %v828_v43 = vshll.u32 %v827_v16, 23  ;;  %v970_v14 = vsel %vm969_vm13, %v968_v4, 0 }
 0x13b   :  { %v747_v57 = vsel %vm745_vm12, %v746_v49, %v7554_v56  ;;  %v4104_v17 = vsel %vm4102_vm3, %v746_v49, %v7554_v56  ;;  %vm911_vm14 = vc.u32 %v8341_v44, %v8335_v1  ;;  %v972_v45 = vand.u32 31, %v970_v14 }
 0x13c   :  { %v744_v52 = vsel %vm742_vm6, %v7552_v60, %v743_v53  ;;  %v4101_v27 = vsel %vm4099_vm7, %v7552_v60, %v743_v53  ;;  %v829_v30 = vor.u32 4788187, %v828_v43  ;;  %v832_v25 = vcvt.s32.f32 %v825_v61 }
 0x13d   :  { %v748_v11 = vsel %vm741_vm8, %v744_v52, %v747_v57  ;;  %v4105_v28 = vsel %vm4098_vm9, %v4101_v27, %v4104_v17  ;;  %v913_v4 = vsel %vm911_vm14, %v912_v19, %v8336_v0  ;;  %vm8369_vm15 = vcmp.le.f32.partialorder %v750_v5, 0.7853982 }
 0x13e   :  { %v749_v31 = vsel %vm738_vm11, nan, %v748_v11  ;;  %v4106_v26 = vsel %vm738_vm11, nan, %v4105_v28  ;;  %v830_v29 = vand.u32 2147483647, %v829_v30  ;;  %v914_v36 = vadd.s32 %v913_v4, %v909_v23 }
 0x13f   :  { %3768 = vst [vmem:[#allocation2 + $0x20] sm:$0xff] %v749_v31  ;;  %7096 = vst [vmem:[#allocation2 + $0x28] sm:$0xff] %v4106_v26  ;;  %v380_v20 = vmul.f32 %v7935_v32, %v268_v34  ;;  %v839_v8 = vsel %vm8369_vm15, 0, %v837_v12  ;;  %v965_v18 = vand.u32 8388607, %v958_v6  ;;  %v973_v9 = vsub.s32 32, %v972_v45 }
 0x140   :  { %v833_v21 = vmul.f32 %v832_v25, %v830_v29  ;;  %v915_v33 = vadd.s32 536870912, %v914_v36  ;;  %v971_v60 = vshrl.u32 %v970_v14, 5  ;;  %v975_v39 = vshll.u32 %v11041_v40, %v972_v45 }
 0x141   :  { %v981_v5 = vshll.u32 %v11043_v13, %v972_v45  ;;  %v976_v42 = vshrl.u32 %v11042_v38, %v973_v9  ;;  %v979_v32 = vshrl.u32 %v11043_v13, %v973_v9  ;;  %v984_v56 = vshll.u32 %v11044_v37, %v972_v45 }
 0x142   :  { %v834_v0 = vxor.u32 2147483648, %v833_v21  ;;  %v8380_v16 = vshrl.u32 %v915_v33, 30  ;;  %v982_v53 = vshrl.u32 %v11044_v37, %v973_v9  ;;  %v985_v61 = vshrl.u32 %v11045_v35, %v973_v9 }
 0x143   :  { %v988_v43 = vshrl.u32 %v11046_v24, %v973_v9  ;;  %v978_v17 = vshll.u32 %v11042_v38, %v972_v45  ;;  %v987_v23 = vshll.u32 %v11045_v35, %v972_v45  ;;  %v977_v19 = vor.u32 %v976_v42, %v975_v39 }
 0x144   :  { %v835_v49 = vsel %vm752_vm0, %v834_v0, %v833_v21  ;;  %v917_v57 = vshll.u32 %v8380_v16, 30  ;;  %v983_v52 = vor.u32 %v982_v53, %v981_v5  ;;  %v986_v27 = vor.u32 %v985_v61, %v984_v56 }
 0x145   :  { %v838_v12 = vsel %vm8369_vm15, %v8037_v22, %v835_v49  ;;  %v980_v14 = vor.u32 %v979_v32, %v978_v17  ;;  %v989_v11 = vor.u32 %v988_v43, %v987_v23  ;;  %v843_v28 = vadd.s32 3, %v839_v8 }
 0x146   :  { %7555 = vcosq.f32 %v838_v12  ;;  %v8396_v30 = vsub.s32 %v914_v36, %v917_v57  ;;  %v8398_v25 = vand.u32 3, %v839_v8  ;;  %v966_v34 = vor.u32 8388608, %v965_v18 }
 0x147   :  { %7557 = vsinq.f32 %v838_v12  ;;  %vm990_vm0 = vcmp.lt.s32.totalorder %v971_v60, 1  ;;  %vm992_vm1 = vcmp.lt.s32.totalorder %v971_v60, 3  ;;  %vm993_vm2 = vcmp.lt.s32.totalorder %v971_v60, 4 }
 0x148   :  { %v920_v31 = vsub.s32 0, %v8396_v30  ;;  %vm856_vm3 = vcmp.lt.s32.totalorder %v8149_v41, 0  ;;  %v995_v26 = vsel %vm993_vm2, %v983_v52, 2102212464  ;;  %v999_v29 = vsel %vm993_vm2, %v986_v27, 920167782 }
 0x149   :  { %v1003_v4 = vsel %vm993_vm2, %v989_v11, 1326507024  ;;  %v8403_v45 = vadd.f32 %v380_v20, %v7858_v47  ;;  %v974_v15 = vshrl.u32 %v11041_v40, %v973_v9  ;;  %v998_v21 = vsel %vm990_vm0, %v977_v19, %v980_v14 }
 0x14a   :  { %v7161_v36 = vmin.u32 %v920_v31, %v8396_v30  ;;  %v1002_v8 = vsel %vm990_vm0, %v980_v14, %v983_v52  ;;  %v844_v33 = vand.u32 3, %v843_v28  ;;  %v1000_v18 = vsel %vm992_vm1, %v983_v52, %v999_v29 }
 0x14b   :  { %v1004_v0 = vsel %vm992_vm1, %v986_v27, %v1003_v4  ;;  %v1006_v39 = vshll.u32 %v966_v34, 8  ;;  %vm991_vm4 = vcmp.lt.s32.totalorder %v971_v60, 2  ;;  %v994_v42 = vsel %vm990_vm0, %v974_v15, %v977_v19 }
 0x14c   :  { %v922_v5 = vclz %v7161_v36  ;;  %v996_v47 = vsel %vm992_vm1, %v980_v14, %v995_v26  ;;  %vm4202_vm5 = vcmp.eq.s32.totalorder %v8398_v25, 0  ;;  %vm4205_vm6 = vcmp.eq.s32.totalorder %v8398_v25, 2 }
 0x14d   :  { %v1001_v20 = vsel %vm991_vm4, %v998_v21, %v1000_v18  ;;  %v1005_v9 = vsel %vm991_vm4, %v1002_v8, %v1004_v0  ;;  %v1065_v32 = vand.u32 2139095040, %v8403_v45  ;;  %vm4201_vm7 = vcmp.lt.s32.totalorder %v8398_v25, 2 }
 0x14e   :  { %v7162_v56 = vadd.s32 4294967294, %v922_v5  ;;  %v940_v49 = vsub.s32 4, %v8380_v16  ;;  %v8418_v53 = vmul.u32.u64.low %v1006_v39, %v1005_v9  ;;  %v8419_v61 = vmul.u32.u64.high %v1006_v39, %v1005_v9, %v8418_v53  ;;  %v272_v9 = vpop.permute.xlu0 %271 }
 0x14f   :  { %vm842_vm8 = vweird.f32 %v8037_v22  ;;  %v997_v60 = vsel %vm991_vm4, %v994_v42, %v996_v47  ;;  %v8422_v43 = vmul.u32.u64.low %v1006_v39, %v1001_v20  ;;  %v8423_v12 = vmul.u32.u64.high %v1006_v39, %v1001_v20, %v8422_v43 }
 0x150   :  { %v1066_v57 = vshrl.u32 %v1065_v32, 23  ;;  %vm845_vm9 = vcmp.lt.s32.totalorder %v844_v33, 2  ;;  %vm846_vm10 = vcmp.eq.s32.totalorder %v844_v33, 0  ;;  %vm849_vm11 = vcmp.eq.s32.totalorder %v844_v33, 2 }
 0x151   :  { %vm7163_vm12 = vcmp.lt.s32.totalorder %v7162_v56, 0  ;;  %v910_v17 = vadd.s32 %v8335_v1, %v8341_v44  ;;  %v1062_v19 = vand.u32 2147483647, %v8403_v45  ;;  %v941_v28 = vsel %vm856_vm3, %v940_v49, %v8380_v16 }
 0x152   :  { %v925_v23 = vsel %vm7163_vm12, 0, %v7162_v56  ;;  %v7168_v52 = vadd.s32 4294967169, %v1066_v57  ;;  %v1013_v34 = vmul.u32 %v1006_v39, %v997_v60  ;;  %vm1015_vm13 = vc.u32 %v8419_v61, %v8422_v43 }
 0x153   :  { %v7556_v27 = vpop.eup %7555  ;;  %v926_v14 = vsub.s32 32, %v925_v23  ;;  %v930_v11 = vsub.s32 4294967266, %v925_v23  ;;  %v1016_v29 = vadd.s32 1, %v8423_v12  ;;  %v927_v4 = vshll.u32 %v8396_v30, %v925_v23 }
 0x154   :  { %v7558_v31 = vpop.eup %7557  ;;  %v850_v26 = vxor.u32 2147483648, %v7556_v27  ;;  %v1072_v1 = vadd.s32 1, %v7168_v52  ;;  %vm8452_vm15 = vcmp.le.f32.partialorder %v854_v48, 0.7853982  ;;  %v1069_v53 = vand.u32 8388607, %v1062_v19 }
 0x155   :  { %v847_v44 = vxor.u32 2147483648, %v7558_v31  ;;  %v928_v36 = vshrl.u32 %v910_v17, %v926_v14  ;;  %v931_v15 = vadd.s32 127, %v930_v11  ;;  %v1017_v16 = vsel %vm1015_vm13, %v1016_v29, %v8423_v12  ;;  %v8463_v17 = vld [vmem:[%s11012_s1 + $0x1] ss:$0 sm:$0xff] }
 0x156   :  { %v851_v21 = vsel %vm849_vm11, %v850_v26, %v7558_v31  ;;  %v4207_v8 = vsel %vm4205_vm6, %v850_v26, %v7558_v31  ;;  %vm1073_vm14 = vcmp.gt.s32.totalorder %v1072_v1, 0  ;;  %v1018_v47 = vadd.s32 %v1017_v16, %v1013_v34 }
 0x157   :  { %v848_v18 = vsel %vm846_vm10, %v7556_v27, %v847_v44  ;;  %v4204_v0 = vsel %vm4202_vm5, %v7556_v27, %v847_v44  ;;  %v929_v39 = vor.u32 %v928_v36, %v927_v4  ;;  %v932_v5 = vshll.u32 %v931_v15, 23 }
 0x158   :  { %v852_v42 = vsel %vm845_vm9, %v848_v18, %v851_v21  ;;  %v4208_v30 = vsel %vm4201_vm7, %v4204_v0, %v4207_v8  ;;  %v1074_v20 = vsel %vm1073_vm14, %v1072_v1, 0  ;;  %v1019_v25 = vadd.s32 536870912, %v1018_v47 }
 0x159   :  { %v853_v32 = vsel %vm842_vm8, nan, %v852_v42  ;;  %v4209_v56 = vsel %vm842_vm8, nan, %v4208_v30  ;;  %v933_v49 = vor.u32 4788187, %v932_v5  ;;  %v1076_v60 = vand.u32 31, %v1074_v20 }
 0x15a   :  { %3769 = vst [vmem:[#allocation2 + $0x30] sm:$0xff] %v853_v32  ;;  %7097 = vst [vmem:[#allocation2 + $0x38] sm:$0xff] %v4209_v56  ;;  %v936_v57 = vcvt.s32.f32 %v929_v39  ;;  %v943_v22 = vsel %vm8452_vm15, 0, %v941_v28  ;;  %v381_v48 = vmul.f32 %v8463_v17, %v272_v9  ;;  %v8466_v23 = vshrl.u32 %v1019_v25, 30 }
 0x15b   :  { %v934_v12 = vand.u32 2147483647, %v933_v49  ;;  %v1077_v52 = vsub.s32 32, %v1076_v60  ;;  %v947_v14 = vadd.s32 3, %v943_v22  ;;  %v1070_v34 = vor.u32 8388608, %v1069_v53 }
 0x15c   :  { %v1021_v11 = vshll.u32 %v8466_v23, 30  ;;  %v8472_v29 = vadd.f32 %v381_v48, %v7855_v46  ;;  %v8476_v44 = vshrl.u32 %v1074_v20, 5  ;;  %v1079_v21 = vshll.u32 %v11041_v40, %v1076_v60 }
 0x15d   :  { %v937_v27 = vmul.f32 %v936_v57, %v934_v12  ;;  %v1080_v26 = vshrl.u32 %v11042_v38, %v1077_v52  ;;  %v1083_v28 = vshrl.u32 %v11043_v13, %v1077_v52  ;;  %v1086_v4 = vshrl.u32 %v11044_v37, %v1077_v52 }
 0x15e   :  { %v8474_v1 = vsub.s32 %v1018_v47, %v1021_v11  ;;  %v1089_v36 = vshrl.u32 %v11045_v35, %v1077_v52  ;;  %v1082_v8 = vshll.u32 %v11042_v38, %v1076_v60  ;;  %v1092_v16 = vshrl.u32 %v11046_v24, %v1077_v52 }
 0x15f   :  { %v938_v31 = vxor.u32 2147483648, %v937_v27  ;;  %v1085_v0 = vshll.u32 %v11043_v13, %v1076_v60  ;;  %v1088_v39 = vshll.u32 %v11044_v37, %v1076_v60  ;;  %v1081_v5 = vor.u32 %v1080_v26, %v1079_v21 }
 0x160   :  { %v1024_v18 = vsub.s32 0, %v8474_v1  ;;  %v1084_v42 = vor.u32 %v1083_v28, %v1082_v8  ;;  %v1091_v30 = vshll.u32 %v11045_v35, %v1076_v60  ;;  %v8493_v32 = vand.u32 3, %v947_v14 }
 0x161   :  { %v939_v15 = vsel %vm856_vm3, %v938_v31, %v937_v27  ;;  %v1087_v20 = vor.u32 %v1086_v4, %v1085_v0  ;;  %v1090_v9 = vor.u32 %v1089_v36, %v1088_v39  ;;  %v8495_v56 = vand.u32 3, %v943_v22 }
 0x162   :  { %v942_v46 = vsel %vm8452_vm15, %v8149_v41, %v939_v15  ;;  %v7165_v47 = vmin.u32 %v1024_v18, %v8474_v1  ;;  %v1093_v49 = vor.u32 %v1092_v16, %v1091_v30  ;;  %v1169_v33 = vand.u32 2139095040, %v8472_v29 }
 0x163   :  { %7559 = vcosq.f32 %v942_v46  ;;  %v1078_v53 = vshrl.u32 %v11041_v40, %v1077_v52  ;;  %vm1094_vm0 = vcmp.lt.s32.totalorder %v8476_v44, 1  ;;  %v1110_v12 = vshll.u32 %v1070_v34, 8 }
 0x164   :  { %7561 = vsinq.f32 %v942_v46  ;;  %v1026_v25 = vclz %v7165_v47  ;;  %vm1095_vm1 = vcmp.lt.s32.totalorder %v8476_v44, 2  ;;  %vm1096_vm2 = vcmp.lt.s32.totalorder %v8476_v44, 3 }
 0x165   :  { %vm1097_vm3 = vcmp.lt.s32.totalorder %v8476_v44, 4  ;;  %v1102_v60 = vsel %vm1094_vm0, %v1081_v5, %v1084_v42  ;;  %v1106_v27 = vsel %vm1094_vm0, %v1084_v42, %v1087_v20  ;;  %vm960_vm4 = vcmp.lt.s32.totalorder %v8265_v10, 0 }
 0x166   :  { %v7166_v57 = vadd.s32 4294967294, %v1026_v25  ;;  %v1099_v48 = vsel %vm1097_vm3, %v1087_v20, 2102212464  ;;  %v1103_v22 = vsel %vm1097_vm3, %v1090_v9, 920167782  ;;  %v1098_v14 = vsel %vm1094_vm0, %v1078_v53, %v1081_v5 }
 0x167   :  { %v1104_v52 = vsel %vm1096_vm2, %v1087_v20, %v1103_v22  ;;  %v1107_v11 = vsel %vm1097_vm3, %v1093_v49, 1326507024  ;;  %v1170_v31 = vshrl.u32 %v1169_v33, 23  ;;  %vm4308_vm5 = vcmp.eq.s32.totalorder %v8495_v56, 2 }
 0x168   :  { %vm7167_vm6 = vcmp.lt.s32.totalorder %v7166_v57, 0  ;;  %v1100_v34 = vsel %vm1096_vm2, %v1084_v42, %v1099_v48  ;;  %v1105_v26 = vsel %vm1095_vm1, %v1102_v60, %v1104_v52  ;;  %v1108_v28 = vsel %vm1096_vm2, %v1090_v9, %v1107_v11 }
 0x169   :  { %vm4305_vm7 = vcmp.eq.s32.totalorder %v8495_v56, 0  ;;  %v1029_v4 = vsel %vm7167_vm6, 0, %v7166_v57  ;;  %v1109_v36 = vsel %vm1095_vm1, %v1106_v27, %v1108_v28  ;;  %vm4304_vm8 = vcmp.lt.s32.totalorder %v8495_v56, 2 }
 0x16a   :  { %v8516_v15 = vmul.u32.u64.low %v1110_v12, %v1105_v26  ;;  %v8517_v21 = vmul.u32.u64.high %v1110_v12, %v1105_v26, %v8516_v15  ;;  %v1014_v8 = vadd.s32 %v8422_v43, %v8419_v61  ;;  %v1030_v16 = vsub.s32 32, %v1029_v4 }
 0x16b   :  { %v1034_v46 = vsub.s32 4294967266, %v1029_v4  ;;  %v1166_v18 = vand.u32 2147483647, %v8472_v29  ;;  %vm946_vm9 = vweird.f32 %v8149_v41  ;;  %vm8527_vm10 = vcmp.le.f32.partialorder %v958_v6, 0.7853982 }
 0x16c   :  { %v1044_v39 = vsub.s32 4, %v8466_v23  ;;  %v8532_v5 = vmul.u32.u64.low %v1110_v12, %v1109_v36  ;;  %v8533_v42 = vmul.u32.u64.high %v1110_v12, %v1109_v36, %v8532_v5  ;;  %v7172_v30 = vadd.s32 4294967169, %v1170_v31 }
 0x16d   :  { %v1031_v61 = vshll.u32 %v8474_v1, %v1029_v4  ;;  %v1032_v43 = vshrl.u32 %v1014_v8, %v1030_v16  ;;  %v1035_v47 = vadd.s32 127, %v1034_v46  ;;  %v1101_v20 = vsel %vm1095_vm1, %v1098_v14, %v1100_v34  ;;  %v276_v8 = vpop.permute.xlu1 %275  ;;  %v280_v16 = vpop.permute.xlu0 %279 }
 0x16e   :  { %vm949_vm11 = vcmp.lt.s32.totalorder %v8493_v32, 2  ;;  %vm950_vm12 = vcmp.eq.s32.totalorder %v8493_v32, 0  ;;  %v1120_v6 = vadd.s32 1, %v8517_v21  ;;  %v1176_v9 = vadd.s32 1, %v7172_v30 }
 0x16f   :  { %vm953_vm13 = vcmp.eq.s32.totalorder %v8493_v32, 2  ;;  %v1033_v33 = vor.u32 %v1032_v43, %v1031_v61  ;;  %v1036_v25 = vshll.u32 %v1035_v47, 23  ;;  %v1173_v1 = vand.u32 8388607, %v1166_v18 }
 0x170   :  { %v7560_v49 = vpop.eup %7559  ;;  %v1117_v57 = vmul.u32 %v1110_v12, %v1101_v20  ;;  %vm1119_vm14 = vc.u32 %v8533_v42, %v8516_v15  ;;  %vm1177_vm15 = vcmp.gt.s32.totalorder %v1176_v9, 0  ;;  %v1045_v22 = vsel %vm960_vm4, %v1044_v39, %v8466_v23 }
 0x171   :  { %v7562_v53 = vpop.eup %7561  ;;  %v954_v60 = vxor.u32 2147483648, %v7560_v49  ;;  %v1037_v48 = vor.u32 4788187, %v1036_v25  ;;  %v1121_v27 = vsel %vm1119_vm14, %v1120_v6, %v8517_v21  ;;  %v1178_v31 = vsel %vm1177_vm15, %v1176_v9, 0 }
 0x172   :  { %v951_v44 = vxor.u32 2147483648, %v7562_v53  ;;  %v1122_v11 = vadd.s32 %v1121_v27, %v1117_v57  ;;  %v1040_v28 = vcvt.s32.f32 %v1033_v33  ;;  %v1180_v21 = vand.u32 31, %v1178_v31 }
 0x173   :  { %v955_v14 = vsel %vm953_vm13, %v954_v60, %v7562_v53  ;;  %v4310_v52 = vsel %vm4308_vm5, %v954_v60, %v7562_v53  ;;  %v1038_v26 = vand.u32 2147483647, %v1037_v48  ;;  %v1047_v30 = vsel %vm8527_vm10, 0, %v1045_v22 }
 0x174   :  { %v952_v12 = vsel %vm950_vm12, %v7560_v49, %v951_v44  ;;  %v4307_v34 = vsel %vm4305_vm7, %v7560_v49, %v951_v44  ;;  %v1123_v36 = vadd.s32 536870912, %v1122_v11  ;;  %v1181_v56 = vsub.s32 32, %v1180_v21 }
 0x175   :  { %v956_v4 = vsel %vm949_vm11, %v952_v12, %v955_v14  ;;  %v4311_v23 = vsel %vm4304_vm8, %v4307_v34, %v4310_v52  ;;  %v1041_v5 = vmul.f32 %v1040_v28, %v1038_v26  ;;  %v382_v43 = vmul.f32 %v8463_v17, %v276_v8 }
 0x176   :  { %v957_v46 = vsel %vm946_vm9, nan, %v956_v4  ;;  %v4312_v39 = vsel %vm946_vm9, nan, %v4311_v23  ;;  %v8566_v32 = vshrl.u32 %v1123_v36, 30  ;;  %v8570_v47 = vmul.f32 %v8463_v17, %v280_v16 }
 0x177   :  { %3770 = vst [vmem:[#allocation2 + $0x40] sm:$0xff] %v957_v46  ;;  %7098 = vst [vmem:[#allocation2 + $0x48] sm:$0xff] %v4312_v39  ;;  %v1042_v61 = vxor.u32 2147483648, %v1041_v5  ;;  %v1051_v20 = vadd.s32 3, %v1047_v30  ;;  %v1174_v41 = vor.u32 8388608, %v1173_v1  ;;  %v1184_v9 = vshrl.u32 %v11042_v38, %v1181_v56 }
 0x178   :  { %v1125_v6 = vshll.u32 %v8566_v32, 30  ;;  %v1187_v33 = vshrl.u32 %v11043_v13, %v1181_v56  ;;  %v1190_v25 = vshrl.u32 %v11044_v37, %v1181_v56  ;;  %v1193_v53 = vshrl.u32 %v11045_v35, %v1181_v56 }
 0x179   :  { %v1043_v49 = vsel %vm960_vm4, %v1042_v61, %v1041_v5  ;;  %v1179_v44 = vshrl.u32 %v1178_v31, 5  ;;  %v1183_v1 = vshll.u32 %v11041_v40, %v1180_v21  ;;  %v1186_v48 = vshll.u32 %v11042_v38, %v1180_v21 }
 0x17a   :  { %v1046_v60 = vsel %vm8527_vm10, %v8265_v10, %v1043_v49  ;;  %v8582_v57 = vsub.s32 %v1122_v11, %v1125_v6  ;;  %v1189_v22 = vshll.u32 %v11043_v13, %v1180_v21  ;;  %v1192_v27 = vshll.u32 %v11044_v37, %v1180_v21 }
 0x17b   :  { %7563 = vcosq.f32 %v1046_v60  ;;  %v1185_v52 = vor.u32 %v1184_v9, %v1183_v1  ;;  %v1195_v12 = vshll.u32 %v11045_v35, %v1180_v21  ;;  %v1188_v0 = vor.u32 %v1187_v33, %v1186_v48 }
 0x17c   :  { %7565 = vsinq.f32 %v1046_v60  ;;  %v1128_v14 = vsub.s32 0, %v8582_v57  ;;  %v1191_v34 = vor.u32 %v1190_v25, %v1189_v22  ;;  %v1194_v11 = vor.u32 %v1193_v53, %v1192_v27 }
 0x17d   :  { %v1196_v31 = vshrl.u32 %v11046_v24, %v1181_v56  ;;  %v8591_v26 = vand.u32 3, %v1051_v20  ;;  %v8593_v28 = vand.u32 3, %v1047_v30  ;;  %v1214_v23 = vshll.u32 %v1174_v41, 8 }
 0x17e   :  { %v7169_v4 = vmin.u32 %v1128_v14, %v8582_v57  ;;  %v1118_v36 = vadd.s32 %v8516_v15, %v8533_v42  ;;  %vm1198_vm0 = vcmp.lt.s32.totalorder %v1179_v44, 1  ;;  %v8599_v16 = vadd.f32 %v382_v43, %v7864_v51 }
 0x17f   :  { %v1197_v8 = vor.u32 %v1196_v31, %v1195_v12  ;;  %vm1064_vm1 = vcmp.lt.s32.totalorder %v8403_v45, 0  ;;  %v1182_v46 = vshrl.u32 %v11041_v40, %v1181_v56  ;;  %vm1200_vm2 = vcmp.lt.s32.totalorder %v1179_v44, 3 }
 0x180   :  { %v1130_v21 = vclz %v7169_v4  ;;  %vm1201_vm3 = vcmp.lt.s32.totalorder %v1179_v44, 4  ;;  %v1206_v5 = vsel %vm1198_vm0, %v1185_v52, %v1188_v0  ;;  %v1210_v61 = vsel %vm1198_vm0, %v1188_v0, %v1191_v34 }
 0x181   :  { %v1203_v39 = vsel %vm1201_vm3, %v1191_v34, 2102212464  ;;  %v1207_v30 = vsel %vm1201_vm3, %v1194_v11, 920167782  ;;  %vm4411_vm4 = vcmp.eq.s32.totalorder %v8593_v28, 2  ;;  %vm1199_vm5 = vcmp.lt.s32.totalorder %v1179_v44, 2 }
 0x182   :  { %v7170_v15 = vadd.s32 4294967294, %v1130_v21  ;;  %v1208_v51 = vsel %vm1200_vm2, %v1191_v34, %v1207_v30  ;;  %v1211_v42 = vsel %vm1201_vm3, %v1197_v8, 1326507024  ;;  %vm4408_vm6 = vcmp.eq.s32.totalorder %v8593_v28, 0 }
 0x183   :  { %vm8610_vm7 = vcmp.le.f32.partialorder %v1062_v19, 0.7853982  ;;  %v1202_v43 = vsel %vm1198_vm0, %v1182_v46, %v1185_v52  ;;  %v1204_v20 = vsel %vm1200_vm2, %v1188_v0, %v1203_v39  ;;  %v1209_v6 = vsel %vm1199_vm5, %v1206_v5, %v1208_v51 }
 0x184   :  { %v1212_v41 = vsel %vm1200_vm2, %v1194_v11, %v1211_v42  ;;  %vm1053_vm8 = vcmp.lt.s32.totalorder %v8591_v26, 2  ;;  %vm4407_vm9 = vcmp.lt.s32.totalorder %v8593_v28, 2  ;;  %vm7171_vm10 = vcmp.lt.s32.totalorder %v7170_v15, 0 }
 0x185   :  { %v1213_v9 = vsel %vm1199_vm5, %v1210_v61, %v1212_v41  ;;  %v8621_v49 = vmul.u32.u64.low %v1214_v23, %v1209_v6  ;;  %v8622_v19 = vmul.u32.u64.high %v1214_v23, %v1209_v6, %v8621_v49  ;;  %vm1050_vm11 = vweird.f32 %v8265_v10 }
 0x186   :  { %v1133_v33 = vsel %vm7171_vm10, 0, %v7170_v15  ;;  %v1148_v25 = vsub.s32 4, %v8566_v32  ;;  %v8627_v53 = vmul.u32.u64.low %v1214_v23, %v1213_v9  ;;  %v8628_v60 = vmul.u32.u64.high %v1214_v23, %v1213_v9, %v8627_v53 }
 0x187   :  { %v1134_v1 = vsub.s32 32, %v1133_v33  ;;  %v1138_v48 = vsub.s32 4294967266, %v1133_v33  ;;  %v1205_v22 = vsel %vm1199_vm5, %v1202_v43, %v1204_v20  ;;  %v1273_v27 = vand.u32 2139095040, %v8599_v16 }
 0x188   :  { %vm1054_vm12 = vcmp.eq.s32.totalorder %v8591_v26, 0  ;;  %vm1057_vm13 = vcmp.eq.s32.totalorder %v8591_v26, 2  ;;  %v1135_v14 = vshll.u32 %v8582_v57, %v1133_v33  ;;  %v1270_v52 = vand.u32 2147483647, %v8599_v16  ;;  %v7564_v12 = vpop.eup %7563 }
 0x189   :  { %v1136_v0 = vshrl.u32 %v1118_v36, %v1134_v1  ;;  %v1139_v34 = vadd.s32 127, %v1138_v48  ;;  %v1224_v11 = vadd.s32 1, %v8622_v19  ;;  %v1274_v31 = vshrl.u32 %v1273_v27, 23  ;;  %v7566_v4 = vpop.eup %7565 }
 0x18a   :  { %v1058_v8 = vxor.u32 2147483648, %v7564_v12  ;;  %v1149_v44 = vsel %vm1064_vm1, %v1148_v25, %v8566_v32  ;;  %v1221_v21 = vmul.u32 %v1214_v23, %v1205_v22  ;;  %vm1223_vm14 = vc.u32 %v8628_v60, %v8621_v49 }
 0x18b   :  { %v1055_v46 = vxor.u32 2147483648, %v7566_v4  ;;  %v1137_v57 = vor.u32 %v1136_v0, %v1135_v14  ;;  %v1140_v39 = vshll.u32 %v1139_v34, 23  ;;  %v1225_v5 = vsel %vm1223_vm14, %v1224_v11, %v8622_v19  ;;  %v284_v14 = vpop.permute.xlu1 %283 }
 0x18c   :  { %v1059_v36 = vsel %vm1057_vm13, %v1058_v8, %v7566_v4  ;;  %v4413_v30 = vsel %vm4411_vm4, %v1058_v8, %v7566_v4  ;;  %v1226_v61 = vadd.s32 %v1225_v5, %v1221_v21  ;;  %v7176_v15 = vadd.s32 4294967169, %v1274_v31 }
 0x18d   :  { %v1056_v32 = vsel %vm1054_vm12, %v7564_v12, %v1055_v46  ;;  %v4410_v23 = vsel %vm4408_vm6, %v7564_v12, %v1055_v46  ;;  %v1141_v51 = vor.u32 4788187, %v1140_v39  ;;  %v1151_v42 = vsel %vm8610_vm7, 0, %v1149_v44 }
 0x18e   :  { %v1060_v43 = vsel %vm1053_vm8, %v1056_v32, %v1059_v36  ;;  %v4414_v20 = vsel %vm4407_vm9, %v4410_v23, %v4413_v30  ;;  %v1227_v6 = vadd.s32 536870912, %v1226_v61  ;;  %v1280_v41 = vadd.s32 1, %v7176_v15 }
 0x18f   :  { %v1061_v9 = vsel %vm1050_vm11, nan, %v1060_v43  ;;  %v4415_v19 = vsel %vm1050_vm11, nan, %v4414_v20  ;;  %v1142_v33 = vand.u32 2147483647, %v1141_v51  ;;  %v1144_v25 = vcvt.s32.f32 %v1137_v57 }
 0x190   :  { %3771 = vst [vmem:[#allocation2 + $0x50] sm:$0xff] %v1061_v9  ;;  %7099 = vst [vmem:[#allocation2 + $0x58] sm:$0xff] %v4415_v19  ;;  %v8661_v53 = vshrl.u32 %v1227_v6, 30  ;;  %vm1281_vm15 = vcmp.gt.s32.totalorder %v1280_v41, 0  ;;  %v1277_v28 = vand.u32 8388607, %v1270_v52  ;;  %v8667_v48 = vadd.f32 %v8570_v47, %v7861_v50 }
 0x191   :  { %v1145_v26 = vmul.f32 %v1144_v25, %v1142_v33  ;;  %v1282_v1 = vsel %vm1281_vm15, %v1280_v41, 0  ;;  %v1155_v22 = vadd.s32 3, %v1151_v42  ;;  %v8676_v8 = vmul.f32 %v8463_v17, %v284_v14 }
 0x192   :  { %v1229_v10 = vshll.u32 %v8661_v53, 30  ;;  %v1284_v27 = vand.u32 31, %v1282_v1  ;;  %v1278_v31 = vor.u32 8388608, %v1277_v28  ;;  %v1377_v4 = vand.u32 2139095040, %v8667_v48 }
 0x193   :  { %v1146_v12 = vxor.u32 2147483648, %v1145_v26  ;;  %v8681_v47 = vand.u32 3, %v1155_v22  ;;  %v8683_v44 = vand.u32 3, %v1151_v42  ;;  %v1222_v46 = vadd.s32 %v8621_v49, %v8628_v60 }
 0x194   :  { %v8670_v0 = vsub.s32 %v1226_v61, %v1229_v10  ;;  %v1285_v34 = vsub.s32 32, %v1284_v27  ;;  %v1283_v36 = vshrl.u32 %v1282_v1, 5  ;;  %v1287_v56 = vshll.u32 %v11041_v40, %v1284_v27 }
 0x195   :  { %v1147_v11 = vsel %vm1064_vm1, %v1146_v12, %v1145_v26  ;;  %v1252_v30 = vsub.s32 4, %v8661_v53  ;;  %v1290_v61 = vshll.u32 %v11042_v38, %v1284_v27  ;;  %v8694_v15 = vshll.u32 %v1278_v31, 8 }
 0x196   :  { %v1150_v50 = vsel %vm8610_vm7, %v8403_v45, %v1147_v11  ;;  %v1232_v21 = vsub.s32 0, %v8670_v0  ;;  %v1288_v57 = vshrl.u32 %v11042_v38, %v1285_v34  ;;  %v1291_v39 = vshrl.u32 %v11043_v13, %v1285_v34 }
 0x197   :  { %7567 = vcosq.f32 %v1150_v50  ;;  %v1378_v32 = vshrl.u32 %v1377_v4, 23  ;;  %v1286_v49 = vshrl.u32 %v11041_v40, %v1285_v34  ;;  %v1293_v51 = vshll.u32 %v11043_v13, %v1284_v27 }
 0x198   :  { %7569 = vsinq.f32 %v1150_v50  ;;  %v7173_v5 = vmin.u32 %v1232_v21, %v8670_v0  ;;  %v1289_v60 = vor.u32 %v1288_v57, %v1287_v56  ;;  %v1292_v42 = vor.u32 %v1291_v39, %v1290_v61 }
 0x199   :  { %v1294_v43 = vshrl.u32 %v11044_v37, %v1285_v34  ;;  %v1296_v20 = vshll.u32 %v11044_v37, %v1284_v27  ;;  %v1297_v6 = vshrl.u32 %v11045_v35, %v1285_v34  ;;  %v1299_v9 = vshll.u32 %v11045_v35, %v1284_v27 }
 0x19a   :  { %v1234_v23 = vclz %v7173_v5  ;;  %v1300_v19 = vshrl.u32 %v11046_v24, %v1285_v34  ;;  %vm1302_vm0 = vcmp.lt.s32.totalorder %v1283_v36, 1  ;;  %vm1168_vm1 = vcmp.lt.s32.totalorder %v8472_v29, 0 }
 0x19b   :  { %v1295_v33 = vor.u32 %v1294_v43, %v1293_v51  ;;  %v1298_v25 = vor.u32 %v1297_v6, %v1296_v20  ;;  %vm1303_vm2 = vcmp.lt.s32.totalorder %v1283_v36, 2  ;;  %vm1304_vm3 = vcmp.lt.s32.totalorder %v1283_v36, 3 }
 0x19c   :  { %v7174_v41 = vadd.s32 4294967294, %v1234_v23  ;;  %vm4514_vm4 = vcmp.eq.s32.totalorder %v8683_v44, 2  ;;  %v1301_v26 = vor.u32 %v1300_v19, %v1299_v9  ;;  %vm1305_vm6 = vcmp.lt.s32.totalorder %v1283_v36, 4 }
 0x19d   :  { %v1306_v28 = vsel %vm1302_vm0, %v1286_v49, %v1289_v60  ;;  %vm1158_vm7 = vcmp.eq.s32.totalorder %v8681_v47, 0  ;;  %vm4511_vm8 = vcmp.eq.s32.totalorder %v8683_v44, 0  ;;  %v1307_v22 = vsel %vm1305_vm6, %v1295_v33, 2102212464 }
 0x19e   :  { %vm7175_vm5 = vcmp.lt.s32.totalorder %v7174_v41, 0  ;;  %v1310_v10 = vsel %vm1302_vm0, %v1289_v60, %v1292_v42  ;;  %v1311_v27 = vsel %vm1305_vm6, %v1298_v25, 920167782  ;;  %vm1157_vm9 = vcmp.lt.s32.totalorder %v8681_v47, 2 }
 0x19f   :  { %v1237_v1 = vsel %vm7175_vm5, 0, %v7174_v41  ;;  %vm4510_vm10 = vcmp.lt.s32.totalorder %v8683_v44, 2  ;;  %v1308_v34 = vsel %vm1304_vm3, %v1292_v42, %v1307_v22  ;;  %v1314_v11 = vsel %vm1302_vm0, %v1292_v42, %v1295_v33 }
 0x1a0   :  { %v1238_v14 = vsub.s32 32, %v1237_v1  ;;  %v1242_v12 = vsub.s32 4294967266, %v1237_v1  ;;  %vm1154_vm11 = vweird.f32 %v8403_v45  ;;  %v1239_v31 = vshll.u32 %v8670_v0, %v1237_v1 }
 0x1a1   :  { %v1312_v4 = vsel %vm1304_vm3, %v1295_v33, %v1311_v27  ;;  %v1315_v50 = vsel %vm1305_vm6, %v1301_v26, 1326507024  ;;  %v7180_v21 = vadd.s32 4294967169, %v1378_v32  ;;  %vm8721_vm12 = vcmp.le.f32.partialorder %v1166_v18, 0.7853982 }
 0x1a2   :  { %v1240_v39 = vshrl.u32 %v1222_v46, %v1238_v14  ;;  %v1243_v5 = vadd.s32 127, %v1242_v12  ;;  %v1313_v56 = vsel %vm1303_vm2, %v1310_v10, %v1312_v4  ;;  %v1316_v61 = vsel %vm1304_vm3, %v1298_v25, %v1315_v50 }
 0x1a3   :  { %v1309_v23 = vsel %vm1303_vm2, %v1306_v28, %v1308_v34  ;;  %v1317_v0 = vsel %vm1303_vm2, %v1314_v11, %v1316_v61  ;;  %v8730_v49 = vmul.u32.u64.low %v8694_v15, %v1313_v56  ;;  %v8731_v60 = vmul.u32.u64.high %v8694_v15, %v1313_v56, %v8730_v49 }
 0x1a4   :  { %v7568_v32 = vpop.eup %7567  ;;  %v1241_v18 = vor.u32 %v1240_v39, %v1239_v31  ;;  %v1244_v51 = vshll.u32 %v1243_v5, 23  ;;  %v8735_v42 = vmul.u32.u64.low %v8694_v15, %v1317_v0  ;;  %v8736_v46 = vmul.u32.u64.high %v8694_v15, %v1317_v0, %v8735_v42 }
 0x1a5   :  { %v7570_v43 = vpop.eup %7569  ;;  %vm1161_vm13 = vcmp.eq.s32.totalorder %v8681_v47, 2  ;;  %v1162_v20 = vxor.u32 2147483648, %v7568_v32  ;;  %v1374_v6 = vand.u32 2147483647, %v8667_v48  ;;  %v1384_v36 = vadd.s32 1, %v7180_v21 }
 0x1a6   :  { %v1159_v41 = vxor.u32 2147483648, %v7570_v43  ;;  %v1245_v9 = vor.u32 4788187, %v1244_v51  ;;  %v1253_v19 = vsel %vm1168_vm1, %v1252_v30, %v8661_v53  ;;  %v1325_v33 = vmul.u32 %v8694_v15, %v1309_v23 }
 0x1a7   :  { %v1163_v25 = vsel %vm1161_vm13, %v1162_v20, %v7570_v43  ;;  %v4516_v26 = vsel %vm4514_vm4, %v1162_v20, %v7570_v43  ;;  %v1328_v28 = vadd.s32 1, %v8731_v60  ;;  %vm1385_vm14 = vcmp.gt.s32.totalorder %v1384_v36, 0 }
 0x1a8   :  { %v1160_v1 = vsel %vm1158_vm7, %v7568_v32, %v1159_v41  ;;  %v4513_v22 = vsel %vm4511_vm8, %v7568_v32, %v1159_v41  ;;  %v1246_v10 = vand.u32 2147483647, %v1245_v9  ;;  %v1248_v27 = vcvt.s32.f32 %v1241_v18 }
 0x1a9   :  { %v1164_v53 = vsel %vm1157_vm9, %v1160_v1, %v1163_v25  ;;  %v4517_v30 = vsel %vm4510_vm10, %v4513_v22, %v4516_v26  ;;  %vm1327_vm15 = vc.u32 %v8736_v46, %v8730_v49  ;;  %v1386_v15 = vsel %vm1385_vm14, %v1384_v36, 0 }
 0x1aa   :  { %v1165_v14 = vsel %vm1154_vm11, nan, %v1164_v53  ;;  %v4518_v12 = vsel %vm1154_vm11, nan, %v4517_v30  ;;  %v1249_v34 = vmul.f32 %v1248_v27, %v1246_v10  ;;  %v1329_v11 = vsel %vm1327_vm15, %v1328_v28, %v8731_v60 }
 0x1ab   :  { %3772 = vst [vmem:[#allocation2 + $0x60] sm:$0xff] %v1165_v14  ;;  %7100 = vst [vmem:[#allocation2 + $0x68] sm:$0xff] %v4518_v12  ;;  %v1255_v47 = vsel %vm8721_vm12, 0, %v1253_v19  ;;  %v1330_v44 = vadd.s32 %v1329_v11, %v1325_v33  ;;  %v1388_v31 = vand.u32 31, %v1386_v15  ;;  %v1381_v21 = vand.u32 8388607, %v1374_v6 }
 0x1ac   :  { %v1250_v4 = vxor.u32 2147483648, %v1249_v34  ;;  %v8770_v45 = vadd.f32 %v8676_v8, %v7870_v55  ;;  %v1259_v56 = vadd.s32 3, %v1255_v47  ;;  %v1387_v61 = vshrl.u32 %v1386_v15, 5 }
 0x1ad   :  { %v1331_v50 = vadd.s32 536870912, %v1330_v44  ;;  %v1389_v39 = vsub.s32 32, %v1388_v31  ;;  %v1397_v23 = vshll.u32 %v11043_v13, %v1388_v31  ;;  %v1400_v18 = vshll.u32 %v11044_v37, %v1388_v31 }
 0x1ae   :  { %v1251_v5 = vsel %vm1168_vm1, %v1250_v4, %v1249_v34  ;;  %v1391_v43 = vshll.u32 %v11041_v40, %v1388_v31  ;;  %v1394_v57 = vshll.u32 %v11042_v38, %v1388_v31  ;;  %v1403_v41 = vshll.u32 %v11045_v35, %v1388_v31 }
 0x1af   :  { %v1254_v0 = vsel %vm8721_vm12, %v8472_v29, %v1251_v5  ;;  %v8778_v60 = vshrl.u32 %v1331_v50, 30  ;;  %v1392_v32 = vshrl.u32 %v11042_v38, %v1389_v39  ;;  %v1395_v55 = vshrl.u32 %v11043_v13, %v1389_v39 }
 0x1b0   :  { %7571 = vcosq.f32 %v1254_v0  ;;  %v1398_v8 = vshrl.u32 %v11044_v37, %v1389_v39  ;;  %v1401_v51 = vshrl.u32 %v11045_v35, %v1389_v39  ;;  %v1404_v9 = vshrl.u32 %v11046_v24, %v1389_v39 }
 0x1b1   :  { %7573 = vsinq.f32 %v1254_v0  ;;  %v1333_v42 = vshll.u32 %v8778_v60, 30  ;;  %v8790_v19 = vand.u32 3, %v1255_v47  ;;  %v1393_v25 = vor.u32 %v1392_v32, %v1391_v43 }
 0x1b2   :  { %v1399_v20 = vor.u32 %v1398_v8, %v1397_v23  ;;  %v1402_v36 = vor.u32 %v1401_v51, %v1400_v18  ;;  %v1396_v26 = vor.u32 %v1395_v55, %v1394_v57  ;;  %v1382_v28 = vor.u32 8388608, %v1381_v21 }
 0x1b3   :  { %v8792_v33 = vsub.s32 %v1330_v44, %v1333_v42  ;;  %v1405_v1 = vor.u32 %v1404_v9, %v1403_v41  ;;  %v1260_v22 = vand.u32 3, %v1259_v56  ;;  %vm1409_vm0 = vcmp.lt.s32.totalorder %v1387_v61, 4 }
 0x1b4   :  { %v1478_v27 = vand.u32 2147483647, %v8770_v45  ;;  %vm1406_vm1 = vcmp.lt.s32.totalorder %v1387_v61, 1  ;;  %v1411_v53 = vsel %vm1409_vm0, %v1399_v20, 2102212464  ;;  %v1481_v15 = vand.u32 2139095040, %v8770_v45 }
 0x1b5   :  { %v1336_v10 = vsub.s32 0, %v8792_v33  ;;  %v1415_v30 = vsel %vm1409_vm0, %v1402_v36, 920167782  ;;  %vm4617_vm2 = vcmp.eq.s32.totalorder %v8790_v19, 2  ;;  %v1390_v12 = vshrl.u32 %v11041_v40, %v1389_v39 }
 0x1b6   :  { %vm1408_vm3 = vcmp.lt.s32.totalorder %v1387_v61, 3  ;;  %v1414_v34 = vsel %vm1406_vm1, %v1393_v25, %v1396_v26  ;;  %vm4614_vm4 = vcmp.eq.s32.totalorder %v8790_v19, 0  ;;  %v1418_v47 = vsel %vm1406_vm1, %v1396_v26, %v1399_v20 }
 0x1b7   :  { %v7177_v14 = vmin.u32 %v1336_v10, %v8792_v33  ;;  %v1416_v11 = vsel %vm1408_vm3, %v1399_v20, %v1415_v30  ;;  %v1419_v44 = vsel %vm1409_vm0, %v1405_v1, 1326507024  ;;  %v1422_v31 = vshll.u32 %v1382_v28, 8 }
 0x1b8   :  { %vm4613_vm5 = vcmp.lt.s32.totalorder %v8790_v19, 2  ;;  %vm1407_vm6 = vcmp.lt.s32.totalorder %v1387_v61, 2  ;;  %v1410_v50 = vsel %vm1406_vm1, %v1390_v12, %v1393_v25  ;;  %v1412_v21 = vsel %vm1408_vm3, %v1396_v26, %v1411_v53 }
 0x1b9   :  { %v1338_v4 = vclz %v7177_v14  ;;  %vm1258_vm7 = vweird.f32 %v8472_v29  ;;  %vm1261_vm8 = vcmp.lt.s32.totalorder %v1260_v22, 2  ;;  %v1417_v39 = vsel %vm1407_vm6, %v1414_v34, %v1416_v11 }
 0x1ba   :  { %v1420_v5 = vsel %vm1408_vm3, %v1402_v36, %v1419_v44  ;;  %v1482_v56 = vshrl.u32 %v1481_v15, 23  ;;  %v8806_v32 = vmul.u32.u64.low %v1422_v31, %v1417_v39  ;;  %v8807_v18 = vmul.u32.u64.high %v1422_v31, %v1417_v39, %v8806_v32 }
 0x1bb   :  { %v7178_v23 = vadd.s32 4294967294, %v1338_v4  ;;  %v1421_v0 = vsel %vm1407_vm6, %v1418_v47, %v1420_v5  ;;  %v1413_v55 = vsel %vm1407_vm6, %v1410_v50, %v1412_v21  ;;  %vm1262_vm9 = vcmp.eq.s32.totalorder %v1260_v22, 0  ;;  %v288_v47 = vpop.permute.xlu0 %287 }
 0x1bc   :  { %v8810_v8 = vmul.u32.u64.low %v1422_v31, %v1421_v0  ;;  %v8811_v51 = vmul.u32.u64.high %v1422_v31, %v1421_v0, %v8810_v8  ;;  %v7184_v42 = vadd.s32 4294967169, %v1482_v56  ;;  %vm1265_vm10 = vcmp.eq.s32.totalorder %v1260_v22, 2 }
 0x1bd   :  { %v7572_v61 = vpop.eup %7571  ;;  %v1326_v43 = vadd.s32 %v8730_v49, %v8736_v46  ;;  %vm7179_vm11 = vcmp.lt.s32.totalorder %v7178_v23, 0  ;;  %v1356_v41 = vsub.s32 4, %v8778_v60  ;;  %v1429_v1 = vmul.u32 %v1422_v31, %v1413_v55 }
 0x1be   :  { %v7574_v57 = vpop.eup %7573  ;;  %v1266_v20 = vxor.u32 2147483648, %v7572_v61  ;;  %v1341_v36 = vsel %vm7179_vm11, 0, %v7178_v23  ;;  %v1488_v9 = vadd.s32 1, %v7184_v42  ;;  %vm1431_vm12 = vc.u32 %v8811_v51, %v8806_v32 }
 0x1bf   :  { %v1263_v25 = vxor.u32 2147483648, %v7574_v57  ;;  %v1342_v26 = vsub.s32 32, %v1341_v36  ;;  %v1346_v28 = vsub.s32 4294967266, %v1341_v36  ;;  %v1343_v30 = vshll.u32 %v8792_v33, %v1341_v36 }
 0x1c0   :  { %v1267_v10 = vsel %vm1265_vm10, %v1266_v20, %v7574_v57  ;;  %v4619_v53 = vsel %vm4617_vm2, %v1266_v20, %v7574_v57  ;;  %v1432_v11 = vadd.s32 1, %v8807_v18  ;;  %vm1489_vm13 = vcmp.gt.s32.totalorder %v1488_v9, 0 }
 0x1c1   :  { %v1264_v49 = vsel %vm1262_vm9, %v7572_v61, %v1263_v25  ;;  %v4616_v46 = vsel %vm4614_vm4, %v7572_v61, %v1263_v25  ;;  %v1344_v15 = vshrl.u32 %v1326_v43, %v1342_v26  ;;  %v1347_v14 = vadd.s32 127, %v1346_v28 }
 0x1c2   :  { %v1268_v12 = vsel %vm1261_vm8, %v1264_v49, %v1267_v10  ;;  %v4620_v34 = vsel %vm4613_vm5, %v4616_v46, %v4619_v53  ;;  %vm1272_vm14 = vcmp.lt.s32.totalorder %v8599_v16, 0  ;;  %v1433_v19 = vsel %vm1431_vm12, %v1432_v11, %v8807_v18 }
 0x1c3   :  { %v1269_v33 = vsel %vm1258_vm7, nan, %v1268_v12  ;;  %v4621_v44 = vsel %vm1258_vm7, nan, %v4620_v34  ;;  %v1345_v31 = vor.u32 %v1344_v15, %v1343_v30  ;;  %v1348_v4 = vshll.u32 %v1347_v14, 23 }
 0x1c4   :  { %3773 = vst [vmem:[#allocation2 + $0x70] sm:$0xff] %v1269_v33  ;;  %7101 = vst [vmem:[#allocation2 + $0x78] sm:$0xff] %v4621_v44  ;;  %v1485_v22 = vand.u32 8388607, %v1478_v27  ;;  %v1490_v50 = vsel %vm1489_vm13, %v1488_v9, 0  ;;  %v1357_v29 = vsel %vm1272_vm14, %v1356_v41, %v8778_v60  ;;  %v1434_v39 = vadd.s32 %v1433_v19, %v1429_v1 }
 0x1c5   :  { %v1349_v21 = vor.u32 4788187, %v1348_v4  ;;  %v385_v5 = vmul.f32 %v8463_v17, %v288_v47  ;;  %v1492_v56 = vand.u32 31, %v1490_v50  ;;  %vm8845_vm15 = vcmp.le.f32.partialorder %v1270_v52, 0.7853982 }
 0x1c6   :  { %v1352_v18 = vcvt.s32.f32 %v1345_v31  ;;  %v1435_v55 = vadd.s32 536870912, %v1434_v39  ;;  %v1359_v8 = vsel %vm8845_vm15, 0, %v1357_v29  ;;  %v1486_v60 = vor.u32 8388608, %v1485_v22 }
 0x1c7   :  { %v1350_v0 = vand.u32 2147483647, %v1349_v21  ;;  %v1493_v42 = vsub.s32 32, %v1492_v56  ;;  %v8854_v17 = vadd.f32 %v385_v5, %v7867_v54  ;;  %v1491_v57 = vshrl.u32 %v1490_v50, 5 }
 0x1c8   :  { %v8851_v43 = vshrl.u32 %v1435_v55, 30  ;;  %v1495_v25 = vshll.u32 %v11041_v40, %v1492_v56  ;;  %v1498_v28 = vshll.u32 %v11042_v38, %v1492_v56  ;;  %v1501_v1 = vshll.u32 %v11043_v13, %v1492_v56 }
 0x1c9   :  { %v1353_v61 = vmul.f32 %v1352_v18, %v1350_v0  ;;  %v1496_v52 = vshrl.u32 %v11042_v38, %v1493_v42  ;;  %v1499_v20 = vshrl.u32 %v11043_v13, %v1493_v42  ;;  %v1502_v36 = vshrl.u32 %v11044_v37, %v1493_v42 }
 0x1ca   :  { %v1437_v9 = vshll.u32 %v8851_v43, 30  ;;  %v1505_v26 = vshrl.u32 %v11045_v35, %v1493_v42  ;;  %v1504_v54 = vshll.u32 %v11044_v37, %v1492_v56  ;;  %v1508_v10 = vshrl.u32 %v11046_v24, %v1493_v42 }
 0x1cb   :  { %v1354_v41 = vxor.u32 2147483648, %v1353_v61  ;;  %v1497_v49 = vor.u32 %v1496_v52, %v1495_v25  ;;  %v1507_v46 = vshll.u32 %v11045_v35, %v1492_v56  ;;  %v1500_v14 = vor.u32 %v1499_v20, %v1498_v28 }
 0x1cc   :  { %v8868_v30 = vsub.s32 %v1434_v39, %v1437_v9  ;;  %v1503_v12 = vor.u32 %v1502_v36, %v1501_v1  ;;  %v1506_v34 = vor.u32 %v1505_v26, %v1504_v54  ;;  %v1363_v11 = vadd.s32 3, %v1359_v8 }
 0x1cd   :  { %v1355_v53 = vsel %vm1272_vm14, %v1354_v41, %v1353_v61  ;;  %v8874_v47 = vand.u32 3, %v1359_v8  ;;  %v1509_v44 = vor.u32 %v1508_v10, %v1507_v46  ;;  %v1526_v31 = vshll.u32 %v1486_v60, 8 }
 0x1ce   :  { %v1358_v15 = vsel %vm8845_vm15, %v8599_v16, %v1355_v53  ;;  %v1440_v33 = vsub.s32 0, %v8868_v30  ;;  %v1585_v4 = vand.u32 2139095040, %v8854_v17  ;;  %v1494_v22 = vshrl.u32 %v11041_v40, %v1493_v42 }
 0x1cf   :  { %7575 = vcosq.f32 %v1358_v15  ;;  %vm1510_vm0 = vcmp.lt.s32.totalorder %v1491_v57, 1  ;;  %vm1513_vm1 = vcmp.lt.s32.totalorder %v1491_v57, 4  ;;  %vm1511_vm2 = vcmp.lt.s32.totalorder %v1491_v57, 2 }
 0x1d0   :  { %7577 = vsinq.f32 %v1358_v15  ;;  %v7181_v19 = vmin.u32 %v1440_v33, %v8868_v30  ;;  %v1515_v50 = vsel %vm1513_vm1, %v1503_v12, 2102212464  ;;  %v1518_v21 = vsel %vm1510_vm0, %v1497_v49, %v1500_v14 }
 0x1d1   :  { %v1519_v29 = vsel %vm1513_vm1, %v1506_v34, 920167782  ;;  %vm1376_vm3 = vcmp.lt.s32.totalorder %v8667_v48, 0  ;;  %vm1512_vm4 = vcmp.lt.s32.totalorder %v1491_v57, 3  ;;  %v1514_v5 = vsel %vm1510_vm0, %v1494_v22, %v1497_v49 }
 0x1d2   :  { %v1442_v39 = vclz %v7181_v19  ;;  %v1522_v56 = vsel %vm1510_vm0, %v1500_v14, %v1503_v12  ;;  %v1516_v23 = vsel %vm1512_vm4, %v1500_v14, %v1515_v50  ;;  %v1520_v0 = vsel %vm1512_vm4, %v1503_v12, %v1519_v29 }
 0x1d3   :  { %v1523_v18 = vsel %vm1513_vm1, %v1509_v44, 1326507024  ;;  %v1586_v55 = vshrl.u32 %v1585_v4, 23  ;;  %v1364_v8 = vand.u32 3, %v1363_v11  ;;  %v1521_v42 = vsel %vm1511_vm2, %v1518_v21, %v1520_v0  ;;  %v8916_v21 = vld [vmem:[%s11012_s1 + $0x1] ss:$0 sm:$0xff] }
 0x1d4   :  { %v7182_v61 = vadd.s32 4294967294, %v1442_v39  ;;  %v1524_v60 = vsel %vm1512_vm4, %v1506_v34, %v1523_v18  ;;  %vm8884_vm5 = vcmp.le.f32.partialorder %v1374_v6, 0.7853982  ;;  %v1517_v20 = vsel %vm1511_vm2, %v1514_v5, %v1516_v23  ;;  %v292_v34 = vpop.permute.xlu1 %291 }
 0x1d5   :  { %v1525_v36 = vsel %vm1511_vm2, %v1522_v56, %v1524_v60  ;;  %v8890_v41 = vmul.u32.u64.low %v1526_v31, %v1521_v42  ;;  %v8891_v9 = vmul.u32.u64.high %v1526_v31, %v1521_v42, %v8890_v41  ;;  %v7188_v28 = vadd.s32 4294967169, %v1586_v55 }
 0x1d6   :  { %vm7183_vm6 = vcmp.lt.s32.totalorder %v7182_v61, 0  ;;  %v8894_v25 = vmul.u32.u64.low %v1526_v31, %v1525_v36  ;;  %v8895_v26 = vmul.u32.u64.high %v1526_v31, %v1525_v36, %v8894_v25  ;;  %vm4716_vm7 = vcmp.lt.s32.totalorder %v8874_v47, 2 }
 0x1d7   :  { %vm4717_vm8 = vcmp.eq.s32.totalorder %v8874_v47, 0  ;;  %vm4720_vm9 = vcmp.eq.s32.totalorder %v8874_v47, 2  ;;  %v1445_v6 = vsel %vm7183_vm6, 0, %v7182_v61  ;;  %v1460_v1 = vsub.s32 4, %v8851_v43 }
 0x1d8   :  { %vm1362_vm10 = vweird.f32 %v8599_v16  ;;  %v1430_v57 = vadd.s32 %v8806_v32, %v8811_v51  ;;  %v1446_v54 = vsub.s32 32, %v1445_v6  ;;  %v1450_v10 = vsub.s32 4294967266, %v1445_v6 }
 0x1d9   :  { %v1592_v53 = vadd.s32 1, %v7188_v28  ;;  %vm1365_vm11 = vcmp.lt.s32.totalorder %v1364_v8, 2  ;;  %vm1366_vm12 = vcmp.eq.s32.totalorder %v1364_v8, 0  ;;  %v1533_v49 = vmul.u32 %v1526_v31, %v1517_v20 }
 0x1da   :  { %v1536_v46 = vadd.s32 1, %v8891_v9  ;;  %v1447_v15 = vshll.u32 %v8868_v30, %v1445_v6  ;;  %v1448_v14 = vshrl.u32 %v1430_v57, %v1446_v54  ;;  %v1451_v12 = vadd.s32 127, %v1450_v10 }
 0x1db   :  { %vm1535_vm13 = vc.u32 %v8895_v26, %v8890_v41  ;;  %vm1369_vm14 = vcmp.eq.s32.totalorder %v1364_v8, 2  ;;  %v1461_v32 = vsel %vm1376_vm3, %v1460_v1, %v8851_v43  ;;  %vm1593_vm15 = vcmp.gt.s32.totalorder %v1592_v53, 0 }
 0x1dc   :  { %v7576_v11 = vpop.eup %7575  ;;  %v1537_v51 = vsel %vm1535_vm13, %v1536_v46, %v8891_v9  ;;  %v1449_v31 = vor.u32 %v1448_v14, %v1447_v15  ;;  %v1452_v4 = vshll.u32 %v1451_v12, 23  ;;  %v1582_v22 = vand.u32 2147483647, %v8854_v17 }
 0x1dd   :  { %v7578_v33 = vpop.eup %7577  ;;  %v1370_v44 = vxor.u32 2147483648, %v7576_v11  ;;  %v1538_v30 = vadd.s32 %v1537_v51, %v1533_v49  ;;  %v1594_v50 = vsel %vm1593_vm15, %v1592_v53, 0  ;;  %v386_v29 = vmul.f32 %v8916_v21, %v292_v34 }
 0x1de   :  { %v1367_v19 = vxor.u32 2147483648, %v7578_v33  ;;  %v1453_v5 = vor.u32 4788187, %v1452_v4  ;;  %v1463_v56 = vsel %vm8884_vm5, 0, %v1461_v32  ;;  %v1456_v18 = vcvt.s32.f32 %v1449_v31 }
 0x1df   :  { %v1371_v43 = vsel %vm1369_vm14, %v1370_v44, %v7578_v33  ;;  %v4722_v39 = vsel %vm4720_vm9, %v1370_v44, %v7578_v33  ;;  %v1539_v55 = vadd.s32 536870912, %v1538_v30  ;;  %v1596_v20 = vand.u32 31, %v1594_v50 }
 0x1e0   :  { %v1368_v23 = vsel %vm1366_vm12, %v7576_v11, %v1367_v19  ;;  %v4719_v0 = vsel %vm4717_vm8, %v7576_v11, %v1367_v19  ;;  %v1454_v60 = vand.u32 2147483647, %v1453_v5  ;;  %v1589_v28 = vand.u32 8388607, %v1582_v22 }
 0x1e1   :  { %v1372_v61 = vsel %vm1365_vm11, %v1368_v23, %v1371_v43  ;;  %v4723_v42 = vsel %vm4716_vm7, %v4719_v0, %v4722_v39  ;;  %v8933_v25 = vshrl.u32 %v1539_v55, 30  ;;  %v1597_v6 = vsub.s32 32, %v1596_v20 }
 0x1e2   :  { %v1373_v36 = vsel %vm1362_vm10, nan, %v1372_v61  ;;  %v4724_v9 = vsel %vm1362_vm10, nan, %v4723_v42  ;;  %v1457_v8 = vmul.f32 %v1456_v18, %v1454_v60  ;;  %v1467_v1 = vadd.s32 3, %v1463_v56 }
 0x1e3   :  { %3774 = vst [vmem:[#allocation2 + $0x80] sm:$0xff] %v1373_v36  ;;  %7102 = vst [vmem:[#allocation2 + $0x88] sm:$0xff] %v4724_v9  ;;  %v8937_v47 = vand.u32 3, %v1463_v56  ;;  %v1541_v57 = vshll.u32 %v8933_v25, 30  ;;  %v1600_v10 = vshrl.u32 %v11042_v38, %v1597_v6  ;;  %v1603_v16 = vshrl.u32 %v11043_v13, %v1597_v6 }
 0x1e4   :  { %v1458_v54 = vxor.u32 2147483648, %v1457_v8  ;;  %v8943_v53 = vadd.f32 %v386_v29, %v7876_v59  ;;  %v1590_v46 = vor.u32 8388608, %v1589_v28  ;;  %v1606_v15 = vshrl.u32 %v11044_v37, %v1597_v6 }
 0x1e5   :  { %v8945_v49 = vsub.s32 %v1538_v30, %v1541_v57  ;;  %v1609_v14 = vshrl.u32 %v11045_v35, %v1597_v6  ;;  %v1595_v34 = vshrl.u32 %v1594_v50, 5  ;;  %v1599_v11 = vshll.u32 %v11041_v40, %v1596_v20 }
 0x1e6   :  { %v1459_v12 = vsel %vm1376_vm3, %v1458_v54, %v1457_v8  ;;  %v1602_v32 = vshll.u32 %v11042_v38, %v1596_v20  ;;  %v1605_v33 = vshll.u32 %v11043_v13, %v1596_v20  ;;  %v1608_v44 = vshll.u32 %v11044_v37, %v1596_v20 }
 0x1e7   :  { %v1462_v59 = vsel %vm8884_vm5, %v8667_v48, %v1459_v12  ;;  %v1544_v51 = vsub.s32 0, %v8945_v49  ;;  %v8959_v31 = vand.u32 3, %v1467_v1  ;;  %v1601_v4 = vor.u32 %v1600_v10, %v1599_v11 }
 0x1e8   :  { %7579 = vcosq.f32 %v1462_v59  ;;  %v1604_v30 = vor.u32 %v1603_v16, %v1602_v32  ;;  %v1607_v50 = vor.u32 %v1606_v15, %v1605_v33  ;;  %v1610_v29 = vor.u32 %v1609_v14, %v1608_v44 }
 0x1e9   :  { %7581 = vsinq.f32 %v1462_v59  ;;  %v7185_v19 = vmin.u32 %v1544_v51, %v8945_v49  ;;  %v1611_v43 = vshll.u32 %v11045_v35, %v1596_v20  ;;  %v1612_v52 = vshrl.u32 %v11046_v24, %v1597_v6 }
 0x1ea   :  { %v8964_v39 = vshll.u32 %v1590_v46, 8  ;;  %v1686_v5 = vand.u32 2147483647, %v8943_v53  ;;  %v1598_v23 = vshrl.u32 %v11041_v40, %v1597_v6  ;;  %vm1614_vm0 = vcmp.lt.s32.totalorder %v1595_v34, 1 }
 0x1eb   :  { %v1546_v56 = vclz %v7185_v19  ;;  %v1689_v0 = vand.u32 2139095040, %v8943_v53  ;;  %vm1480_vm1 = vcmp.lt.s32.totalorder %v8770_v45, 0  ;;  %v1613_v18 = vor.u32 %v1612_v52, %v1611_v43 }
 0x1ec   :  { %vm1615_vm2 = vcmp.lt.s32.totalorder %v1595_v34, 2  ;;  %vm1616_vm3 = vcmp.lt.s32.totalorder %v1595_v34, 3  ;;  %vm1617_vm4 = vcmp.lt.s32.totalorder %v1595_v34, 4  ;;  %v1622_v42 = vsel %vm1614_vm0, %v1601_v4, %v1604_v30 }
 0x1ed   :  { %v7186_v55 = vadd.s32 4294967294, %v1546_v56  ;;  %v1619_v61 = vsel %vm1617_vm4, %v1607_v50, 2102212464  ;;  %v1623_v60 = vsel %vm1617_vm4, %v1610_v29, 920167782  ;;  %v1618_v20 = vsel %vm1614_vm0, %v1598_v23, %v1601_v4 }
 0x1ee   :  { %v1624_v36 = vsel %vm1616_vm3, %v1607_v50, %v1623_v60  ;;  %v1626_v9 = vsel %vm1614_vm0, %v1604_v30, %v1607_v50  ;;  %v1627_v28 = vsel %vm1617_vm4, %v1613_v18, 1326507024  ;;  %vm4823_vm5 = vcmp.eq.s32.totalorder %v8937_v47, 2 }
 0x1ef   :  { %vm7187_vm6 = vcmp.lt.s32.totalorder %v7186_v55, 0  ;;  %v1620_v8 = vsel %vm1616_vm3, %v1604_v30, %v1619_v61  ;;  %v1625_v6 = vsel %vm1615_vm2, %v1622_v42, %v1624_v36  ;;  %v1628_v1 = vsel %vm1616_vm3, %v1610_v29, %v1627_v28 }
 0x1f0   :  { %vm4820_vm7 = vcmp.eq.s32.totalorder %v8937_v47, 0  ;;  %v1549_v57 = vsel %vm7187_vm6, 0, %v7186_v55  ;;  %v1629_v54 = vsel %vm1615_vm2, %v1626_v9, %v1628_v1  ;;  %vm4819_vm8 = vcmp.lt.s32.totalorder %v8937_v47, 2 }
 0x1f1   :  { %v8975_v10 = vmul.u32.u64.low %v8964_v39, %v1625_v6  ;;  %v8976_v16 = vmul.u32.u64.high %v8964_v39, %v1625_v6, %v8975_v10  ;;  %vm8982_vm9 = vcmp.le.f32.partialorder %v1478_v27, 0.7853982  ;;  %v1534_v15 = vadd.s32 %v8890_v41, %v8895_v26 }
 0x1f2   :  { %v1550_v14 = vsub.s32 32, %v1549_v57  ;;  %v1554_v12 = vsub.s32 4294967266, %v1549_v57  ;;  %v1564_v11 = vsub.s32 4, %v8933_v25  ;;  %vm1466_vm10 = vweird.f32 %v8667_v48 }
 0x1f3   :  { %vm1469_vm11 = vcmp.lt.s32.totalorder %v8959_v31, 2  ;;  %v8992_v32 = vmul.u32.u64.low %v8964_v39, %v1629_v54  ;;  %v8993_v59 = vmul.u32.u64.high %v8964_v39, %v1629_v54, %v8992_v32  ;;  %v1690_v51 = vshrl.u32 %v1689_v0, 23 }
 0x1f4   :  { %v1551_v27 = vshll.u32 %v8945_v49, %v1549_v57  ;;  %v1552_v33 = vshrl.u32 %v1534_v15, %v1550_v14  ;;  %v1555_v44 = vadd.s32 127, %v1554_v12  ;;  %v1621_v4 = vsel %vm1615_vm2, %v1618_v20, %v1620_v8  ;;  %v296_v15 = vpop.permute.xlu0 %295 }
 0x1f5   :  { %vm1470_vm12 = vcmp.eq.s32.totalorder %v8959_v31, 0  ;;  %vm1473_vm13 = vcmp.eq.s32.totalorder %v8959_v31, 2  ;;  %v1640_v41 = vadd.s32 1, %v8976_v16  ;;  %v7192_v26 = vadd.s32 4294967169, %v1690_v51  ;;  %v7580_v30 = vpop.eup %7579 }
 0x1f6   :  { %v1553_v19 = vor.u32 %v1552_v33, %v1551_v27  ;;  %v1556_v50 = vshll.u32 %v1555_v44, 23  ;;  %v1565_v29 = vsel %vm1480_vm1, %v1564_v11, %v8933_v25  ;;  %v1693_v49 = vand.u32 8388607, %v1686_v5  ;;  %v7582_v43 = vpop.eup %7581 }
 0x1f7   :  { %v1474_v34 = vxor.u32 2147483648, %v7580_v30  ;;  %v1637_v52 = vmul.u32 %v8964_v39, %v1621_v4  ;;  %vm1639_vm14 = vc.u32 %v8993_v59, %v8975_v10  ;;  %v1696_v56 = vadd.s32 1, %v7192_v26 }
 0x1f8   :  { %v1471_v23 = vxor.u32 2147483648, %v7582_v43  ;;  %v1557_v0 = vor.u32 4788187, %v1556_v50  ;;  %v1560_v18 = vcvt.s32.f32 %v1553_v19  ;;  %v1641_v55 = vsel %vm1639_vm14, %v1640_v41, %v8976_v16 }
 0x1f9   :  { %v1475_v61 = vsel %vm1473_vm13, %v1474_v34, %v7582_v43  ;;  %v4825_v25 = vsel %vm4823_vm5, %v1474_v34, %v7582_v43  ;;  %v1642_v42 = vadd.s32 %v1641_v55, %v1637_v52  ;;  %vm1697_vm15 = vcmp.gt.s32.totalorder %v1696_v56, 0 }
 0x1fa   :  { %v1472_v39 = vsel %vm1470_vm12, %v7580_v30, %v1471_v23  ;;  %v4822_v60 = vsel %vm4820_vm7, %v7580_v30, %v1471_v23  ;;  %v1558_v20 = vand.u32 2147483647, %v1557_v0  ;;  %v1698_v36 = vsel %vm1697_vm15, %v1696_v56, 0 }
 0x1fb   :  { %v1476_v9 = vsel %vm1469_vm11, %v1472_v39, %v1475_v61  ;;  %v4826_v28 = vsel %vm4819_vm8, %v4822_v60, %v4825_v25  ;;  %v1567_v8 = vsel %vm8982_vm9, 0, %v1565_v29  ;;  %v1643_v6 = vadd.s32 536870912, %v1642_v42 }
 0x1fc   :  { %v1477_v1 = vsel %vm1466_vm10, nan, %v1476_v9  ;;  %v4827_v57 = vsel %vm1466_vm10, nan, %v4826_v28  ;;  %v1561_v54 = vmul.f32 %v1560_v18, %v1558_v20  ;;  %v1700_v16 = vand.u32 31, %v1698_v36 }
 0x1fd   :  { %3775 = vst [vmem:[#allocation2 + $0x90] sm:$0xff] %v1477_v1  ;;  %7103 = vst [vmem:[#allocation2 + $0x98] sm:$0xff] %v4827_v57  ;;  %v9027_v31 = vshrl.u32 %v1643_v6, 30  ;;  %v1571_v12 = vadd.s32 3, %v1567_v8  ;;  %v387_v32 = vmul.f32 %v8916_v21, %v296_v15  ;;  %v1694_v27 = vor.u32 8388608, %v1693_v49  ;;  %v300_v15 = vpop.permute.xlu1 %299 }
 0x1fe   :  { %v1562_v14 = vxor.u32 2147483648, %v1561_v54  ;;  %v1701_v47 = vsub.s32 32, %v1700_v16  ;;  %v1703_v41 = vshll.u32 %v11041_v40, %v1700_v16  ;;  %v9042_v30 = vshrl.u32 %v1698_v36, 5 }
 0x1ff   :  { %v1645_v11 = vshll.u32 %v9027_v31, 30  ;;  %v1706_v19 = vshll.u32 %v11042_v38, %v1700_v16  ;;  %v1709_v50 = vshll.u32 %v11043_v13, %v1700_v16  ;;  %v1712_v46 = vshll.u32 %v11044_v37, %v1700_v16 }
 0x200   :  { %v1563_v51 = vsel %vm1480_vm1, %v1562_v14, %v1561_v54  ;;  %v1704_v48 = vshrl.u32 %v11042_v38, %v1701_v47  ;;  %v1707_v33 = vshrl.u32 %v11043_v13, %v1701_v47  ;;  %v1710_v26 = vshrl.u32 %v11044_v37, %v1701_v47 }
 0x201   :  { %v1566_v44 = vsel %vm8982_vm9, %v8770_v45, %v1563_v51  ;;  %v9038_v4 = vsub.s32 %v1642_v42, %v1645_v11  ;;  %v1713_v34 = vshrl.u32 %v11045_v35, %v1701_v47  ;;  %v1715_v52 = vshll.u32 %v11045_v35, %v1700_v16 }
 0x202   :  { %7583 = vcosq.f32 %v1566_v44  ;;  %v1705_v49 = vor.u32 %v1704_v48, %v1703_v41  ;;  %v1708_v43 = vor.u32 %v1707_v33, %v1706_v19  ;;  %v1716_v56 = vshrl.u32 %v11046_v24, %v1701_v47 }
 0x203   :  { %7585 = vsinq.f32 %v1566_v44  ;;  %v1648_v29 = vsub.s32 0, %v9038_v4  ;;  %v9051_v23 = vand.u32 3, %v1571_v12  ;;  %v9053_v0 = vand.u32 3, %v1567_v8 }
 0x204   :  { %vm1584_vm0 = vcmp.lt.s32.totalorder %v8854_v17, 0  ;;  %v1711_v55 = vor.u32 %v1710_v26, %v1709_v50  ;;  %v1714_v61 = vor.u32 %v1713_v34, %v1712_v46  ;;  %v1717_v25 = vor.u32 %v1716_v56, %v1715_v52 }
 0x205   :  { %v7189_v18 = vmin.u32 %v1648_v29, %v9038_v4  ;;  %v9057_v42 = vshll.u32 %v1694_v27, 8  ;;  %v9060_v39 = vadd.f32 %v387_v32, %v7873_v58  ;;  %vm1718_vm1 = vcmp.lt.s32.totalorder %v9042_v30, 1 }
 0x206   :  { %vm1719_vm2 = vcmp.lt.s32.totalorder %v9042_v30, 2  ;;  %vm1721_vm3 = vcmp.lt.s32.totalorder %v9042_v30, 4  ;;  %vm9067_vm4 = vcmp.le.f32.partialorder %v1582_v22, 0.7853982  ;;  %v1702_v36 = vshrl.u32 %v11041_v40, %v1701_v47 }
 0x207   :  { %v1650_v60 = vclz %v7189_v18  ;;  %vm1720_vm5 = vcmp.lt.s32.totalorder %v9042_v30, 3  ;;  %v1726_v58 = vsel %vm1718_vm1, %v1705_v49, %v1708_v43  ;;  %v1727_v9 = vsel %vm1721_vm3, %v1714_v61, 920167782 }
 0x208   :  { %vm1577_vm6 = vcmp.eq.s32.totalorder %v9051_v23, 2  ;;  %vm4926_vm7 = vcmp.eq.s32.totalorder %v9053_v0, 2  ;;  %v1723_v22 = vsel %vm1721_vm3, %v1711_v55, 2102212464  ;;  %v1728_v8 = vsel %vm1720_vm5, %v1711_v55, %v1727_v9 }
 0x209   :  { %v7190_v28 = vadd.s32 4294967294, %v1650_v60  ;;  %v1730_v6 = vsel %vm1718_vm1, %v1708_v43, %v1711_v55  ;;  %vm1574_vm8 = vcmp.eq.s32.totalorder %v9051_v23, 0  ;;  %vm4923_vm9 = vcmp.eq.s32.totalorder %v9053_v0, 0 }
 0x20a   :  { %v1668_v1 = vsub.s32 4, %v9027_v31  ;;  %v1722_v57 = vsel %vm1718_vm1, %v1702_v36, %v1705_v49  ;;  %v1729_v54 = vsel %vm1719_vm2, %v1726_v58, %v1728_v8  ;;  %v1731_v16 = vsel %vm1721_vm3, %v1717_v25, 1326507024 }
 0x20b   :  { %vm1573_vm10 = vcmp.lt.s32.totalorder %v9051_v23, 2  ;;  %vm4922_vm11 = vcmp.lt.s32.totalorder %v9053_v0, 2  ;;  %vm7191_vm12 = vcmp.lt.s32.totalorder %v7190_v28, 0  ;;  %v1732_v14 = vsel %vm1720_vm5, %v1714_v61, %v1731_v16 }
 0x20c   :  { %v9099_v47 = vmul.u32.u64.low %v9057_v42, %v1729_v54  ;;  %v9100_v12 = vmul.u32.u64.high %v9057_v42, %v1729_v54, %v9099_v47  ;;  %vm1570_vm13 = vweird.f32 %v8770_v45  ;;  %v1653_v11 = vsel %vm7191_vm12, 0, %v7190_v28 }
 0x20d   :  { %v1724_v32 = vsel %vm1720_vm5, %v1708_v43, %v1723_v22  ;;  %v1733_v51 = vsel %vm1719_vm2, %v1730_v6, %v1732_v14  ;;  %v1793_v27 = vand.u32 2139095040, %v9060_v39  ;;  %v1638_v48 = vadd.s32 %v8975_v10, %v8993_v59 }
 0x20e   :  { %v1654_v33 = vsub.s32 32, %v1653_v11  ;;  %v1658_v44 = vsub.s32 4294967266, %v1653_v11  ;;  %v388_v41 = vmul.f32 %v8916_v21, %v300_v15  ;;  %v1669_v26 = vsel %vm1584_vm0, %v1668_v1, %v9027_v31 }
 0x20f   :  { %v9116_v19 = vmul.u32.u64.low %v9057_v42, %v1733_v51  ;;  %v9117_v50 = vmul.u32.u64.high %v9057_v42, %v1733_v51, %v9116_v19  ;;  %v1794_v29 = vshrl.u32 %v1793_v27, 23  ;;  %v7584_v49 = vpop.eup %7583  ;;  %v1655_v46 = vshll.u32 %v9038_v4, %v1653_v11 }
 0x210   :  { %v1656_v43 = vshrl.u32 %v1638_v48, %v1654_v33  ;;  %v1659_v34 = vadd.s32 127, %v1658_v44  ;;  %v1725_v10 = vsel %vm1719_vm2, %v1722_v57, %v1724_v32  ;;  %v7586_v59 = vpop.eup %7585  ;;  %v1578_v52 = vxor.u32 2147483648, %v7584_v49 }
 0x211   :  { %v1744_v56 = vadd.s32 1, %v9100_v12  ;;  %v1790_v18 = vand.u32 2147483647, %v9060_v39  ;;  %v7196_v31 = vadd.s32 4294967169, %v1794_v29  ;;  %v1575_v55 = vxor.u32 2147483648, %v7586_v59 }
 0x212   :  { %v1657_v61 = vor.u32 %v1656_v43, %v1655_v46  ;;  %v1660_v25 = vshll.u32 %v1659_v34, 23  ;;  %v1671_v60 = vsel %vm9067_vm4, 0, %v1669_v26  ;;  %v1579_v4 = vsel %vm1577_vm6, %v1578_v52, %v7586_v59 }
 0x213   :  { %v4928_v30 = vsel %vm4926_vm7, %v1578_v52, %v7586_v59  ;;  %v1741_v36 = vmul.u32 %v9057_v42, %v1725_v10  ;;  %vm1743_vm14 = vc.u32 %v9117_v50, %v9099_v47  ;;  %v1576_v58 = vsel %vm1574_vm8, %v7584_v49, %v1575_v55 }
 0x214   :  { %v4925_v9 = vsel %vm4923_vm9, %v7584_v49, %v1575_v55  ;;  %v1661_v28 = vor.u32 4788187, %v1660_v25  ;;  %v1664_v22 = vcvt.s32.f32 %v1657_v61  ;;  %v1580_v8 = vsel %vm1573_vm10, %v1576_v58, %v1579_v4 }
 0x215   :  { %v4929_v6 = vsel %vm4922_vm11, %v4925_v9, %v4928_v30  ;;  %v1745_v1 = vsel %vm1743_vm14, %v1744_v56, %v9100_v12  ;;  %v1800_v42 = vadd.s32 1, %v7196_v31  ;;  %v1581_v57 = vsel %vm1570_vm13, nan, %v1580_v8  ;;  %v304_v56 = vpop.permute.xlu0 %303 }
 0x216   :  { %v4930_v54 = vsel %vm1570_vm13, nan, %v4929_v6  ;;  %v1662_v16 = vand.u32 2147483647, %v1661_v28  ;;  %v1746_v15 = vadd.s32 %v1745_v1, %v1741_v36  ;;  %3776 = vst [vmem:[#allocation2 + $0xa0] sm:$0xff] %v1581_v57  ;;  %v1675_v14 = vadd.s32 3, %v1671_v60 }
 0x217   :  { %7104 = vst [vmem:[#allocation2 + $0xa8] sm:$0xff] %v4930_v54  ;;  %vm1801_vm15 = vcmp.gt.s32.totalorder %v1800_v42, 0  ;;  %v1797_v0 = vand.u32 8388607, %v1790_v18  ;;  %v9149_v51 = vadd.f32 %v388_v41, %v7882_v63  ;;  %v9153_v45 = vand.u32 3, %v1671_v60 }
 0x218   :  { %v1665_v23 = vmul.f32 %v1664_v22, %v1662_v16  ;;  %v1747_v11 = vadd.s32 536870912, %v1746_v15  ;;  %v1802_v32 = vsel %vm1801_vm15, %v1800_v42, 0  ;;  %v9157_v26 = vand.u32 3, %v1675_v14 }
 0x219   :  { %v1804_v12 = vand.u32 31, %v1802_v32  ;;  %v1798_v29 = vor.u32 8388608, %v1797_v0  ;;  %v1894_v46 = vand.u32 2147483647, %v9149_v51  ;;  %v9170_v59 = vshrl.u32 %v1802_v32, 5 }
 0x21a   :  { %v1666_v27 = vxor.u32 2147483648, %v1665_v23  ;;  %v9151_v48 = vshrl.u32 %v1747_v11, 30  ;;  %v1897_v20 = vand.u32 2139095040, %v9149_v51  ;;  %v9183_v28 = vmul.f32 %v8916_v21, %v304_v56 }
 0x21b   :  { %v1805_v33 = vsub.s32 32, %v1804_v12  ;;  %v1807_v34 = vshll.u32 %v11041_v40, %v1804_v12  ;;  %v1810_v52 = vshll.u32 %v11042_v38, %v1804_v12  ;;  %v1813_v61 = vshll.u32 %v11043_v13, %v1804_v12 }
 0x21c   :  { %v1667_v44 = vsel %vm1584_vm0, %v1666_v27, %v1665_v23  ;;  %v1749_v19 = vshll.u32 %v9151_v48, 30  ;;  %v1816_v25 = vshll.u32 %v11044_v37, %v1804_v12  ;;  %v1819_v30 = vshll.u32 %v11045_v35, %v1804_v12 }
 0x21d   :  { %v1670_v49 = vsel %vm9067_vm4, %v8854_v17, %v1667_v44  ;;  %v1808_v63 = vshrl.u32 %v11042_v38, %v1805_v33  ;;  %v1811_v41 = vshrl.u32 %v11043_v13, %v1805_v33  ;;  %v1814_v10 = vshrl.u32 %v11044_v37, %v1805_v33 }
 0x21e   :  { %7587 = vcosq.f32 %v1670_v49  ;;  %v9166_v43 = vsub.s32 %v1746_v15, %v1749_v19  ;;  %v1817_v4 = vshrl.u32 %v11045_v35, %v1805_v33  ;;  %v1820_v36 = vshrl.u32 %v11046_v24, %v1805_v33 }
 0x21f   :  { %7589 = vsinq.f32 %v1670_v49  ;;  %v1809_v55 = vor.u32 %v1808_v63, %v1807_v34  ;;  %v1812_v60 = vor.u32 %v1811_v41, %v1810_v52  ;;  %vm1688_vm0 = vcmp.lt.s32.totalorder %v8943_v53, 0 }
 0x220   :  { %v1752_v31 = vsub.s32 0, %v9166_v43  ;;  %v1815_v9 = vor.u32 %v1814_v10, %v1813_v61  ;;  %v1818_v22 = vor.u32 %v1817_v4, %v1816_v25  ;;  %v1821_v8 = vor.u32 %v1820_v36, %v1819_v30 }
 0x221   :  { %v9185_v6 = vshll.u32 %v1798_v29, 8  ;;  %v1898_v1 = vshrl.u32 %v1897_v20, 23  ;;  %v1742_v42 = vadd.s32 %v9099_v47, %v9117_v50  ;;  %vm1822_vm1 = vcmp.lt.s32.totalorder %v9170_v59, 1 }
 0x222   :  { %v7193_v58 = vmin.u32 %v1752_v31, %v9166_v43  ;;  %v9192_v54 = vand.u32 8388607, %v1894_v46  ;;  %vm1681_vm2 = vcmp.eq.s32.totalorder %v9157_v26, 2  ;;  %vm5029_vm3 = vcmp.eq.s32.totalorder %v9153_v45, 2 }
 0x223   :  { %v1772_v16 = vsub.s32 4, %v9151_v48  ;;  %vm1823_vm4 = vcmp.lt.s32.totalorder %v9170_v59, 2  ;;  %vm1825_vm5 = vcmp.lt.s32.totalorder %v9170_v59, 4  ;;  %v1830_v47 = vsel %vm1822_vm1, %v1809_v55, %v1812_v60 }
 0x224   :  { %v1754_v57 = vclz %v7193_v58  ;;  %vm1678_vm6 = vcmp.eq.s32.totalorder %v9157_v26, 0  ;;  %vm5026_vm7 = vcmp.eq.s32.totalorder %v9153_v45, 0  ;;  %vm9205_vm8 = vcmp.le.f32.partialorder %v1686_v5, 0.7853982 }
 0x225   :  { %vm1824_vm9 = vcmp.lt.s32.totalorder %v9170_v59, 3  ;;  %v1831_v14 = vsel %vm1825_vm5, %v1818_v22, 920167782  ;;  %v1834_v23 = vsel %vm1822_vm1, %v1812_v60, %v1815_v9  ;;  %vm1677_vm10 = vcmp.lt.s32.totalorder %v9157_v26, 2 }
 0x226   :  { %v7194_v15 = vadd.s32 4294967294, %v1754_v57  ;;  %vm5025_vm11 = vcmp.lt.s32.totalorder %v9153_v45, 2  ;;  %v1827_v11 = vsel %vm1825_vm5, %v1815_v9, 2102212464  ;;  %v1832_v0 = vsel %vm1824_vm9, %v1815_v9, %v1831_v14 }
 0x227   :  { %v1835_v32 = vsel %vm1825_vm5, %v1821_v8, 1326507024  ;;  %v7200_v5 = vadd.s32 4294967169, %v1898_v1  ;;  %vm1674_vm12 = vweird.f32 %v8854_v17  ;;  %v1806_v12 = vshrl.u32 %v11041_v40, %v1805_v33 }
 0x228   :  { %vm7195_vm13 = vcmp.lt.s32.totalorder %v7194_v15, 0  ;;  %v1833_v27 = vsel %vm1823_vm4, %v1830_v47, %v1832_v0  ;;  %v1836_v44 = vsel %vm1824_vm9, %v1818_v22, %v1835_v32  ;;  %v1828_v10 = vsel %vm1824_vm9, %v1812_v60, %v1827_v11 }
 0x229   :  { %v1757_v19 = vsel %vm7195_vm13, 0, %v7194_v15  ;;  %v1837_v29 = vsel %vm1823_vm4, %v1834_v23, %v1836_v44  ;;  %v9225_v49 = vmul.u32.u64.low %v9185_v6, %v1833_v27  ;;  %v9226_v63 = vmul.u32.u64.high %v9185_v6, %v1833_v27, %v9225_v49 }
 0x22a   :  { %v1758_v41 = vsub.s32 32, %v1757_v19  ;;  %v1762_v34 = vsub.s32 4294967266, %v1757_v19  ;;  %v1826_v33 = vsel %vm1822_vm1, %v1806_v12, %v1809_v55  ;;  %v1773_v20 = vsel %vm1688_vm0, %v1772_v16, %v9151_v48 }
 0x22b   :  { %v7588_v52 = vpop.eup %7587  ;;  %v9237_v56 = vmul.u32.u64.low %v9185_v6, %v1837_v29  ;;  %v9238_v31 = vmul.u32.u64.high %v9185_v6, %v1837_v29, %v9237_v56  ;;  %v1904_v61 = vadd.s32 1, %v7200_v5  ;;  %v1759_v30 = vshll.u32 %v9166_v43, %v1757_v19 }
 0x22c   :  { %v7590_v25 = vpop.eup %7589  ;;  %v1682_v4 = vxor.u32 2147483648, %v7588_v52  ;;  %v1760_v36 = vshrl.u32 %v1742_v42, %v1758_v41  ;;  %v1763_v58 = vadd.s32 127, %v1762_v34  ;;  %v1829_v60 = vsel %vm1823_vm4, %v1826_v33, %v1828_v10 }
 0x22d   :  { %v1679_v55 = vxor.u32 2147483648, %v7590_v25  ;;  %v1848_v9 = vadd.s32 1, %v9226_v63  ;;  %vm1905_vm14 = vcmp.gt.s32.totalorder %v1904_v61, 0  ;;  %v1775_v59 = vsel %vm9205_vm8, 0, %v1773_v20 }
 0x22e   :  { %v1683_v48 = vsel %vm1681_vm2, %v1682_v4, %v7590_v25  ;;  %v5031_v22 = vsel %vm5029_vm3, %v1682_v4, %v7590_v25  ;;  %v1761_v8 = vor.u32 %v1760_v36, %v1759_v30  ;;  %v1764_v1 = vshll.u32 %v1763_v58, 23 }
 0x22f   :  { %v1680_v43 = vsel %vm1678_vm6, %v7588_v52, %v1679_v55  ;;  %v5028_v42 = vsel %vm5026_vm7, %v7588_v52, %v1679_v55  ;;  %vm1847_vm15 = vc.u32 %v9238_v31, %v9225_v49  ;;  %v1845_v15 = vmul.u32 %v9185_v6, %v1829_v60 }
 0x230   :  { %v1684_v57 = vsel %vm1677_vm10, %v1680_v43, %v1683_v48  ;;  %v5032_v16 = vsel %vm5025_vm11, %v5028_v42, %v5031_v22  ;;  %v1765_v47 = vor.u32 4788187, %v1764_v1  ;;  %v1849_v11 = vsel %vm1847_vm15, %v1848_v9, %v9226_v63 }
 0x231   :  { %v1685_v14 = vsel %vm1674_vm12, nan, %v1684_v57  ;;  %v5033_v23 = vsel %vm1674_vm12, nan, %v5032_v16  ;;  %v1906_v0 = vsel %vm1905_vm14, %v1904_v61, 0  ;;  %v1768_v32 = vcvt.s32.f32 %v1761_v8 }
 0x232   :  { %3777 = vst [vmem:[#allocation2 + $0xb0] sm:$0xff] %v1685_v14  ;;  %7105 = vst [vmem:[#allocation2 + $0xb8] sm:$0xff] %v5033_v23  ;;  %v1766_v26 = vand.u32 2147483647, %v1765_v47  ;;  %v1850_v5 = vadd.s32 %v1849_v11, %v1845_v15  ;;  %v1908_v45 = vand.u32 31, %v1906_v0  ;;  %v9269_v12 = vadd.f32 %v9183_v28, %v7879_v62 }
 0x233   :  { %v1779_v19 = vadd.s32 3, %v1775_v59  ;;  %v1902_v63 = vor.u32 8388608, %v9192_v54  ;;  %v9274_v41 = vshrl.u32 %v1906_v0, 5  ;;  %v9298_v8 = vand.u32 3, %v1775_v59 }
 0x234   :  { %v1769_v6 = vmul.f32 %v1768_v32, %v1766_v26  ;;  %v1851_v27 = vadd.s32 536870912, %v1850_v5  ;;  %v1909_v44 = vsub.s32 32, %v1908_v45  ;;  %v2001_v62 = vand.u32 2139095040, %v9269_v12 }
 0x235   :  { %v1911_v20 = vshll.u32 %v11041_v40, %v1908_v45  ;;  %v1914_v61 = vshll.u32 %v11042_v38, %v1908_v45  ;;  %v1920_v25 = vshll.u32 %v11044_v37, %v1908_v45  ;;  %v1917_v36 = vshll.u32 %v11043_v13, %v1908_v45 }
 0x236   :  { %v1770_v17 = vxor.u32 2147483648, %v1769_v6  ;;  %v9271_v29 = vshrl.u32 %v1851_v27, 30  ;;  %v1912_v34 = vshrl.u32 %v11042_v38, %v1909_v44  ;;  %v1915_v33 = vshrl.u32 %v11043_v13, %v1909_v44 }
 0x237   :  { %v1921_v10 = vshrl.u32 %v11045_v35, %v1909_v44  ;;  %v1918_v56 = vshrl.u32 %v11044_v37, %v1909_v44  ;;  %v1924_v4 = vshrl.u32 %v11046_v24, %v1909_v44  ;;  %v1923_v58 = vshll.u32 %v11045_v35, %v1908_v45 }
 0x238   :  { %v1771_v28 = vsel %vm1688_vm0, %v1770_v17, %v1769_v6  ;;  %v1853_v52 = vshll.u32 %v9271_v29, 30  ;;  %v1913_v55 = vor.u32 %v1912_v34, %v1911_v20  ;;  %v1916_v60 = vor.u32 %v1915_v33, %v1914_v61 }
 0x239   :  { %v1774_v54 = vsel %vm9205_vm8, %v8943_v53, %v1771_v28  ;;  %v1922_v9 = vor.u32 %v1921_v10, %v1920_v25  ;;  %v1919_v48 = vor.u32 %v1918_v56, %v1917_v36  ;;  %v9296_v22 = vand.u32 3, %v1779_v19 }
 0x23a   :  { %7591 = vcosq.f32 %v1774_v54  ;;  %v9291_v30 = vsub.s32 %v1850_v5, %v1853_v52  ;;  %v1925_v1 = vor.u32 %v1924_v4, %v1923_v58  ;;  %vm1926_vm0 = vcmp.lt.s32.totalorder %v9274_v41, 1 }
 0x23b   :  { %7593 = vsinq.f32 %v1774_v54  ;;  %vm1929_vm1 = vcmp.lt.s32.totalorder %v9274_v41, 4  ;;  %v9303_v42 = vshll.u32 %v1902_v63, 8  ;;  %v1910_v57 = vshrl.u32 %v11041_v40, %v1909_v44 }
 0x23c   :  { %v1856_v50 = vsub.s32 0, %v9291_v30  ;;  %v1934_v16 = vsel %vm1926_vm0, %v1913_v55, %v1916_v60  ;;  %v1935_v47 = vsel %vm1929_vm1, %v1922_v9, 920167782  ;;  %v2002_v15 = vshrl.u32 %v2001_v62, 23 }
 0x23d   :  { %vm1792_vm2 = vcmp.lt.s32.totalorder %v9060_v39, 0  ;;  %vm1927_vm3 = vcmp.lt.s32.totalorder %v9274_v41, 2  ;;  %vm1928_vm4 = vcmp.lt.s32.totalorder %v9274_v41, 3  ;;  %v1938_v14 = vsel %vm1926_vm0, %v1916_v60, %v1919_v48 }
 0x23e   :  { %v7197_v43 = vmin.u32 %v1856_v50, %v9291_v30  ;;  %v1931_v23 = vsel %vm1929_vm1, %v1919_v48, 2102212464  ;;  %v1936_v11 = vsel %vm1928_vm4, %v1919_v48, %v1935_v47  ;;  %v1939_v0 = vsel %vm1929_vm1, %v1925_v1, 1326507024 }
 0x23f   :  { %v7204_v26 = vadd.s32 4294967169, %v2002_v15  ;;  %vm5129_vm5 = vcmp.eq.s32.totalorder %v9298_v8, 0  ;;  %vm5132_vm6 = vcmp.eq.s32.totalorder %v9298_v8, 2  ;;  %v1937_v5 = vsel %vm1927_vm3, %v1934_v16, %v1936_v11 }
 0x240   :  { %v1858_v59 = vclz %v7197_v43  ;;  %v1940_v45 = vsel %vm1928_vm4, %v1922_v9, %v1939_v0  ;;  %vm1781_vm7 = vcmp.lt.s32.totalorder %v9296_v22, 2  ;;  %vm5128_vm8 = vcmp.lt.s32.totalorder %v9298_v8, 2  ;;  %v308_v0 = vpop.permute.xlu1 %307 }
 0x241   :  { %vm9325_vm9 = vcmp.le.f32.partialorder %v1790_v18, 0.7853982  ;;  %v1930_v27 = vsel %vm1926_vm0, %v1910_v57, %v1913_v55  ;;  %v1941_v44 = vsel %vm1927_vm3, %v1938_v14, %v1940_v45  ;;  %vm1778_vm10 = vweird.f32 %v8943_v53 }
 0x242   :  { %v7198_v32 = vadd.s32 4294967294, %v1858_v59  ;;  %v9334_v19 = vmul.u32.u64.low %v9303_v42, %v1937_v5  ;;  %v9335_v17 = vmul.u32.u64.high %v9303_v42, %v1937_v5, %v9334_v19  ;;  %v1932_v18 = vsel %vm1928_vm4, %v1916_v60, %v1931_v23 }
 0x243   :  { %v9342_v63 = vmul.u32.u64.low %v9303_v42, %v1941_v44  ;;  %v9343_v34 = vmul.u32.u64.high %v9303_v42, %v1941_v44, %v9342_v63  ;;  %vm1782_vm12 = vcmp.eq.s32.totalorder %v9296_v22, 0  ;;  %v1876_v10 = vsub.s32 4, %v9271_v29 }
 0x244   :  { %vm7199_vm11 = vcmp.lt.s32.totalorder %v7198_v32, 0  ;;  %v2008_v62 = vadd.s32 1, %v7204_v26  ;;  %vm1785_vm13 = vcmp.eq.s32.totalorder %v9296_v22, 2  ;;  %v1846_v28 = vadd.s32 %v9225_v49, %v9238_v31 }
 0x245   :  { %v1861_v33 = vsel %vm7199_vm11, 0, %v7198_v32  ;;  %v1933_v54 = vsel %vm1927_vm3, %v1930_v27, %v1932_v18  ;;  %v1952_v61 = vadd.s32 1, %v9335_v17  ;;  %v1998_v25 = vand.u32 2147483647, %v9269_v12 }
 0x246   :  { %v1862_v52 = vsub.s32 32, %v1861_v33  ;;  %v1866_v20 = vsub.s32 4294967266, %v1861_v33  ;;  %vm2009_vm14 = vcmp.gt.s32.totalorder %v2008_v62, 0  ;;  %v1863_v58 = vshll.u32 %v9291_v30, %v1861_v33 }
 0x247   :  { %v7592_v56 = vpop.eup %7591  ;;  %v1877_v49 = vsel %vm1792_vm2, %v1876_v10, %v9271_v29  ;;  %vm1951_vm15 = vc.u32 %v9343_v34, %v9334_v19  ;;  %v2010_v31 = vsel %vm2009_vm14, %v2008_v62, 0  ;;  %v1949_v29 = vmul.u32 %v9303_v42, %v1933_v54 }
 0x248   :  { %v7594_v4 = vpop.eup %7593  ;;  %v1786_v36 = vxor.u32 2147483648, %v7592_v56  ;;  %v1864_v55 = vshrl.u32 %v1846_v28, %v1862_v52  ;;  %v1867_v60 = vadd.s32 127, %v1866_v20  ;;  %v1953_v57 = vsel %vm1951_vm15, %v1952_v61, %v9335_v17 }
 0x249   :  { %v1783_v9 = vxor.u32 2147483648, %v7594_v4  ;;  %v1879_v59 = vsel %vm9325_vm9, 0, %v1877_v49  ;;  %v1954_v11 = vadd.s32 %v1953_v57, %v1949_v29  ;;  %v2012_v42 = vand.u32 31, %v2010_v31 }
 0x24a   :  { %v1787_v41 = vsel %vm1785_vm13, %v1786_v36, %v7594_v4  ;;  %v5134_v50 = vsel %vm5132_vm6, %v1786_v36, %v7594_v4  ;;  %v1865_v48 = vor.u32 %v1864_v55, %v1863_v58  ;;  %v1868_v1 = vshll.u32 %v1867_v60, 23 }
 0x24b   :  { %v1784_v30 = vsel %vm1782_vm12, %v7592_v56, %v1783_v9  ;;  %v5131_v43 = vsel %vm5129_vm5, %v7592_v56, %v1783_v9  ;;  %v1955_v32 = vadd.s32 536870912, %v1954_v11  ;;  %v2005_v8 = vand.u32 8388607, %v1998_v25 }
 0x24c   :  { %v1788_v16 = vsel %vm1781_vm7, %v1784_v30, %v1787_v41  ;;  %v5135_v47 = vsel %vm5128_vm8, %v5131_v43, %v5134_v50  ;;  %v1869_v15 = vor.u32 4788187, %v1868_v1  ;;  %v1872_v26 = vcvt.s32.f32 %v1865_v48 }
 0x24d   :  { %v1789_v14 = vsel %vm1778_vm10, nan, %v1788_v16  ;;  %v5136_v23 = vsel %vm1778_vm10, nan, %v5135_v47  ;;  %v2013_v5 = vsub.s32 32, %v2012_v42  ;;  %v1883_v27 = vadd.s32 3, %v1879_v59 }
 0x24e   :  { %3778 = vst [vmem:[#allocation2 + $0xc0] sm:$0xff] %v1789_v14  ;;  %7106 = vst [vmem:[#allocation2 + $0xc8] sm:$0xff] %v5136_v23  ;;  %v1870_v22 = vand.u32 2147483647, %v1869_v15  ;;  %v2015_v44 = vshll.u32 %v11041_v40, %v2012_v42  ;;  %v390_v17 = vmul.f32 %v8916_v21, %v308_v0  ;;  %v1956_v53 = vshrl.u32 %v1955_v32, 30 }
 0x24f   :  { %v2016_v18 = vshrl.u32 %v11042_v38, %v2013_v5  ;;  %v2019_v63 = vshrl.u32 %v11043_v13, %v2013_v5  ;;  %v2024_v33 = vshll.u32 %v11044_v37, %v2012_v42  ;;  %v2022_v62 = vshrl.u32 %v11044_v37, %v2013_v5 }
 0x250   :  { %v1873_v45 = vmul.f32 %v1872_v26, %v1870_v22  ;;  %v2025_v28 = vshrl.u32 %v11045_v35, %v2013_v5  ;;  %v2028_v52 = vshrl.u32 %v11046_v24, %v2013_v5  ;;  %v1957_v20 = vshll.u32 %v1956_v53, 30 }
 0x251   :  { %v2011_v56 = vshrl.u32 %v2010_v31, 5  ;;  %v2018_v54 = vshll.u32 %v11042_v38, %v2012_v42  ;;  %v2021_v21 = vshll.u32 %v11043_v13, %v2012_v42  ;;  %v2017_v4 = vor.u32 %v2016_v18, %v2015_v44 }
 0x252   :  { %v1874_v10 = vxor.u32 2147483648, %v1873_v45  ;;  %v2026_v36 = vor.u32 %v2025_v28, %v2024_v33  ;;  %v2027_v58 = vshll.u32 %v11045_v35, %v2012_v42  ;;  %v9398_v60 = vsub.s32 %v1954_v11, %v1957_v20 }
 0x253   :  { %v2020_v9 = vor.u32 %v2019_v63, %v2018_v54  ;;  %v2023_v49 = vor.u32 %v2022_v62, %v2021_v21  ;;  %v9400_v31 = vand.u32 3, %v1879_v59  ;;  %vm1896_vm0 = vcmp.lt.s32.totalorder %v9149_v51, 0 }
 0x254   :  { %v1875_v61 = vsel %vm1792_vm2, %v1874_v10, %v1873_v45  ;;  %v2029_v41 = vor.u32 %v2028_v52, %v2027_v58  ;;  %v1960_v50 = vsub.s32 0, %v9398_v60  ;;  %v2006_v48 = vor.u32 8388608, %v2005_v8 }
 0x255   :  { %v1878_v55 = vsel %vm9325_vm9, %v9060_v39, %v1875_v61  ;;  %vm2033_vm1 = vcmp.lt.s32.totalorder %v2011_v56, 4  ;;  %v9404_v1 = vand.u32 3, %v1883_v27  ;;  %vm2030_vm2 = vcmp.lt.s32.totalorder %v2011_v56, 1 }
 0x256   :  { %7595 = vcosq.f32 %v1878_v55  ;;  %v2039_v6 = vsel %vm2033_vm1, %v2026_v36, 920167782  ;;  %v9407_v30 = vadd.f32 %v390_v17, %v7888_v3  ;;  %vm9411_vm3 = vcmp.le.f32.partialorder %v1894_v46, 0.7853982 }
 0x257   :  { %7597 = vsinq.f32 %v1878_v55  ;;  %v7201_v29 = vmin.u32 %v1960_v50, %v9398_v60  ;;  %vm2032_vm4 = vcmp.lt.s32.totalorder %v2011_v56, 3  ;;  %v2035_v57 = vsel %vm2033_vm1, %v2023_v49, 2102212464 }
 0x258   :  { %v2038_v16 = vsel %vm2030_vm2, %v2017_v4, %v2020_v9  ;;  %v2014_v47 = vshrl.u32 %v11041_v40, %v2013_v5  ;;  %v2040_v15 = vsel %vm2032_vm4, %v2023_v49, %v2039_v6  ;;  %v2042_v59 = vsel %vm2030_vm2, %v2020_v9, %v2023_v49 }
 0x259   :  { %v2043_v14 = vsel %vm2033_vm1, %v2029_v41, 1326507024  ;;  %v1962_v3 = vclz %v7201_v29  ;;  %v1980_v23 = vsub.s32 4, %v1956_v53  ;;  %vm2031_vm5 = vcmp.lt.s32.totalorder %v2011_v56, 2 }
 0x25a   :  { %v2046_v11 = vshll.u32 %v2006_v48, 8  ;;  %v2034_v46 = vsel %vm2030_vm2, %v2014_v47, %v2017_v4  ;;  %v2036_v42 = vsel %vm2032_vm4, %v2020_v9, %v2035_v57  ;;  %v2041_v0 = vsel %vm2031_vm5, %v2038_v16, %v2040_v15 }
 0x25b   :  { %v2044_v22 = vsel %vm2032_vm4, %v2026_v36, %v2043_v14  ;;  %v7202_v26 = vadd.s32 4294967294, %v1962_v3  ;;  %vm5232_vm6 = vcmp.eq.s32.totalorder %v9400_v31, 0  ;;  %vm5235_vm7 = vcmp.eq.s32.totalorder %v9400_v31, 2 }
 0x25c   :  { %v2045_v32 = vsel %vm2031_vm5, %v2042_v59, %v2044_v22  ;;  %v9422_v8 = vmul.u32.u64.low %v2046_v11, %v2041_v0  ;;  %v9423_v45 = vmul.u32.u64.high %v2046_v11, %v2041_v0, %v9422_v8  ;;  %v2105_v44 = vand.u32 2139095040, %v9407_v30  ;;  %v312_v59 = vpop.permute.xlu0 %311 }
 0x25d   :  { %v9428_v5 = vmul.u32.u64.low %v2046_v11, %v2045_v32  ;;  %v9429_v27 = vmul.u32.u64.high %v2046_v11, %v2045_v32, %v9428_v5  ;;  %vm1885_vm8 = vcmp.lt.s32.totalorder %v9404_v1, 2  ;;  %vm5231_vm9 = vcmp.lt.s32.totalorder %v9400_v31, 2 }
 0x25e   :  { %vm7203_vm10 = vcmp.lt.s32.totalorder %v7202_v26, 0  ;;  %v1981_v17 = vsel %vm1896_vm0, %v1980_v23, %v1956_v53  ;;  %v2037_v18 = vsel %vm2031_vm5, %v2034_v46, %v2036_v42  ;;  %vm1882_vm11 = vweird.f32 %v9060_v39 }
 0x25f   :  { %vm1886_vm12 = vcmp.eq.s32.totalorder %v9404_v1, 0  ;;  %v1950_v63 = vadd.s32 %v9334_v19, %v9343_v34  ;;  %v1965_v33 = vsel %vm7203_vm10, 0, %v7202_v26  ;;  %v2106_v10 = vshrl.u32 %v2105_v44, 23 }
 0x260   :  { %v1966_v62 = vsub.s32 32, %v1965_v33  ;;  %v1970_v28 = vsub.s32 4294967266, %v1965_v33  ;;  %v2056_v52 = vadd.s32 1, %v9423_v45  ;;  %v2102_v20 = vand.u32 2147483647, %v9407_v30 }
 0x261   :  { %v1983_v53 = vsel %vm9411_vm3, 0, %v1981_v17  ;;  %v2053_v56 = vmul.u32 %v2046_v11, %v2037_v18  ;;  %vm2055_vm13 = vc.u32 %v9429_v27, %v9422_v8  ;;  %v7208_v54 = vadd.s32 4294967169, %v2106_v10 }
 0x262   :  { %v1967_v61 = vshll.u32 %v9398_v60, %v1965_v33  ;;  %v1968_v19 = vshrl.u32 %v1950_v63, %v1966_v62  ;;  %v1971_v34 = vadd.s32 127, %v1970_v28  ;;  %v2057_v4 = vsel %vm2055_vm13, %v2056_v52, %v9423_v45 }
 0x263   :  { %v7596_v21 = vpop.eup %7595  ;;  %vm1889_vm14 = vcmp.eq.s32.totalorder %v9404_v1, 2  ;;  %v2058_v55 = vadd.s32 %v2057_v4, %v2053_v56  ;;  %v2112_v9 = vadd.s32 1, %v7208_v54  ;;  %v1987_v48 = vadd.s32 3, %v1983_v53  ;;  %v9469_v1 = vld [vmem:[%s11012_s1 + $0x1] ss:$0 sm:$0xff] }
 0x264   :  { %v7598_v36 = vpop.eup %7597  ;;  %v1890_v58 = vxor.u32 2147483648, %v7596_v21  ;;  %v1969_v41 = vor.u32 %v1968_v19, %v1967_v61  ;;  %v1972_v50 = vshll.u32 %v1971_v34, 23  ;;  %v2109_v15 = vand.u32 8388607, %v2102_v20 }
 0x265   :  { %v1887_v49 = vxor.u32 2147483648, %v7598_v36  ;;  %v2059_v57 = vadd.s32 536870912, %v2058_v55  ;;  %vm2113_vm15 = vcmp.gt.s32.totalorder %v2112_v9, 0  ;;  %v391_v31 = vmul.f32 %v9469_v1, %v312_v59 }
 0x266   :  { %v1891_v6 = vsel %vm1889_vm14, %v1890_v58, %v7598_v36  ;;  %v5237_v29 = vsel %vm5235_vm7, %v1890_v58, %v7598_v36  ;;  %v1973_v47 = vor.u32 4788187, %v1972_v50  ;;  %v2114_v11 = vsel %vm2113_vm15, %v2112_v9, 0 }
 0x267   :  { %v1888_v60 = vsel %vm1886_vm12, %v7596_v21, %v1887_v49  ;;  %v5234_v16 = vsel %vm5232_vm6, %v7596_v21, %v1887_v49  ;;  %v2060_v23 = vshrl.u32 %v2059_v57, 30  ;;  %v1976_v22 = vcvt.s32.f32 %v1969_v41 }
 0x268   :  { %v1892_v14 = vsel %vm1885_vm8, %v1888_v60, %v1891_v6  ;;  %v5238_v3 = vsel %vm5231_vm9, %v5234_v16, %v5237_v29  ;;  %v1974_v0 = vand.u32 2147483647, %v1973_v47  ;;  %v2116_v32 = vand.u32 31, %v2114_v11 }
 0x269   :  { %v1893_v46 = vsel %vm1882_vm11, nan, %v1892_v14  ;;  %v5239_v42 = vsel %vm1882_vm11, nan, %v5238_v3  ;;  %v2061_v26 = vshll.u32 %v2060_v23, 30  ;;  %vm9474_vm1 = vcmp.le.f32.partialorder %v1998_v25, 0.7853982 }
 0x26a   :  { %3779 = vst [vmem:[#allocation2 + $0xd0] sm:$0xff] %v1893_v46  ;;  %7107 = vst [vmem:[#allocation2 + $0xd8] sm:$0xff] %v5239_v42  ;;  %v1977_v45 = vmul.f32 %v1976_v22, %v1974_v0  ;;  %v2110_v44 = vor.u32 8388608, %v2109_v15  ;;  %v2117_v17 = vsub.s32 32, %v2116_v32  ;;  %v9480_v63 = vand.u32 3, %v1987_v48 }
 0x26b   :  { %v9478_v39 = vsub.s32 %v2058_v55, %v2061_v26  ;;  %v9482_v33 = vand.u32 3, %v1983_v53  ;;  %vm2000_vm2 = vcmp.lt.s32.totalorder %v9269_v12, 0  ;;  %v2084_v62 = vsub.s32 4, %v2060_v23 }
 0x26c   :  { %v1978_v18 = vxor.u32 2147483648, %v1977_v45  ;;  %v9486_v28 = vshrl.u32 %v2114_v11, 5  ;;  %v9489_v25 = vadd.f32 %v391_v31, %v7885_v2  ;;  %v2120_v56 = vshrl.u32 %v11042_v38, %v2117_v17 }
 0x26d   :  { %v2064_v10 = vsub.s32 0, %v9478_v39  ;;  %v2123_v54 = vshrl.u32 %v11043_v13, %v2117_v17  ;;  %v2126_v53 = vshrl.u32 %v11044_v37, %v2117_v17  ;;  %v2054_v61 = vadd.s32 %v9422_v8, %v9429_v27 }
 0x26e   :  { %v1979_v52 = vsel %vm1896_vm0, %v1978_v18, %v1977_v45  ;;  %v9502_v2 = vshll.u32 %v2110_v44, 8  ;;  %v2119_v34 = vshll.u32 %v11041_v40, %v2116_v32  ;;  %v2122_v4 = vshll.u32 %v11042_v38, %v2116_v32 }
 0x26f   :  { %v1982_v21 = vsel %vm9411_vm3, %v9149_v51, %v1979_v52  ;;  %v7205_v19 = vmin.u32 %v2064_v10, %v9478_v39  ;;  %v2125_v36 = vshll.u32 %v11043_v13, %v2116_v32  ;;  %v2085_v43 = vsel %vm2000_vm2, %v2084_v62, %v2060_v23 }
 0x270   :  { %7599 = vcosq.f32 %v1982_v21  ;;  %vm2134_vm0 = vcmp.lt.s32.totalorder %v9486_v28, 1  ;;  %v2121_v55 = vor.u32 %v2120_v56, %v2119_v34  ;;  %v2124_v8 = vor.u32 %v2123_v54, %v2122_v4 }
 0x271   :  { %7601 = vsinq.f32 %v1982_v21  ;;  %v2066_v58 = vclz %v7205_v19  ;;  %v2127_v27 = vor.u32 %v2126_v53, %v2125_v36  ;;  %v2128_v9 = vshll.u32 %v11044_v37, %v2116_v32 }
 0x272   :  { %v2129_v41 = vshrl.u32 %v11045_v35, %v2117_v17  ;;  %v2131_v50 = vshll.u32 %v11045_v35, %v2116_v32  ;;  %v2132_v48 = vshrl.u32 %v11046_v24, %v2117_v17  ;;  %v9516_v6 = vsel %vm9474_vm1, 0, %v2085_v43 }
 0x273   :  { %v7206_v49 = vadd.s32 4294967294, %v2066_v58  ;;  %v2118_v29 = vshrl.u32 %v11041_v40, %v2117_v17  ;;  %vm2135_vm3 = vcmp.lt.s32.totalorder %v9486_v28, 2  ;;  %vm2136_vm4 = vcmp.lt.s32.totalorder %v9486_v28, 3 }
 0x274   :  { %v2130_v57 = vor.u32 %v2129_v41, %v2128_v9  ;;  %v2133_v60 = vor.u32 %v2132_v48, %v2131_v50  ;;  %vm2137_vm6 = vcmp.lt.s32.totalorder %v9486_v28, 4  ;;  %v2142_v15 = vsel %vm2134_vm0, %v2121_v55, %v2124_v8 }
 0x275   :  { %vm7207_vm5 = vcmp.lt.s32.totalorder %v7206_v49, 0  ;;  %v2138_v47 = vsel %vm2134_vm0, %v2118_v29, %v2121_v55  ;;  %v2209_v59 = vand.u32 2139095040, %v9489_v25  ;;  %vm5338_vm7 = vcmp.eq.s32.totalorder %v9482_v33, 2 }
 0x276   :  { %v2069_v16 = vsel %vm7207_vm5, 0, %v7206_v49  ;;  %v2139_v23 = vsel %vm2137_vm6, %v2127_v27, 2102212464  ;;  %v2146_v11 = vsel %vm2134_vm0, %v2124_v8, %v2127_v27  ;;  %vm5335_vm8 = vcmp.eq.s32.totalorder %v9482_v33, 0 }
 0x277   :  { %v2070_v14 = vsub.s32 32, %v2069_v16  ;;  %v2074_v3 = vsub.s32 4294967266, %v2069_v16  ;;  %v2071_v46 = vshll.u32 %v9478_v39, %v2069_v16  ;;  %v2143_v42 = vsel %vm2137_vm6, %v2130_v57, 920167782 }
 0x278   :  { %v2147_v0 = vsel %vm2137_vm6, %v2133_v60, 1326507024  ;;  %v2210_v22 = vshrl.u32 %v2209_v59, 23  ;;  %vm5334_vm9 = vcmp.lt.s32.totalorder %v9482_v33, 2  ;;  %v2144_v31 = vsel %vm2136_vm4, %v2127_v27, %v2143_v42 }
 0x279   :  { %v2072_v26 = vshrl.u32 %v2054_v61, %v2070_v14  ;;  %v2075_v32 = vadd.s32 127, %v2074_v3  ;;  %v2148_v45 = vsel %vm2136_vm4, %v2130_v57, %v2147_v0  ;;  %vm1986_vm10 = vweird.f32 %v9149_v51 }
 0x27a   :  { %v2140_v44 = vsel %vm2136_vm4, %v2124_v8, %v2139_v23  ;;  %v2145_v39 = vsel %vm2135_vm3, %v2142_v15, %v2144_v31  ;;  %v2149_v17 = vsel %vm2135_vm3, %v2146_v11, %v2148_v45  ;;  %v7212_v18 = vadd.s32 4294967169, %v2210_v22 }
 0x27b   :  { %v2073_v10 = vor.u32 %v2072_v26, %v2071_v46  ;;  %v2076_v62 = vshll.u32 %v2075_v32, 23  ;;  %v9545_v52 = vmul.u32.u64.low %v9502_v2, %v2149_v17  ;;  %v9546_v56 = vmul.u32.u64.high %v9502_v2, %v2149_v17, %v9545_v52 }
 0x27c   :  { %vm1989_vm11 = vcmp.lt.s32.totalorder %v9480_v63, 2  ;;  %v9550_v54 = vmul.u32.u64.low %v9502_v2, %v2145_v39  ;;  %v9551_v53 = vmul.u32.u64.high %v9502_v2, %v2145_v39, %v9550_v54  ;;  %v2216_v21 = vadd.s32 1, %v7212_v18 }
 0x27d   :  { %v7600_v61 = vpop.eup %7599  ;;  %vm1990_vm12 = vcmp.eq.s32.totalorder %v9480_v63, 0  ;;  %vm1993_vm13 = vcmp.eq.s32.totalorder %v9480_v63, 2  ;;  %v2077_v19 = vor.u32 4788187, %v2076_v62  ;;  %v2206_v34 = vand.u32 2147483647, %v9489_v25  ;;  %v320_v62 = vpop.permute.xlu0 %319 }
 0x27e   :  { %v7602_v4 = vpop.eup %7601  ;;  %v1994_v36 = vxor.u32 2147483648, %v7600_v61  ;;  %v2091_v58 = vadd.s32 3, %v9516_v6  ;;  %v2141_v43 = vsel %vm2135_vm3, %v2138_v47, %v2140_v44  ;;  %vm2217_vm14 = vcmp.gt.s32.totalorder %v2216_v21, 0 }
 0x27f   :  { %v1991_v55 = vxor.u32 2147483648, %v7602_v4  ;;  %v2078_v8 = vand.u32 2147483647, %v2077_v19  ;;  %v2080_v27 = vcvt.s32.f32 %v2073_v10  ;;  %vm2159_vm15 = vc.u32 %v9546_v56, %v9550_v54  ;;  %v316_v10 = vpop.permute.xlu1 %315 }
 0x280   :  { %v1995_v9 = vsel %vm1993_vm13, %v1994_v36, %v7602_v4  ;;  %v5340_v49 = vsel %vm5338_vm7, %v1994_v36, %v7602_v4  ;;  %v2160_v41 = vadd.s32 1, %v9551_v53  ;;  %v2218_v50 = vsel %vm2217_vm14, %v2216_v21, 0 }
 0x281   :  { %v1992_v48 = vsel %vm1990_vm12, %v7600_v61, %v1991_v55  ;;  %v5337_v28 = vsel %vm5335_vm8, %v7600_v61, %v1991_v55  ;;  %v2081_v29 = vmul.f32 %v2080_v27, %v2078_v8  ;;  %v2157_v57 = vmul.u32 %v9502_v2, %v2141_v43 }
 0x282   :  { %v1996_v60 = vsel %vm1989_vm11, %v1992_v48, %v1995_v9  ;;  %v5341_v16 = vsel %vm5334_vm9, %v5337_v28, %v5340_v49  ;;  %v2161_v47 = vsel %vm2159_vm15, %v2160_v41, %v9551_v53  ;;  %v2220_v15 = vand.u32 31, %v2218_v50 }
 0x283   :  { %v1997_v59 = vsel %vm1986_vm10, nan, %v1996_v60  ;;  %v5342_v14 = vsel %vm1986_vm10, nan, %v5341_v16  ;;  %v2082_v3 = vxor.u32 2147483648, %v2081_v29  ;;  %v2162_v23 = vadd.s32 %v2161_v47, %v2157_v57 }
 0x284   :  { %3780 = vst [vmem:[#allocation2 + $0xe0] sm:$0xff] %v1997_v59  ;;  %7108 = vst [vmem:[#allocation2 + $0xe8] sm:$0xff] %v5342_v14  ;;  %v2213_v63 = vand.u32 8388607, %v2206_v34  ;;  %v9581_v2 = vshrl.u32 %v2218_v50, 5  ;;  %v2221_v33 = vsub.s32 32, %v2220_v15  ;;  %v2223_v11 = vshll.u32 %v11041_v40, %v2220_v15 }
 0x285   :  { %v2083_v46 = vsel %vm2000_vm2, %v2082_v3, %v2081_v29  ;;  %v2163_v42 = vadd.s32 536870912, %v2162_v23  ;;  %v2226_v0 = vshll.u32 %v11042_v38, %v2220_v15  ;;  %v2229_v51 = vshll.u32 %v11043_v13, %v2220_v15 }
 0x286   :  { %v2086_v22 = vsel %vm9474_vm1, %v9269_v12, %v2083_v46  ;;  %v2224_v26 = vshrl.u32 %v11042_v38, %v2221_v33  ;;  %v2227_v32 = vshrl.u32 %v11043_v13, %v2221_v33  ;;  %v2232_v31 = vshll.u32 %v11044_v37, %v2220_v15 }
 0x287   :  { %7603 = vcosq.f32 %v2086_v22  ;;  %v9594_v45 = vshrl.u32 %v2163_v42, 30  ;;  %v2230_v44 = vshrl.u32 %v11044_v37, %v2221_v33  ;;  %v2233_v39 = vshrl.u32 %v11045_v35, %v2221_v33 }
 0x288   :  { %7605 = vsinq.f32 %v2086_v22  ;;  %v2225_v17 = vor.u32 %v2224_v26, %v2223_v11  ;;  %v2235_v18 = vshll.u32 %v11045_v35, %v2220_v15  ;;  %v2236_v5 = vshrl.u32 %v11046_v24, %v2221_v33  ;;  %v11083_v22 = vld [vmem:[#allocation5_spill] sm:$0xff] }
 0x289   :  { %v2165_v52 = vshll.u32 %v9594_v45, 30  ;;  %v2228_v53 = vor.u32 %v2227_v32, %v2226_v0  ;;  %v2231_v21 = vor.u32 %v2230_v44, %v2229_v51  ;;  %v2234_v61 = vor.u32 %v2233_v39, %v2232_v31 }
 0x28a   :  { %v2214_v19 = vor.u32 8388608, %v2213_v63  ;;  %v2237_v4 = vor.u32 %v2236_v5, %v2235_v18  ;;  %vm2241_vm1 = vcmp.lt.s32.totalorder %v9581_v2, 4  ;;  %v392_v43 = vmul.f32 %v9469_v1, %v316_v10 }
 0x28b   :  { %v9601_v36 = vsub.s32 %v2162_v23, %v2165_v52  ;;  %v393_v55 = vmul.f32 %v9469_v1, %v320_v62  ;;  %v2092_v8 = vand.u32 3, %v2091_v58  ;;  %v5436_v27 = vand.u32 3, %v9516_v6 }
 0x28c   :  { %vm2104_vm2 = vcmp.lt.s32.totalorder %v9407_v30, 0  ;;  %vm2238_vm0 = vcmp.lt.s32.totalorder %v9581_v2, 1  ;;  %v2247_v9 = vsel %vm2241_vm1, %v2234_v61, 920167782  ;;  %vm2240_vm3 = vcmp.lt.s32.totalorder %v9581_v2, 3 }
 0x28d   :  { %v2168_v49 = vsub.s32 0, %v9601_v36  ;;  %v2243_v41 = vsel %vm2241_vm1, %v2231_v21, 2102212464  ;;  %v2246_v50 = vsel %vm2238_vm0, %v2225_v17, %v2228_v53  ;;  %v2222_v48 = vshrl.u32 %v11041_v40, %v2221_v33 }
 0x28e   :  { %v2248_v28 = vsel %vm2240_vm3, %v2231_v21, %v2247_v9  ;;  %v2251_v29 = vsel %vm2241_vm1, %v2237_v4, 1326507024  ;;  %v2254_v57 = vshll.u32 %v2214_v19, 8  ;;  %vm2239_vm4 = vcmp.lt.s32.totalorder %v9581_v2, 2 }
 0x28f   :  { %v7209_v58 = vmin.u32 %v2168_v49, %v9601_v36  ;;  %v2250_v6 = vsel %vm2238_vm0, %v2228_v53, %v2231_v21  ;;  %v9615_v60 = vadd.f32 %v392_v43, %v7894_v7  ;;  %vm5437_vm5 = vcmp.lt.s32.totalorder %v5436_v27, 2 }
 0x290   :  { %v2242_v16 = vsel %vm2238_vm0, %v2222_v48, %v2225_v17  ;;  %v2244_v47 = vsel %vm2240_vm3, %v2228_v53, %v2243_v41  ;;  %v2249_v15 = vsel %vm2239_vm4, %v2246_v50, %v2248_v28  ;;  %v2252_v59 = vsel %vm2240_vm3, %v2234_v61, %v2251_v29 }
 0x291   :  { %vm2090_vm6 = vweird.f32 %v9269_v12  ;;  %vm5438_vm7 = vcmp.eq.s32.totalorder %v5436_v27, 0  ;;  %vm5441_vm8 = vcmp.eq.s32.totalorder %v5436_v27, 2  ;;  %v2170_v14 = vclz %v7209_v58 }
 0x292   :  { %v2188_v3 = vsub.s32 4, %v9594_v45  ;;  %vm2093_vm9 = vcmp.lt.s32.totalorder %v2092_v8, 2  ;;  %v2253_v23 = vsel %vm2239_vm4, %v2250_v6, %v2252_v59  ;;  %v2245_v11 = vsel %vm2239_vm4, %v2242_v16, %v2244_v47 }
 0x293   :  { %v9623_v7 = vmul.u32.u64.low %v2254_v57, %v2249_v15  ;;  %v9624_v63 = vmul.u32.u64.high %v2254_v57, %v2249_v15, %v9623_v7  ;;  %v7210_v33 = vadd.s32 4294967294, %v2170_v14  ;;  %vm2094_vm10 = vcmp.eq.s32.totalorder %v2092_v8, 0  ;;  %v324_v14 = vpop.permute.xlu1 %323 }
 0x294   :  { %v9629_v46 = vmul.u32.u64.low %v2254_v57, %v2253_v23  ;;  %v9630_v42 = vmul.u32.u64.high %v2254_v57, %v2253_v23, %v9629_v46  ;;  %v7604_v0 = vpop.eup %7603  ;;  %vm2097_vm11 = vcmp.eq.s32.totalorder %v2092_v8, 2  ;;  %v2313_v51 = vand.u32 2139095040, %v9615_v60 }
 0x295   :  { %v9634_v26 = vadd.f32 %v393_v55, %v11083_v22  ;;  %v7606_v32 = vpop.eup %7605  ;;  %v2098_v31 = vxor.u32 2147483648, %v7604_v0  ;;  %v2158_v44 = vadd.s32 %v9550_v54, %v9546_v56  ;;  %vm7211_vm12 = vcmp.lt.s32.totalorder %v7210_v33, 0 }
 0x296   :  { %v2189_v2 = vsel %vm2104_vm2, %v2188_v3, %v9594_v45  ;;  %v2095_v39 = vxor.u32 2147483648, %v7606_v32  ;;  %v2173_v17 = vsel %vm7211_vm12, 0, %v7210_v33  ;;  %v2261_v18 = vmul.u32 %v2254_v57, %v2245_v11 }
 0x297   :  { %v2264_v5 = vadd.s32 1, %v9624_v63  ;;  %v2099_v10 = vsel %vm2097_vm11, %v2098_v31, %v7606_v32  ;;  %v5443_v62 = vsel %vm5441_vm8, %v2098_v31, %v7606_v32  ;;  %v2174_v52 = vsub.s32 32, %v2173_v17 }
 0x298   :  { %v2314_v53 = vshrl.u32 %v2313_v51, 23  ;;  %v2096_v21 = vsel %vm2094_vm10, %v7604_v0, %v2095_v39  ;;  %v5440_v61 = vsel %vm5438_vm7, %v7604_v0, %v2095_v39  ;;  %v2175_v56 = vshll.u32 %v9601_v36, %v2173_v17 }
 0x299   :  { %v2178_v54 = vsub.s32 4294967266, %v2173_v17  ;;  %v2100_v19 = vsel %vm2093_vm9, %v2096_v21, %v2099_v10  ;;  %v5444_v45 = vsel %vm5437_vm5, %v5440_v61, %v5443_v62  ;;  %v2176_v4 = vshrl.u32 %v2158_v44, %v2174_v52 }
 0x29a   :  { %vm2263_vm13 = vc.u32 %v9630_v42, %v9623_v7  ;;  %v2101_v43 = vsel %vm2090_vm6, nan, %v2100_v19  ;;  %v5445_v55 = vsel %vm2090_vm6, nan, %v5444_v45  ;;  %v2310_v8 = vand.u32 2147483647, %v9615_v60 }
 0x29b   :  { %v2179_v9 = vadd.s32 127, %v2178_v54  ;;  %v2265_v49 = vsel %vm2263_vm13, %v2264_v5, %v9624_v63  ;;  %3781 = vst [vmem:[#allocation2 + $0xf0] sm:$0xff] %v2101_v43  ;;  %7109 = vst [vmem:[#allocation2 + $0xf8] sm:$0xff] %v5445_v55  ;;  %v7216_v27 = vadd.s32 4294967169, %v2314_v53  ;;  %vm9658_vm14 = vcmp.le.f32.partialorder %v2102_v20, 0.7853982 }
 0x29c   :  { %v2266_v36 = vadd.s32 %v2265_v49, %v2261_v18  ;;  %v2177_v50 = vor.u32 %v2176_v4, %v2175_v56  ;;  %v2191_v12 = vsel %vm9658_vm14, 0, %v2189_v2  ;;  %v2417_v57 = vand.u32 2139095040, %v9634_v26 }
 0x29d   :  { %v2180_v48 = vshll.u32 %v2179_v9, 23  ;;  %v2320_v29 = vadd.s32 1, %v7216_v27  ;;  %v2317_v16 = vand.u32 8388607, %v2310_v8  ;;  %v2195_v15 = vadd.s32 3, %v2191_v12 }
 0x29e   :  { %v2267_v28 = vadd.s32 536870912, %v2266_v36  ;;  %v2184_v20 = vcvt.s32.f32 %v2177_v50  ;;  %v2414_v63 = vand.u32 2147483647, %v9634_v26  ;;  %v2418_v33 = vshrl.u32 %v2417_v57, 23 }
 0x29f   :  { %v2181_v58 = vor.u32 4788187, %v2180_v48  ;;  %vm2321_vm15 = vcmp.gt.s32.totalorder %v2320_v29, 0  ;;  %vm2208_vm1 = vcmp.lt.s32.totalorder %v9489_v25, 0  ;;  %v2318_v0 = vor.u32 8388608, %v2317_v16 }
 0x2a0   :  { %v2268_v6 = vshrl.u32 %v2267_v28, 30  ;;  %v2322_v59 = vsel %vm2321_vm15, %v2320_v29, 0  ;;  %v9672_v22 = vmul.f32 %v9469_v1, %v324_v14  ;;  %v9674_v31 = vand.u32 3, %v2195_v15 }
 0x2a1   :  { %v2182_v47 = vand.u32 2147483647, %v2181_v58  ;;  %v2324_v23 = vand.u32 31, %v2322_v59  ;;  %v9676_v44 = vand.u32 3, %v2191_v12  ;;  %v2262_v2 = vadd.s32 %v9623_v7, %v9630_v42 }
 0x2a2   :  { %v2269_v3 = vshll.u32 %v2268_v6, 30  ;;  %v2292_v17 = vsub.s32 4, %v2268_v6  ;;  %v7220_v18 = vadd.s32 4294967169, %v2418_v33  ;;  %v9683_v5 = vand.u32 8388607, %v2414_v63 }
 0x2a3   :  { %v2185_v11 = vmul.f32 %v2184_v20, %v2182_v47  ;;  %v2325_v51 = vsub.s32 32, %v2324_v23  ;;  %v2323_v21 = vshrl.u32 %v2322_v59, 5  ;;  %v9694_v61 = vshll.u32 %v2318_v0, 8 }
 0x2a4   :  { %v9669_v46 = vsub.s32 %v2266_v36, %v2269_v3  ;;  %v2327_v56 = vshll.u32 %v11041_v40, %v2324_v23  ;;  %v2330_v54 = vshll.u32 %v11042_v38, %v2324_v23  ;;  %v2333_v19 = vshll.u32 %v11043_v13, %v2324_v23 }
 0x2a5   :  { %v2186_v32 = vxor.u32 2147483648, %v2185_v11  ;;  %v2328_v62 = vshrl.u32 %v11042_v38, %v2325_v51  ;;  %v2331_v52 = vshrl.u32 %v11043_v13, %v2325_v51  ;;  %v2334_v53 = vshrl.u32 %v11044_v37, %v2325_v51 }
 0x2a6   :  { %v2272_v39 = vsub.s32 0, %v9669_v46  ;;  %v2293_v4 = vsel %vm2208_vm1, %v2292_v17, %v2268_v6  ;;  %v2424_v43 = vadd.s32 1, %v7220_v18  ;;  %v2336_v36 = vshll.u32 %v11044_v37, %v2324_v23 }
 0x2a7   :  { %v2187_v10 = vsel %vm2104_vm2, %v2186_v32, %v2185_v11  ;;  %v2329_v55 = vor.u32 %v2328_v62, %v2327_v56  ;;  %v2332_v9 = vor.u32 %v2331_v52, %v2330_v54  ;;  %v2335_v49 = vor.u32 %v2334_v53, %v2333_v19  ;;  %v11088_v19 = vld [vmem:[#allocation7_spill] sm:$0xff] }
 0x2a8   :  { %v2190_v7 = vsel %vm9658_vm14, %v9407_v30, %v2187_v10  ;;  %v7213_v42 = vmin.u32 %v2272_v39, %v9669_v46  ;;  %v2337_v41 = vshrl.u32 %v11045_v35, %v2325_v51  ;;  %v2339_v50 = vshll.u32 %v11045_v35, %v2324_v23 }
 0x2a9   :  { %7607 = vcosq.f32 %v2190_v7  ;;  %v2340_v48 = vshrl.u32 %v11046_v24, %v2325_v51  ;;  %vm9707_vm2 = vcmp.le.f32.partialorder %v2206_v34, 0.7853982  ;;  %v2326_v28 = vshrl.u32 %v11041_v40, %v2325_v51 }
 0x2aa   :  { %7609 = vsinq.f32 %v2190_v7  ;;  %v2274_v45 = vclz %v7213_v42  ;;  %vm2342_vm0 = vcmp.lt.s32.totalorder %v2323_v21, 1  ;;  %vm2343_vm3 = vcmp.lt.s32.totalorder %v2323_v21, 2 }
 0x2ab   :  { %vm2344_vm4 = vcmp.lt.s32.totalorder %v2323_v21, 3  ;;  %v2338_v29 = vor.u32 %v2337_v41, %v2336_v36  ;;  %v2341_v57 = vor.u32 %v2340_v48, %v2339_v50  ;;  %vm2345_vm6 = vcmp.lt.s32.totalorder %v2323_v21, 4 }
 0x2ac   :  { %v7214_v27 = vadd.s32 4294967294, %v2274_v45  ;;  %v2346_v6 = vsel %vm2342_vm0, %v2326_v28, %v2329_v55  ;;  %v2347_v16 = vsel %vm2345_vm6, %v2335_v49, 2102212464  ;;  %v2350_v47 = vsel %vm2342_vm0, %v2329_v55, %v2332_v9 }
 0x2ad   :  { %vm5544_vm7 = vcmp.eq.s32.totalorder %v9676_v44, 2  ;;  %v2348_v15 = vsel %vm2344_vm4, %v2332_v9, %v2347_v16  ;;  %v2354_v59 = vsel %vm2342_vm0, %v2332_v9, %v2335_v49  ;;  %vm2198_vm8 = vcmp.eq.s32.totalorder %v9674_v31, 0 }
 0x2ae   :  { %vm7215_vm5 = vcmp.lt.s32.totalorder %v7214_v27, 0  ;;  %vm5541_vm9 = vcmp.eq.s32.totalorder %v9676_v44, 0  ;;  %v2351_v3 = vsel %vm2345_vm6, %v2338_v29, 920167782  ;;  %v2355_v23 = vsel %vm2345_vm6, %v2341_v57, 1326507024 }
 0x2af   :  { %v2277_v58 = vsel %vm7215_vm5, 0, %v7214_v27  ;;  %vm2425_vm10 = vcmp.gt.s32.totalorder %v2424_v43, 0  ;;  %vm2197_vm11 = vcmp.lt.s32.totalorder %v9674_v31, 2  ;;  %vm5540_vm12 = vcmp.lt.s32.totalorder %v9676_v44, 2 }
 0x2b0   :  { %v2278_v20 = vsub.s32 32, %v2277_v58  ;;  %v2282_v34 = vsub.s32 4294967266, %v2277_v58  ;;  %v2279_v14 = vshll.u32 %v9669_v46, %v2277_v58  ;;  %v2352_v0 = vsel %vm2344_vm4, %v2335_v49, %v2351_v3 }
 0x2b1   :  { %v2356_v51 = vsel %vm2344_vm4, %v2338_v29, %v2355_v23  ;;  %vm2194_vm13 = vweird.f32 %v9407_v30  ;;  %v2349_v32 = vsel %vm2343_vm3, %v2346_v6, %v2348_v15  ;;  %v2353_v39 = vsel %vm2343_vm3, %v2350_v47, %v2352_v0 }
 0x2b2   :  { %v2280_v33 = vshrl.u32 %v2262_v2, %v2278_v20  ;;  %v2283_v11 = vadd.s32 127, %v2282_v34  ;;  %v2357_v46 = vsel %vm2343_vm3, %v2354_v59, %v2356_v51  ;;  %v2426_v17 = vsel %vm2425_vm10, %v2424_v43, 0 }
 0x2b3   :  { %v9726_v62 = vmul.u32.u64.low %v9694_v61, %v2357_v46  ;;  %v9727_v52 = vmul.u32.u64.high %v9694_v61, %v2357_v46, %v9726_v62  ;;  %vm2201_vm14 = vcmp.eq.s32.totalorder %v9674_v31, 2  ;;  %v2428_v7 = vand.u32 31, %v2426_v17 }
 0x2b4   :  { %v2281_v18 = vor.u32 %v2280_v33, %v2279_v14  ;;  %v2284_v10 = vshll.u32 %v2283_v11, 23  ;;  %v9731_v2 = vmul.u32.u64.low %v9694_v61, %v2353_v39  ;;  %v9732_v53 = vmul.u32.u64.high %v9694_v61, %v2353_v39, %v9731_v2 }
 0x2b5   :  { %v9737_v21 = vsel %vm9707_vm2, 0, %v2293_v4  ;;  %v2422_v54 = vor.u32 8388608, %v9683_v5  ;;  %v9742_v45 = vadd.f32 %v9672_v22, %v11088_v19  ;;  %v2365_v9 = vmul.u32 %v9694_v61, %v2349_v32 }
 0x2b6   :  { %v7608_v42 = vpop.eup %7607  ;;  %v2285_v56 = vor.u32 4788187, %v2284_v10  ;;  %v9745_v49 = vshrl.u32 %v2426_v17, 5  ;;  %v2429_v36 = vsub.s32 32, %v2428_v7  ;;  %v2288_v50 = vcvt.s32.f32 %v2281_v18 }
 0x2b7   :  { %v7610_v43 = vpop.eup %7609  ;;  %v2202_v55 = vxor.u32 2147483648, %v7608_v42  ;;  %vm2367_vm15 = vc.u32 %v9727_v52, %v9731_v2  ;;  %v2368_v4 = vadd.s32 1, %v9732_v53  ;;  %v2431_v48 = vshll.u32 %v11041_v40, %v2428_v7 }
 0x2b8   :  { %v2199_v27 = vxor.u32 2147483648, %v7610_v43  ;;  %v2286_v41 = vand.u32 2147483647, %v2285_v56  ;;  %v2432_v57 = vshrl.u32 %v11042_v38, %v2429_v36  ;;  %v2435_v47 = vshrl.u32 %v11043_v13, %v2429_v36 }
 0x2b9   :  { %v2203_v5 = vsel %vm2201_vm14, %v2202_v55, %v7610_v43  ;;  %v5546_v22 = vsel %vm5544_vm7, %v2202_v55, %v7610_v43  ;;  %v2369_v16 = vsel %vm2367_vm15, %v2368_v4, %v9732_v53  ;;  %v2434_v31 = vshll.u32 %v11042_v38, %v2428_v7 }
 0x2ba   :  { %v2200_v61 = vsel %vm2198_vm8, %v7608_v42, %v2199_v27  ;;  %v5543_v28 = vsel %vm5541_vm9, %v7608_v42, %v2199_v27  ;;  %v2289_v29 = vmul.f32 %v2288_v50, %v2286_v41  ;;  %v2370_v59 = vadd.s32 %v2369_v16, %v2365_v9 }
 0x2bb   :  { %v2204_v58 = vsel %vm2197_vm11, %v2200_v61, %v2203_v5  ;;  %v5547_v6 = vsel %vm5540_vm12, %v5543_v28, %v5546_v22  ;;  %v2433_v14 = vor.u32 %v2432_v57, %v2431_v48  ;;  %v2437_v44 = vshll.u32 %v11043_v13, %v2428_v7 }
 0x2bc   :  { %v2205_v20 = vsel %vm2194_vm13, nan, %v2204_v58  ;;  %v5548_v34 = vsel %vm2194_vm13, nan, %v5547_v6  ;;  %v2290_v15 = vxor.u32 2147483648, %v2289_v29  ;;  %v2438_v3 = vshrl.u32 %v11044_v37, %v2429_v36 }
 0x2bd   :  { %3782 = vst [vmem:[#allocation2 + $0x100] sm:$0xff] %v2205_v20  ;;  %7110 = vst [vmem:[#allocation2 + $0x108] sm:$0xff] %v5548_v34  ;;  %v2371_v33 = vadd.s32 536870912, %v2370_v59  ;;  %v2440_v11 = vshll.u32 %v11044_v37, %v2428_v7  ;;  %v2441_v30 = vshrl.u32 %v11045_v35, %v2429_v36  ;;  %v2436_v51 = vor.u32 %v2435_v47, %v2434_v31 }
 0x2be   :  { %v2291_v23 = vsel %vm2208_vm1, %v2290_v15, %v2289_v29  ;;  %v2443_v32 = vshll.u32 %v11045_v35, %v2428_v7  ;;  %v2444_v39 = vshrl.u32 %v11046_v24, %v2429_v36  ;;  %v2439_v17 = vor.u32 %v2438_v3, %v2437_v44 }
 0x2bf   :  { %v2294_v0 = vsel %vm9707_vm2, %v9489_v25, %v2291_v23  ;;  %v2372_v46 = vshrl.u32 %v2371_v33, 30  ;;  %v2442_v18 = vor.u32 %v2441_v30, %v2440_v11  ;;  %v2299_v10 = vadd.s32 3, %v9737_v21 }
 0x2c0   :  { %7611 = vcosq.f32 %v2294_v0  ;;  %v2445_v62 = vor.u32 %v2444_v39, %v2443_v32  ;;  %v2462_v53 = vshll.u32 %v2422_v54, 8  ;;  %v2430_v56 = vshrl.u32 %v11041_v40, %v2429_v36 }
 0x2c1   :  { %7613 = vsinq.f32 %v2294_v0  ;;  %v2373_v42 = vshll.u32 %v2372_v46, 30  ;;  %vm2446_vm1 = vcmp.lt.s32.totalorder %v9745_v49, 1  ;;  %vm2449_vm2 = vcmp.lt.s32.totalorder %v9745_v49, 4 }
 0x2c2   :  { %vm2447_vm0 = vcmp.lt.s32.totalorder %v9745_v49, 2  ;;  %vm2448_vm3 = vcmp.lt.s32.totalorder %v9745_v49, 3  ;;  %v2454_v12 = vsel %vm2446_vm1, %v2433_v14, %v2436_v51  ;;  %v2455_v7 = vsel %vm2449_vm2, %v2442_v18, 920167782 }
 0x2c3   :  { %v9790_v19 = vsub.s32 %v2370_v59, %v2373_v42  ;;  %v2451_v43 = vsel %vm2449_vm2, %v2439_v17, 2102212464  ;;  %v2456_v55 = vsel %vm2448_vm3, %v2439_v17, %v2455_v7  ;;  %v2458_v54 = vsel %vm2446_vm1, %v2436_v51, %v2439_v17  ;;  %v328_v42 = vpop.permute.xlu0 %327 }
 0x2c4   :  { %v5642_v9 = vand.u32 3, %v9737_v21  ;;  %v2457_v36 = vsel %vm2447_vm0, %v2454_v12, %v2456_v55  ;;  %v2459_v27 = vsel %vm2449_vm2, %v2445_v62, 1326507024  ;;  %v2521_v41 = vand.u32 2139095040, %v9742_v45 }
 0x2c5   :  { %v2300_v50 = vand.u32 3, %v2299_v10  ;;  %v2376_v5 = vsub.s32 0, %v9790_v19  ;;  %v2450_v22 = vsel %vm2446_vm1, %v2430_v56, %v2433_v14  ;;  %v2460_v4 = vsel %vm2448_vm3, %v2442_v18, %v2459_v27 }
 0x2c6   :  { %v2452_v48 = vsel %vm2448_vm3, %v2436_v51, %v2451_v43  ;;  %v2461_v61 = vsel %vm2447_vm0, %v2458_v54, %v2460_v4  ;;  %v9803_v28 = vmul.u32.u64.low %v2462_v53, %v2457_v36  ;;  %v9804_v29 = vmul.u32.u64.high %v2462_v53, %v2457_v36, %v9803_v28 }
 0x2c7   :  { %vm2312_vm4 = vcmp.lt.s32.totalorder %v9615_v60, 0  ;;  %v7217_v21 = vmin.u32 %v2376_v5, %v9790_v19  ;;  %v2518_v57 = vand.u32 2147483647, %v9742_v45  ;;  %v2396_v58 = vsub.s32 4, %v2372_v46 }
 0x2c8   :  { %v9810_v6 = vmul.u32.u64.low %v2462_v53, %v2461_v61  ;;  %v9811_v16 = vmul.u32.u64.high %v2462_v53, %v2461_v61, %v9810_v6  ;;  %v2522_v47 = vshrl.u32 %v2521_v41, 23  ;;  %vm2298_vm5 = vweird.f32 %v9489_v25 }
 0x2c9   :  { %vm5643_vm6 = vcmp.lt.s32.totalorder %v5642_v9, 2  ;;  %vm5644_vm7 = vcmp.eq.s32.totalorder %v5642_v9, 0  ;;  %v2378_v20 = vclz %v7217_v21  ;;  %v2453_v34 = vsel %vm2447_vm0, %v2450_v22, %v2452_v48 }
 0x2ca   :  { %vm2301_vm8 = vcmp.lt.s32.totalorder %v2300_v50, 2  ;;  %vm5647_vm9 = vcmp.eq.s32.totalorder %v5642_v9, 2  ;;  %v2472_v15 = vadd.s32 1, %v9804_v29  ;;  %v7224_v59 = vadd.s32 4294967169, %v2522_v47 }
 0x2cb   :  { %vm2302_vm10 = vcmp.eq.s32.totalorder %v2300_v50, 0  ;;  %vm2305_vm11 = vcmp.eq.s32.totalorder %v2300_v50, 2  ;;  %v2366_v14 = vadd.s32 %v9731_v2, %v9727_v52  ;;  %v7218_v31 = vadd.s32 4294967294, %v2378_v20  ;;  %v11091_v20 = vld [vmem:[#allocation6_spill] sm:$0xff] }
 0x2cc   :  { %v2397_v3 = vsel %vm2312_vm4, %v2396_v58, %v2372_v46  ;;  %v2469_v23 = vmul.u32 %v2462_v53, %v2453_v34  ;;  %vm2471_vm12 = vc.u32 %v9811_v16, %v9803_v28  ;;  %v2528_v49 = vadd.s32 1, %v7224_v59 }
 0x2cd   :  { %v7612_v44 = vpop.eup %7611  ;;  %vm7219_vm13 = vcmp.lt.s32.totalorder %v7218_v31, 0  ;;  %v2473_v30 = vsel %vm2471_vm12, %v2472_v15, %v9804_v29  ;;  %v2525_v0 = vand.u32 8388607, %v2518_v57  ;;  %vm9841_vm15 = vcmp.le.f32.partialorder %v2310_v8, 0.7853982 }
 0x2ce   :  { %v7614_v33 = vpop.eup %7613  ;;  %v2306_v11 = vxor.u32 2147483648, %v7612_v44  ;;  %v2381_v52 = vsel %vm7219_vm13, 0, %v7218_v31  ;;  %v2474_v2 = vadd.s32 %v2473_v30, %v2469_v23  ;;  %vm2529_vm14 = vcmp.gt.s32.totalorder %v2528_v49, 0 }
 0x2cf   :  { %v2303_v51 = vxor.u32 2147483648, %v7614_v33  ;;  %v2382_v46 = vsub.s32 32, %v2381_v52  ;;  %v2383_v17 = vshll.u32 %v9790_v19, %v2381_v52  ;;  %v2386_v62 = vsub.s32 4294967266, %v2381_v52 }
 0x2d0   :  { %v2307_v32 = vsel %vm2305_vm11, %v2306_v11, %v7614_v33  ;;  %v5649_v39 = vsel %vm5647_vm9, %v2306_v11, %v7614_v33  ;;  %v2475_v53 = vadd.s32 536870912, %v2474_v2  ;;  %v2530_v43 = vsel %vm2529_vm14, %v2528_v49, 0 }
 0x2d1   :  { %v2304_v18 = vsel %vm2302_vm10, %v7612_v44, %v2303_v51  ;;  %v5646_v10 = vsel %vm5644_vm7, %v7612_v44, %v2303_v51  ;;  %v2384_v7 = vshrl.u32 %v2366_v14, %v2382_v46  ;;  %v2387_v19 = vadd.s32 127, %v2386_v62 }
 0x2d2   :  { %v2308_v56 = vsel %vm2301_vm8, %v2304_v18, %v2307_v32  ;;  %v5650_v12 = vsel %vm5643_vm6, %v5646_v10, %v5649_v39  ;;  %v9837_v36 = vshrl.u32 %v2475_v53, 30  ;;  %v2532_v9 = vand.u32 31, %v2530_v43 }
 0x2d3   :  { %v2309_v55 = vsel %vm2298_vm5, nan, %v2308_v56  ;;  %v5651_v54 = vsel %vm2298_vm5, nan, %v5650_v12  ;;  %v395_v41 = vmul.f32 %v9469_v1, %v328_v42  ;;  %v2385_v50 = vor.u32 %v2384_v7, %v2383_v17 }
 0x2d4   :  { %3783 = vst [vmem:[#allocation2 + $0x110] sm:$0xff] %v2309_v55  ;;  %7111 = vst [vmem:[#allocation2 + $0x118] sm:$0xff] %v5651_v54  ;;  %v2388_v5 = vshll.u32 %v2387_v19, 23  ;;  %v2399_v25 = vsel %vm9841_vm15, 0, %v2397_v3  ;;  %v2477_v22 = vshll.u32 %v9837_v36, 30  ;;  %v2526_v4 = vor.u32 8388608, %v2525_v0 }
 0x2d5   :  { %v2533_v48 = vsub.s32 32, %v2532_v9  ;;  %v9849_v21 = vadd.s32 3, %v2399_v25  ;;  %v9851_v8 = vand.u32 3, %v2399_v25  ;;  %v2392_v6 = vcvt.s32.f32 %v2385_v50 }
 0x2d6   :  { %v2389_v61 = vor.u32 4788187, %v2388_v5  ;;  %v2478_v29 = vsub.s32 %v2474_v2, %v2477_v22  ;;  %v9854_v1 = vadd.f32 %v395_v41, %v11091_v20  ;;  %v2470_v34 = vadd.s32 %v9803_v28, %v9811_v16 }
 0x2d7   :  { %v9858_v15 = vshrl.u32 %v2530_v43, 5  ;;  %v2536_v59 = vshrl.u32 %v11042_v38, %v2533_v48  ;;  %v9861_v14 = vshll.u32 %v2526_v4, 8  ;;  %v2539_v3 = vshrl.u32 %v11043_v13, %v2533_v48 }
 0x2d8   :  { %v2390_v58 = vand.u32 2147483647, %v2389_v61  ;;  %v2480_v47 = vsub.s32 0, %v2478_v29  ;;  %v2542_v23 = vshrl.u32 %v11044_v37, %v2533_v48  ;;  %v2500_v49 = vsub.s32 4, %v9837_v36 }
 0x2d9   :  { %v2535_v33 = vshll.u32 %v11041_v40, %v2532_v9  ;;  %v2538_v11 = vshll.u32 %v11042_v38, %v2532_v9  ;;  %v2545_v28 = vshrl.u32 %v11045_v35, %v2533_v48  ;;  %v2534_v0 = vshrl.u32 %v11041_v40, %v2533_v48 }
 0x2da   :  { %v2393_v31 = vmul.f32 %v2392_v6, %v2390_v58  ;;  %v7221_v44 = vmin.u32 %v2480_v47, %v2478_v29  ;;  %v2541_v51 = vshll.u32 %v11043_v13, %v2532_v9  ;;  %v2544_v2 = vshll.u32 %v11044_v37, %v2532_v9 }
 0x2db   :  { %v2537_v52 = vor.u32 %v2536_v59, %v2535_v33  ;;  %v2547_v32 = vshll.u32 %v11045_v35, %v2532_v9  ;;  %v2548_v39 = vshrl.u32 %v11046_v24, %v2533_v48  ;;  %vm2416_vm1 = vcmp.lt.s32.totalorder %v9634_v26, 0 }
 0x2dc   :  { %v2394_v16 = vxor.u32 2147483648, %v2393_v31  ;;  %v2482_v30 = vclz %v7221_v44  ;;  %v2540_v18 = vor.u32 %v2539_v3, %v2538_v11  ;;  %v2543_v10 = vor.u32 %v2542_v23, %v2541_v51  ;;  %v332_v11 = vpop.permute.xlu1 %331 }
 0x2dd   :  { %v2546_v53 = vor.u32 %v2545_v28, %v2544_v2  ;;  %v2549_v42 = vor.u32 %v2548_v39, %v2547_v32  ;;  %vm2550_vm2 = vcmp.lt.s32.totalorder %v9858_v15, 1  ;;  %vm2551_vm3 = vcmp.lt.s32.totalorder %v9858_v15, 2 }
 0x2de   :  { %v2395_v46 = vsel %vm2312_vm4, %v2394_v16, %v2393_v31  ;;  %v7222_v17 = vadd.s32 4294967294, %v2482_v30  ;;  %vm2552_vm5 = vcmp.lt.s32.totalorder %v9858_v15, 3  ;;  %vm2553_vm4 = vcmp.lt.s32.totalorder %v9858_v15, 4  ;;  %v9929_v15 = vld [vmem:[%s11012_s1 + $0x1] ss:$0 sm:$0xff] }
 0x2df   :  { %v2398_v62 = vsel %vm9841_vm15, %v9615_v60, %v2395_v46  ;;  %v2554_v12 = vsel %vm2550_vm2, %v2534_v0, %v2537_v52  ;;  %v2555_v55 = vsel %vm2553_vm4, %v2543_v10, 2102212464  ;;  %v2558_v54 = vsel %vm2550_vm2, %v2537_v52, %v2540_v18 }
 0x2e0   :  { %7615 = vcosq.f32 %v2398_v62  ;;  %vm7223_vm0 = vcmp.lt.s32.totalorder %v7222_v17, 0  ;;  %v2559_v27 = vsel %vm2553_vm4, %v2546_v53, 920167782  ;;  %v2562_v9 = vsel %vm2550_vm2, %v2540_v18, %v2543_v10 }
 0x2e1   :  { %7617 = vsinq.f32 %v2398_v62  ;;  %v2485_v56 = vsel %vm7223_vm0, 0, %v7222_v17  ;;  %v2563_v41 = vsel %vm2553_vm4, %v2549_v42, 1326507024  ;;  %v2560_v25 = vsel %vm2552_vm5, %v2543_v10, %v2559_v27 }
 0x2e2   :  { %v2486_v7 = vsub.s32 32, %v2485_v56  ;;  %v2490_v43 = vsub.s32 4294967266, %v2485_v56  ;;  %v2487_v19 = vshll.u32 %v2478_v29, %v2485_v56  ;;  %v2564_v22 = vsel %vm2552_vm5, %v2546_v53, %v2563_v41 }
 0x2e3   :  { %v2556_v4 = vsel %vm2552_vm5, %v2540_v18, %v2555_v55  ;;  %v2561_v48 = vsel %vm2551_vm3, %v2558_v54, %v2560_v25  ;;  %v2565_v61 = vsel %vm2551_vm3, %v2562_v9, %v2564_v22  ;;  %v2625_v29 = vand.u32 2139095040, %v9854_v1 }
 0x2e4   :  { %v2488_v50 = vshrl.u32 %v2470_v34, %v2486_v7  ;;  %v2491_v5 = vadd.s32 127, %v2490_v43  ;;  %v9896_v47 = vmul.u32.u64.low %v9861_v14, %v2565_v61  ;;  %v9897_v20 = vmul.u32.u64.high %v9861_v14, %v2565_v61, %v9896_v47  ;;  %v11094_v7 = vld [vmem:[#allocation9_spill] sm:$0xff] }
 0x2e5   :  { %v2501_v34 = vsel %vm2416_vm1, %v2500_v49, %v9837_v36  ;;  %v9903_v59 = vmul.u32.u64.low %v9861_v14, %v2561_v48  ;;  %v9904_v31 = vmul.u32.u64.high %v9861_v14, %v2561_v48, %v9903_v59  ;;  %v2626_v44 = vshrl.u32 %v2625_v29, 23 }
 0x2e6   :  { %v2489_v58 = vor.u32 %v2488_v50, %v2487_v19  ;;  %v2492_v6 = vshll.u32 %v2491_v5, 23  ;;  %v2404_v3 = vand.u32 3, %v9849_v21  ;;  %vm9910_vm6 = vcmp.le.f32.partialorder %v2414_v63, 0.7853982  ;;  %v336_v5 = vpop.permute.xlu0 %335 }
 0x2e7   :  { %vm5746_vm7 = vcmp.lt.s32.totalorder %v9851_v8, 2  ;;  %vm5747_vm8 = vcmp.eq.s32.totalorder %v9851_v8, 0  ;;  %vm5750_vm9 = vcmp.eq.s32.totalorder %v9851_v8, 2  ;;  %v2557_v36 = vsel %vm2551_vm3, %v2554_v12, %v2556_v4 }
 0x2e8   :  { %v2493_v33 = vor.u32 4788187, %v2492_v6  ;;  %v7228_v49 = vadd.s32 4294967169, %v2626_v44  ;;  %vm2402_vm10 = vweird.f32 %v9615_v60  ;;  %v2496_v28 = vcvt.s32.f32 %v2489_v58 }
 0x2e9   :  { %v2503_v63 = vsel %vm9910_vm6, 0, %v2501_v34  ;;  %vm2575_vm11 = vc.u32 %v9897_v20, %v9903_v59  ;;  %v2576_v16 = vadd.s32 1, %v9904_v31  ;;  %v2622_v30 = vand.u32 2147483647, %v9854_v1 }
 0x2ea   :  { %v2494_v21 = vand.u32 2147483647, %v2493_v33  ;;  %v2632_v0 = vadd.s32 1, %v7228_v49  ;;  %v396_v51 = vmul.f32 %v9929_v15, %v332_v11  ;;  %vm2405_vm12 = vcmp.lt.s32.totalorder %v2404_v3, 2 }
 0x2eb   :  { %vm2406_vm13 = vcmp.eq.s32.totalorder %v2404_v3, 0  ;;  %v2573_v2 = vmul.u32 %v9861_v14, %v2557_v36  ;;  %vm2409_vm14 = vcmp.eq.s32.totalorder %v2404_v3, 2  ;;  %v2507_v39 = vadd.s32 3, %v2503_v63 }
 0x2ec   :  { %v2497_v52 = vmul.f32 %v2496_v28, %v2494_v21  ;;  %v2577_v46 = vsel %vm2575_vm11, %v2576_v16, %v9904_v31  ;;  %vm2633_vm15 = vcmp.gt.s32.totalorder %v2632_v0, 0  ;;  %v2629_v56 = vand.u32 8388607, %v2622_v30 }
 0x2ed   :  { %v7616_v32 = vpop.eup %7615  ;;  %v2578_v62 = vadd.s32 %v2577_v46, %v2573_v2  ;;  %v2634_v53 = vsel %vm2633_vm15, %v2632_v0, 0  ;;  %v9937_v43 = vadd.f32 %v396_v51, %v11094_v7  ;;  %v9956_v29 = vand.u32 3, %v2503_v63 }
 0x2ee   :  { %v7618_v17 = vpop.eup %7617  ;;  %v2410_v18 = vxor.u32 2147483648, %v7616_v32  ;;  %v2498_v10 = vxor.u32 2147483648, %v2497_v52  ;;  %v2636_v12 = vand.u32 31, %v2634_v53  ;;  %v9960_v47 = vmul.f32 %v9929_v15, %v336_v5 }
 0x2ef   :  { %v2407_v42 = vxor.u32 2147483648, %v7618_v17  ;;  %v2579_v19 = vadd.s32 536870912, %v2578_v62  ;;  %v9962_v8 = vand.u32 3, %v2507_v39  ;;  %v2630_v34 = vor.u32 8388608, %v2629_v56 }
 0x2f0   :  { %v2411_v14 = vsel %vm2409_vm14, %v2410_v18, %v7618_v17  ;;  %v5752_v55 = vsel %vm5750_vm9, %v2410_v18, %v7618_v17  ;;  %v2499_v54 = vsel %vm2416_vm1, %v2498_v10, %v2497_v52  ;;  %v2637_v50 = vsub.s32 32, %v2636_v12 }
 0x2f1   :  { %v2408_v27 = vsel %vm2406_vm13, %v7616_v32, %v2407_v42  ;;  %v5749_v9 = vsel %vm5747_vm8, %v7616_v32, %v2407_v42  ;;  %v2502_v41 = vsel %vm9910_vm6, %v9634_v26, %v2499_v54  ;;  %v2580_v4 = vshrl.u32 %v2579_v19, 30 }
 0x2f2   :  { %v2412_v25 = vsel %vm2405_vm12, %v2408_v27, %v2411_v14  ;;  %v5753_v22 = vsel %vm5746_vm7, %v5749_v9, %v5752_v55  ;;  %7619 = vcosq.f32 %v2502_v41  ;;  %v2640_v6 = vshrl.u32 %v11042_v38, %v2637_v50 }
 0x2f3   :  { %v2413_v48 = vsel %vm2402_vm10, nan, %v2412_v25  ;;  %v5754_v61 = vsel %vm2402_vm10, nan, %v5753_v22  ;;  %7621 = vsinq.f32 %v2502_v41  ;;  %v2581_v58 = vshll.u32 %v2580_v4, 30 }
 0x2f4   :  { %3784 = vst [vmem:[#allocation2 + $0x120] sm:$0xff] %v2413_v48  ;;  %7112 = vst [vmem:[#allocation2 + $0x128] sm:$0xff] %v5754_v61  ;;  %v2643_v31 = vshrl.u32 %v11043_v13, %v2637_v50  ;;  %v2646_v44 = vshrl.u32 %v11044_v37, %v2637_v50  ;;  %vm2520_vm1 = vcmp.lt.s32.totalorder %v9742_v45, 0  ;;  %v2639_v3 = vshll.u32 %v11041_v40, %v2636_v12 }
 0x2f5   :  { %v9967_v60 = vsub.s32 %v2578_v62, %v2581_v58  ;;  %v2642_v23 = vshll.u32 %v11042_v38, %v2636_v12  ;;  %v2726_v33 = vand.u32 2147483647, %v9937_v43  ;;  %v2645_v11 = vshll.u32 %v11043_v13, %v2636_v12 }
 0x2f6   :  { %v2648_v36 = vshll.u32 %v11044_v37, %v2636_v12  ;;  %v2649_v49 = vshrl.u32 %v11045_v35, %v2637_v50  ;;  %v2729_v21 = vand.u32 2139095040, %v9937_v43  ;;  %v2635_v63 = vshrl.u32 %v2634_v53, 5 }
 0x2f7   :  { %v2584_v28 = vsub.s32 0, %v9967_v60  ;;  %v2641_v16 = vor.u32 %v2640_v6, %v2639_v3  ;;  %v2644_v0 = vor.u32 %v2643_v31, %v2642_v23  ;;  %vm2513_vm2 = vcmp.eq.s32.totalorder %v9962_v8, 2 }
 0x2f8   :  { %vm5853_vm0 = vcmp.eq.s32.totalorder %v9956_v29, 2  ;;  %v2647_v51 = vor.u32 %v2646_v44, %v2645_v11  ;;  %v2650_v52 = vor.u32 %v2649_v49, %v2648_v36  ;;  %v2651_v2 = vshll.u32 %v11045_v35, %v2636_v12 }
 0x2f9   :  { %v2652_v32 = vshrl.u32 %v11046_v24, %v2637_v50  ;;  %vm2510_vm3 = vcmp.eq.s32.totalorder %v9962_v8, 0  ;;  %vm5850_vm5 = vcmp.eq.s32.totalorder %v9956_v29, 0  ;;  %v2574_v39 = vadd.s32 %v9903_v59, %v9897_v20 }
 0x2fa   :  { %v7225_v46 = vmin.u32 %v2584_v28, %v9967_v60  ;;  %v9986_v17 = vshll.u32 %v2630_v34, 8  ;;  %v9990_v18 = vand.u32 8388607, %v2726_v33  ;;  %vm2509_vm4 = vcmp.lt.s32.totalorder %v9962_v8, 2 }
 0x2fb   :  { %vm5849_vm6 = vcmp.lt.s32.totalorder %v9956_v29, 2  ;;  %v2604_v10 = vsub.s32 4, %v2580_v4  ;;  %v2638_v62 = vshrl.u32 %v11041_v40, %v2637_v50  ;;  %v2653_v53 = vor.u32 %v2652_v32, %v2651_v2 }
 0x2fc   :  { %v2730_v42 = vshrl.u32 %v2729_v21, 23  ;;  %vm2506_vm7 = vweird.f32 %v9634_v26  ;;  %v2586_v20 = vclz %v7225_v46  ;;  %vm2654_vm8 = vcmp.lt.s32.totalorder %v2635_v63, 1 }
 0x2fd   :  { %vm2656_vm9 = vcmp.lt.s32.totalorder %v2635_v63, 3  ;;  %vm2657_vm10 = vcmp.lt.s32.totalorder %v2635_v63, 4  ;;  %v2658_v59 = vsel %vm2654_vm8, %v2638_v62, %v2641_v16  ;;  %v2662_v12 = vsel %vm2654_vm8, %v2641_v16, %v2644_v0  ;;  %v11097_v62 = vld [vmem:[#allocation8_spill] sm:$0xff] }
 0x2fe   :  { %v2659_v56 = vsel %vm2657_vm10, %v2647_v51, 2102212464  ;;  %v2663_v7 = vsel %vm2657_vm10, %v2650_v52, 920167782  ;;  %v7226_v14 = vadd.s32 4294967294, %v2586_v20  ;;  %v2666_v19 = vsel %vm2654_vm8, %v2644_v0, %v2647_v51 }
 0x2ff   :  { %v2660_v55 = vsel %vm2656_vm9, %v2644_v0, %v2659_v56  ;;  %v2664_v54 = vsel %vm2656_vm9, %v2647_v51, %v2663_v7  ;;  %v7620_v27 = vpop.eup %7619  ;;  %v2605_v9 = vsel %vm2520_vm1, %v2604_v10, %v2580_v4  ;;  %vm2655_vm11 = vcmp.lt.s32.totalorder %v2635_v63, 2 }
 0x300   :  { %v2667_v41 = vsel %vm2657_vm10, %v2653_v53, 1326507024  ;;  %v7232_v50 = vadd.s32 4294967169, %v2730_v42  ;;  %v7622_v5 = vpop.eup %7621  ;;  %v2514_v25 = vxor.u32 2147483648, %v7620_v27  ;;  %vm7227_vm12 = vcmp.lt.s32.totalorder %v7226_v14, 0 }
 0x301   :  { %v2661_v22 = vsel %vm2655_vm11, %v2658_v59, %v2660_v55  ;;  %v2668_v48 = vsel %vm2656_vm9, %v2650_v52, %v2667_v41  ;;  %v2511_v61 = vxor.u32 2147483648, %v7622_v5  ;;  %v2589_v58 = vsel %vm7227_vm12, 0, %v7226_v14 }
 0x302   :  { %v2665_v6 = vsel %vm2655_vm11, %v2662_v12, %v2664_v54  ;;  %v2669_v34 = vsel %vm2655_vm11, %v2666_v19, %v2668_v48  ;;  %v2515_v31 = vsel %vm2513_vm2, %v2514_v25, %v7622_v5  ;;  %v5855_v44 = vsel %vm5853_vm0, %v2514_v25, %v7622_v5 }
 0x303   :  { %v2590_v4 = vsub.s32 32, %v2589_v58  ;;  %v2734_v3 = vor.u32 8388608, %v9990_v18  ;;  %v2512_v23 = vsel %vm2510_vm3, %v7620_v27, %v2511_v61  ;;  %v5852_v11 = vsel %vm5850_vm5, %v7620_v27, %v2511_v61 }
 0x304   :  { %v2594_v36 = vsub.s32 4294967266, %v2589_v58  ;;  %v2736_v49 = vadd.s32 1, %v7232_v50  ;;  %v2516_v21 = vsel %vm2509_vm4, %v2512_v23, %v2515_v31  ;;  %v5856_v28 = vsel %vm5849_vm6, %v5852_v11, %v5855_v44 }
 0x305   :  { %v2591_v63 = vshll.u32 %v9967_v60, %v2589_v58  ;;  %v2592_v16 = vshrl.u32 %v2574_v39, %v2590_v4  ;;  %v2517_v0 = vsel %vm2506_vm7, nan, %v2516_v21  ;;  %v5857_v51 = vsel %vm2506_vm7, nan, %v5856_v28 }
 0x306   :  { %v2595_v52 = vadd.s32 127, %v2594_v36  ;;  %vm2737_vm13 = vcmp.gt.s32.totalorder %v2736_v49, 0  ;;  %3785 = vst [vmem:[#allocation2 + $0x130] sm:$0xff] %v2517_v0  ;;  %7113 = vst [vmem:[#allocation2 + $0x138] sm:$0xff] %v5857_v51  ;;  %v10020_v8 = vmul.u32.u64.low %v9986_v17, %v2669_v34  ;;  %v10021_v32 = vmul.u32.u64.high %v9986_v17, %v2669_v34, %v10020_v8 }
 0x307   :  { %v2593_v2 = vor.u32 %v2592_v16, %v2591_v63  ;;  %v2738_v29 = vsel %vm2737_vm13, %v2736_v49, 0  ;;  %v10024_v60 = vmul.u32.u64.low %v9986_v17, %v2665_v6  ;;  %v10025_v39 = vmul.u32.u64.high %v9986_v17, %v2665_v6, %v10024_v60 }
 0x308   :  { %v2596_v46 = vshll.u32 %v2595_v52, 23  ;;  %v10028_v18 = vshrl.u32 %v2738_v29, 5  ;;  %vm10032_vm14 = vcmp.le.f32.partialorder %v2518_v57, 0.7853982  ;;  %v2740_v10 = vand.u32 31, %v2738_v29 }
 0x309   :  { %v10038_v53 = vadd.f32 %v9960_v47, %v11097_v62  ;;  %v2607_v20 = vsel %vm10032_vm14, 0, %v2605_v9  ;;  %v2677_v59 = vmul.u32 %v9986_v17, %v2661_v22  ;;  %v10043_v56 = vshll.u32 %v2734_v3, 8 }
 0x30a   :  { %v2597_v42 = vor.u32 4788187, %v2596_v46  ;;  %v2600_v12 = vcvt.s32.f32 %v2593_v2  ;;  %vm2679_vm15 = vc.u32 %v10021_v32, %v10024_v60  ;;  %v2741_v57 = vsub.s32 32, %v2740_v10 }
 0x30b   :  { %vm2758_vm2 = vcmp.lt.s32.totalorder %v10028_v18, 1  ;;  %v2680_v14 = vadd.s32 1, %v10025_v39  ;;  %v2743_v47 = vshll.u32 %v11041_v40, %v2740_v10  ;;  %v2746_v55 = vshll.u32 %v11042_v38, %v2740_v10 }
 0x30c   :  { %v2598_v7 = vand.u32 2147483647, %v2597_v42  ;;  %v2744_v54 = vshrl.u32 %v11042_v38, %v2741_v57  ;;  %v2747_v17 = vshrl.u32 %v11043_v13, %v2741_v57  ;;  %v2749_v19 = vshll.u32 %v11043_v13, %v2740_v10 }
 0x30d   :  { %v2750_v27 = vshrl.u32 %v11044_v37, %v2741_v57  ;;  %v2681_v41 = vsel %vm2679_vm15, %v2680_v14, %v10025_v39  ;;  %v2752_v50 = vshll.u32 %v11044_v37, %v2740_v10  ;;  %v2753_v5 = vshrl.u32 %v11045_v35, %v2741_v57 }
 0x30e   :  { %v2601_v9 = vmul.f32 %v2600_v12, %v2598_v7  ;;  %v2682_v25 = vadd.s32 %v2681_v41, %v2677_v59  ;;  %v2745_v22 = vor.u32 %v2744_v54, %v2743_v47  ;;  %v2748_v48 = vor.u32 %v2747_v17, %v2746_v55  ;;  %v340_v55 = vpop.permute.xlu1 %339 }
 0x30f   :  { %v2751_v61 = vor.u32 %v2750_v27, %v2749_v19  ;;  %v2754_v6 = vor.u32 %v2753_v5, %v2752_v50  ;;  %v2755_v34 = vshll.u32 %v11045_v35, %v2740_v10  ;;  %v2756_v31 = vshrl.u32 %v11046_v24, %v2741_v57 }
 0x310   :  { %v2602_v58 = vxor.u32 2147483648, %v2601_v9  ;;  %v2683_v44 = vadd.s32 536870912, %v2682_v25  ;;  %vm2759_vm0 = vcmp.lt.s32.totalorder %v10028_v18, 2  ;;  %vm2761_vm3 = vcmp.lt.s32.totalorder %v10028_v18, 4 }
 0x311   :  { %v2766_v4 = vsel %vm2758_vm2, %v2745_v22, %v2748_v48  ;;  %v2757_v23 = vor.u32 %v2756_v31, %v2755_v34  ;;  %vm2760_vm5 = vcmp.lt.s32.totalorder %v10028_v18, 3  ;;  %v2767_v11 = vsel %vm2761_vm3, %v2754_v6, 920167782 }
 0x312   :  { %v2603_v3 = vsel %vm2520_vm1, %v2602_v58, %v2601_v9  ;;  %v2684_v49 = vshrl.u32 %v2683_v44, 30  ;;  %v2742_v21 = vshrl.u32 %v11041_v40, %v2741_v57  ;;  %v2768_v28 = vsel %vm2760_vm5, %v2751_v61, %v2767_v11 }
 0x313   :  { %v2606_v36 = vsel %vm10032_vm14, %v9742_v45, %v2603_v3  ;;  %v2763_v63 = vsel %vm2761_vm3, %v2751_v61, 2102212464  ;;  %v2769_v16 = vsel %vm2759_vm0, %v2766_v4, %v2768_v28  ;;  %v2770_v0 = vsel %vm2758_vm2, %v2748_v48, %v2751_v61 }
 0x314   :  { %7623 = vcosq.f32 %v2606_v36  ;;  %v2611_v51 = vadd.s32 3, %v2607_v20  ;;  %v2685_v52 = vshll.u32 %v2684_v49, 30  ;;  %v2771_v2 = vsel %vm2761_vm3, %v2757_v23, 1326507024 }
 0x315   :  { %7625 = vsinq.f32 %v2606_v36  ;;  %v2762_v8 = vsel %vm2758_vm2, %v2742_v21, %v2745_v22  ;;  %v2772_v29 = vsel %vm2760_vm5, %v2754_v6, %v2771_v2  ;;  %v2764_v10 = vsel %vm2760_vm5, %v2748_v48, %v2763_v63  ;;  %v11100_v36 = vld [vmem:[#allocation11_spill] sm:$0xff] }
 0x316   :  { %v10088_v46 = vmul.u32.u64.low %v10043_v56, %v2769_v16  ;;  %v10089_v39 = vmul.u32.u64.high %v10043_v56, %v2769_v16, %v10088_v46  ;;  %v10092_v26 = vsub.s32 %v2682_v25, %v2685_v52  ;;  %v2773_v62 = vsel %vm2759_vm0, %v2770_v0, %v2772_v29 }
 0x317   :  { %v2833_v42 = vand.u32 2139095040, %v10038_v53  ;;  %v2708_v59 = vsub.s32 4, %v2684_v49  ;;  %v10100_v12 = vmul.u32.u64.low %v10043_v56, %v2773_v62  ;;  %v10101_v57 = vmul.u32.u64.high %v10043_v56, %v2773_v62, %v10100_v12 }
 0x318   :  { %v5951_v7 = vand.u32 3, %v2607_v20  ;;  %v2688_v14 = vsub.s32 0, %v10092_v26  ;;  %v2765_v54 = vsel %vm2759_vm0, %v2762_v8, %v2764_v10  ;;  %v2784_v17 = vadd.s32 1, %v10089_v39 }
 0x319   :  { %v2834_v47 = vshrl.u32 %v2833_v42, 23  ;;  %v2612_v19 = vand.u32 3, %v2611_v51  ;;  %vm10109_vm1 = vcmp.le.f32.partialorder %v2622_v30, 0.7853982  ;;  %vm2624_vm4 = vcmp.lt.s32.totalorder %v9854_v1, 0 }
 0x31a   :  { %v7229_v20 = vmin.u32 %v2688_v14, %v10092_v26  ;;  %v2709_v9 = vsel %vm2624_vm4, %v2708_v59, %v2684_v49  ;;  %vm2783_vm6 = vc.u32 %v10101_v57, %v10088_v46  ;;  %v398_v41 = vmul.f32 %v9929_v15, %v340_v55 }
 0x31b   :  { %v7236_v18 = vadd.s32 4294967169, %v2834_v47  ;;  %vm5952_vm7 = vcmp.lt.s32.totalorder %v5951_v7, 2  ;;  %v2781_v30 = vmul.u32 %v10043_v56, %v2765_v54  ;;  %v2830_v5 = vand.u32 2147483647, %v10038_v53 }
 0x31c   :  { %v2690_v50 = vclz %v7229_v20  ;;  %vm2610_vm8 = vweird.f32 %v9742_v45  ;;  %vm5953_vm9 = vcmp.eq.s32.totalorder %v5951_v7, 0  ;;  %vm5956_vm10 = vcmp.eq.s32.totalorder %v5951_v7, 2 }
 0x31d   :  { %v2785_v25 = vsel %vm2783_vm6, %v2784_v17, %v10089_v39  ;;  %v2840_v22 = vadd.s32 1, %v7236_v18  ;;  %vm2613_vm11 = vcmp.lt.s32.totalorder %v2612_v19, 2  ;;  %v2711_v61 = vsel %vm10109_vm1, 0, %v2709_v9 }
 0x31e   :  { %v7230_v48 = vadd.s32 4294967294, %v2690_v50  ;;  %v2786_v58 = vadd.s32 %v2785_v25, %v2781_v30  ;;  %vm2614_vm12 = vcmp.eq.s32.totalorder %v2612_v19, 0  ;;  %vm2617_vm13 = vcmp.eq.s32.totalorder %v2612_v19, 2 }
 0x31f   :  { %v2678_v56 = vadd.s32 %v10024_v60, %v10021_v32  ;;  %vm2841_vm14 = vcmp.gt.s32.totalorder %v2840_v22, 0  ;;  %v2837_v31 = vand.u32 8388607, %v2830_v5  ;;  %v2715_v11 = vadd.s32 3, %v2711_v61 }
 0x320   :  { %vm7231_vm15 = vcmp.lt.s32.totalorder %v7230_v48, 0  ;;  %v2787_v34 = vadd.s32 536870912, %v2786_v58  ;;  %v2842_v44 = vsel %vm2841_vm14, %v2840_v22, 0  ;;  %v10131_v49 = vadd.f32 %v398_v41, %v11100_v36 }
 0x321   :  { %v7624_v6 = vpop.eup %7623  ;;  %v2693_v23 = vsel %vm7231_vm15, 0, %v7230_v48  ;;  %v2844_v16 = vand.u32 31, %v2842_v44  ;;  %v2838_v42 = vor.u32 8388608, %v2837_v31  ;;  %v10148_v7 = vand.u32 3, %v2715_v11 }
 0x322   :  { %v7626_v4 = vpop.eup %7625  ;;  %v2618_v3 = vxor.u32 2147483648, %v7624_v6  ;;  %v2694_v28 = vsub.s32 32, %v2693_v23  ;;  %v2698_v63 = vsub.s32 4294967266, %v2693_v23  ;;  %v2695_v0 = vshll.u32 %v10092_v26, %v2693_v23 }
 0x323   :  { %v2615_v21 = vxor.u32 2147483648, %v7626_v4  ;;  %v10136_v51 = vshrl.u32 %v2787_v34, 30  ;;  %v2845_v55 = vsub.s32 32, %v2844_v16  ;;  %v2937_v54 = vand.u32 2139095040, %v10131_v49 }
 0x324   :  { %v2619_v32 = vsel %vm2617_vm13, %v2618_v3, %v7626_v4  ;;  %v5958_v60 = vsel %vm5956_vm10, %v2618_v3, %v7626_v4  ;;  %v2696_v8 = vshrl.u32 %v2678_v56, %v2694_v28  ;;  %v2699_v29 = vadd.s32 127, %v2698_v63 }
 0x325   :  { %v2616_v52 = vsel %vm2614_vm12, %v7624_v6, %v2615_v21  ;;  %v5955_v2 = vsel %vm5953_vm9, %v7624_v6, %v2615_v21  ;;  %v2789_v62 = vshll.u32 %v10136_v51, 30  ;;  %v10150_v19 = vand.u32 3, %v2711_v61 }
 0x326   :  { %v2620_v39 = vsel %vm2613_vm11, %v2616_v52, %v2619_v32  ;;  %v5959_v10 = vsel %vm5952_vm7, %v5955_v2, %v5958_v60  ;;  %v2697_v12 = vor.u32 %v2696_v8, %v2695_v0  ;;  %v2700_v14 = vshll.u32 %v2699_v29, 23 }
 0x327   :  { %v2621_v59 = vsel %vm2610_vm8, nan, %v2620_v39  ;;  %v5960_v26 = vsel %vm2610_vm8, nan, %v5959_v10  ;;  %v2790_v47 = vsub.s32 %v2786_v58, %v2789_v62  ;;  %v2782_v45 = vadd.s32 %v10088_v46, %v10101_v57 }
 0x328   :  { %3786 = vst [vmem:[#allocation2 + $0x140] sm:$0xff] %v2621_v59  ;;  %7114 = vst [vmem:[#allocation2 + $0x148] sm:$0xff] %v5960_v26  ;;  %v2701_v17 = vor.u32 4788187, %v2700_v14  ;;  %v2704_v18 = vcvt.s32.f32 %v2697_v12  ;;  %v10154_v41 = vshll.u32 %v2838_v42, 8  ;;  %v2848_v30 = vshrl.u32 %v11042_v38, %v2845_v55 }
 0x329   :  { %v2792_v20 = vsub.s32 0, %v2790_v47  ;;  %v2851_v25 = vshrl.u32 %v11043_v13, %v2845_v55  ;;  %v2938_v22 = vshrl.u32 %v2937_v54, 23  ;;  %v2812_v58 = vsub.s32 4, %v10136_v51 }
 0x32a   :  { %v2702_v9 = vand.u32 2147483647, %v2701_v17  ;;  %v2843_v56 = vshrl.u32 %v2842_v44, 5  ;;  %v2854_v61 = vshrl.u32 %v11044_v37, %v2845_v55  ;;  %v2846_v34 = vshrl.u32 %v11041_v40, %v2845_v55 }
 0x32b   :  { %v7233_v50 = vmin.u32 %v2792_v20, %v2790_v47  ;;  %v2847_v31 = vshll.u32 %v11041_v40, %v2844_v16  ;;  %v2850_v46 = vshll.u32 %v11042_v38, %v2844_v16  ;;  %v2853_v4 = vshll.u32 %v11043_v13, %v2844_v16 }
 0x32c   :  { %v2705_v48 = vmul.f32 %v2704_v18, %v2702_v9  ;;  %v2856_v3 = vshll.u32 %v11044_v37, %v2844_v16  ;;  %v2857_v23 = vshrl.u32 %v11045_v35, %v2845_v55  ;;  %v2860_v44 = vshrl.u32 %v11046_v24, %v2845_v55 }
 0x32d   :  { %v2794_v6 = vclz %v7233_v50  ;;  %v2849_v36 = vor.u32 %v2848_v30, %v2847_v31  ;;  %v2852_v21 = vor.u32 %v2851_v25, %v2850_v46  ;;  %vm2728_vm2 = vcmp.lt.s32.totalorder %v9937_v43, 0 }
 0x32e   :  { %v2706_v57 = vxor.u32 2147483648, %v2705_v48  ;;  %v2855_v63 = vor.u32 %v2854_v61, %v2853_v4  ;;  %v2858_v32 = vor.u32 %v2857_v23, %v2856_v3  ;;  %v2859_v60 = vshll.u32 %v11045_v35, %v2844_v16 }
 0x32f   :  { %v7234_v11 = vadd.s32 4294967294, %v2794_v6  ;;  %vm2862_vm3 = vcmp.lt.s32.totalorder %v2843_v56, 1  ;;  %vm2863_vm5 = vcmp.lt.s32.totalorder %v2843_v56, 2  ;;  %vm2864_vm6 = vcmp.lt.s32.totalorder %v2843_v56, 3 }
 0x330   :  { %v2707_v28 = vsel %vm2624_vm4, %v2706_v57, %v2705_v48  ;;  %v2861_v2 = vor.u32 %v2860_v44, %v2859_v60  ;;  %vm10176_vm4 = vcmp.le.f32.partialorder %v2726_v33, 0.7853982  ;;  %vm2865_vm7 = vcmp.lt.s32.totalorder %v2843_v56, 4 }
 0x331   :  { %v2710_v0 = vsel %vm10109_vm1, %v9854_v1, %v2707_v28  ;;  %vm7235_vm0 = vcmp.lt.s32.totalorder %v7234_v11, 0  ;;  %v2867_v27 = vsel %vm2865_vm7, %v2855_v63, 2102212464  ;;  %v2870_v10 = vsel %vm2862_vm3, %v2849_v36, %v2852_v21 }
 0x332   :  { %7627 = vcosq.f32 %v2710_v0  ;;  %v2797_v52 = vsel %vm7235_vm0, 0, %v7234_v11  ;;  %v2871_v62 = vsel %vm2865_vm7, %v2858_v32, 920167782  ;;  %v2874_v12 = vsel %vm2862_vm3, %v2852_v21, %v2855_v63 }
 0x333   :  { %7629 = vsinq.f32 %v2710_v0  ;;  %v2798_v29 = vsub.s32 32, %v2797_v52  ;;  %v2802_v16 = vsub.s32 4294967266, %v2797_v52  ;;  %v2799_v39 = vshll.u32 %v2790_v47, %v2797_v52 }
 0x334   :  { %v2872_v26 = vsel %vm2864_vm6, %v2855_v63, %v2871_v62  ;;  %v2866_v14 = vsel %vm2862_vm3, %v2846_v34, %v2849_v36  ;;  %v2875_v55 = vsel %vm2865_vm7, %v2861_v2, 1326507024  ;;  %v7240_v54 = vadd.s32 4294967169, %v2938_v22 }
 0x335   :  { %v2800_v42 = vshrl.u32 %v2782_v45, %v2798_v29  ;;  %v2803_v59 = vadd.s32 127, %v2802_v16  ;;  %v2873_v33 = vsel %vm2863_vm5, %v2870_v10, %v2872_v26  ;;  %v2868_v47 = vsel %vm2864_vm6, %v2852_v21, %v2867_v27 }
 0x336   :  { %v2876_v9 = vsel %vm2864_vm6, %v2858_v32, %v2875_v55  ;;  %v10189_v45 = vmul.u32.u64.low %v10154_v41, %v2873_v33  ;;  %v10190_v50 = vmul.u32.u64.high %v10154_v41, %v2873_v33, %v10189_v45  ;;  %v2944_v30 = vadd.s32 1, %v7240_v54 }
 0x337   :  { %v2801_v17 = vor.u32 %v2800_v42, %v2799_v39  ;;  %v2804_v20 = vshll.u32 %v2803_v59, 23  ;;  %v2877_v18 = vsel %vm2863_vm5, %v2874_v12, %v2876_v9  ;;  %v2813_v48 = vsel %vm2728_vm2, %v2812_v58, %v10136_v51 }
 0x338   :  { %v10197_v22 = vmul.u32.u64.low %v10154_v41, %v2877_v18  ;;  %v10198_v61 = vmul.u32.u64.high %v10154_v41, %v2877_v18, %v10197_v22  ;;  %vm6056_vm1 = vcmp.eq.s32.totalorder %v10150_v19, 0  ;;  %v2869_v6 = vsel %vm2863_vm5, %v2866_v14, %v2868_v47 }
 0x339   :  { %v2805_v25 = vor.u32 4788187, %v2804_v20  ;;  %v2934_v34 = vand.u32 2147483647, %v10131_v49  ;;  %vm2945_vm8 = vcmp.gt.s32.totalorder %v2944_v30, 0  ;;  %vm6055_vm9 = vcmp.lt.s32.totalorder %v10150_v19, 2 }
 0x33a   :  { %vm6059_vm10 = vcmp.eq.s32.totalorder %v10150_v19, 2  ;;  %v2808_v46 = vcvt.s32.f32 %v2801_v17  ;;  %v2946_v57 = vsel %vm2945_vm8, %v2944_v30, 0  ;;  %vm2714_vm11 = vweird.f32 %v9854_v1 }
 0x33b   :  { %v2806_v31 = vand.u32 2147483647, %v2805_v25  ;;  %vm2717_vm12 = vcmp.lt.s32.totalorder %v10148_v7, 2  ;;  %v2815_v51 = vsel %vm10176_vm4, 0, %v2813_v48  ;;  %v2888_v58 = vadd.s32 1, %v10190_v50 }
 0x33c   :  { %v2948_v56 = vand.u32 31, %v2946_v57  ;;  %vm2718_vm13 = vcmp.eq.s32.totalorder %v10148_v7, 0  ;;  %v2885_v3 = vmul.u32 %v10154_v41, %v2869_v6  ;;  %vm2887_vm14 = vc.u32 %v10198_v61, %v10189_v45 }
 0x33d   :  { %v2809_v4 = vmul.f32 %v2808_v46, %v2806_v31  ;;  %vm2721_vm15 = vcmp.eq.s32.totalorder %v10148_v7, 2  ;;  %v2889_v23 = vsel %vm2887_vm14, %v2888_v58, %v10190_v50  ;;  %v10218_v11 = vand.u32 8388607, %v2934_v34  ;;  %v344_v50 = vpop.permute.xlu0 %343 }
 0x33e   :  { %v2949_v36 = vsub.s32 32, %v2948_v56  ;;  %v2819_v28 = vadd.s32 3, %v2815_v51  ;;  %v10220_v63 = vand.u32 3, %v2815_v51  ;;  %v2890_v32 = vadd.s32 %v2889_v23, %v2885_v3 }
 0x33f   :  { %v7628_v21 = vpop.eup %7627  ;;  %v2810_v44 = vxor.u32 2147483648, %v2809_v4  ;;  %v10222_v0 = vshrl.u32 %v2946_v57, 5  ;;  %v2951_v52 = vshll.u32 %v11041_v40, %v2948_v56  ;;  %v2957_v8 = vshll.u32 %v11043_v13, %v2948_v56 }
 0x340   :  { %v7630_v60 = vpop.eup %7629  ;;  %v2722_v41 = vxor.u32 2147483648, %v7628_v21  ;;  %v2952_v2 = vshrl.u32 %v11042_v38, %v2949_v36  ;;  %v2891_v39 = vadd.s32 536870912, %v2890_v32  ;;  %v2955_v27 = vshrl.u32 %v11043_v13, %v2949_v36 }
 0x341   :  { %v2719_v29 = vxor.u32 2147483648, %v7630_v60  ;;  %v2811_v16 = vsel %vm2728_vm2, %v2810_v44, %v2809_v4  ;;  %v2958_v59 = vshrl.u32 %v11044_v37, %v2949_v36  ;;  %v2954_v47 = vshll.u32 %v11042_v38, %v2948_v56 }
 0x342   :  { %v2723_v10 = vsel %vm2721_vm15, %v2722_v41, %v7630_v60  ;;  %v6061_v62 = vsel %vm6059_vm10, %v2722_v41, %v7630_v60  ;;  %v2814_v42 = vsel %vm10176_vm4, %v9937_v43, %v2811_v16  ;;  %v10241_v14 = vshrl.u32 %v2891_v39, 30  ;;  %v348_v60 = vpop.permute.xlu1 %347 }
 0x343   :  { %v2720_v26 = vsel %vm2718_vm13, %v7628_v21, %v2719_v29  ;;  %v6058_v12 = vsel %vm6056_vm1, %v7628_v21, %v2719_v29  ;;  %7631 = vcosq.f32 %v2814_v42  ;;  %v2959_v7 = vor.u32 %v2958_v59, %v2957_v8  ;;  %v11103_v29 = vld [vmem:[#allocation10_spill] sm:$0xff] }
 0x344   :  { %v2724_v33 = vsel %vm2717_vm12, %v2720_v26, %v2723_v10  ;;  %v6062_v55 = vsel %vm6055_vm9, %v6058_v12, %v6061_v62  ;;  %7633 = vsinq.f32 %v2814_v42  ;;  %v2893_v20 = vshll.u32 %v10241_v14, 30 }
 0x345   :  { %v2725_v54 = vsel %vm2714_vm11, nan, %v2724_v33  ;;  %v6063_v17 = vsel %vm2714_vm11, nan, %v6062_v55  ;;  %v2960_v9 = vshll.u32 %v11044_v37, %v2948_v56  ;;  %v2961_v19 = vshrl.u32 %v11045_v35, %v2949_v36 }
 0x346   :  { %3787 = vst [vmem:[#allocation2 + $0x150] sm:$0xff] %v2725_v54  ;;  %7115 = vst [vmem:[#allocation2 + $0x158] sm:$0xff] %v6063_v17  ;;  %v2964_v18 = vshrl.u32 %v11046_v24, %v2949_v36  ;;  %v10257_v30 = vsub.s32 %v2890_v32, %v2893_v20  ;;  %v2953_v25 = vor.u32 %v2952_v2, %v2951_v52  ;;  %v2820_v1 = vand.u32 3, %v2819_v28 }
 0x347   :  { %v2956_v48 = vor.u32 %v2955_v27, %v2954_v47  ;;  %v2942_v22 = vor.u32 8388608, %v10218_v11  ;;  %v2962_v6 = vor.u32 %v2961_v19, %v2960_v9  ;;  %v2963_v31 = vshll.u32 %v11045_v35, %v2948_v56 }
 0x348   :  { %v2896_v46 = vsub.s32 0, %v10257_v30  ;;  %v2950_v57 = vshrl.u32 %v11041_v40, %v2949_v36  ;;  %vm2969_vm2 = vcmp.lt.s32.totalorder %v10222_v0, 4  ;;  %v399_v51 = vmul.f32 %v9929_v15, %v344_v50 }
 0x349   :  { %vm6162_vm0 = vcmp.eq.s32.totalorder %v10220_v63, 2  ;;  %v2965_v58 = vor.u32 %v2964_v18, %v2963_v31  ;;  %vm2966_vm3 = vcmp.lt.s32.totalorder %v10222_v0, 1  ;;  %v2971_v4 = vsel %vm2969_vm2, %v2959_v7, 2102212464 }
 0x34a   :  { %v2975_v3 = vsel %vm2969_vm2, %v2962_v6, 920167782  ;;  %vm6159_vm5 = vcmp.eq.s32.totalorder %v10220_v63, 0  ;;  %v7237_v56 = vmin.u32 %v2896_v46, %v10257_v30  ;;  %vm2968_vm6 = vcmp.lt.s32.totalorder %v10222_v0, 3 }
 0x34b   :  { %v2970_v23 = vsel %vm2966_vm3, %v2950_v57, %v2953_v25  ;;  %v2974_v11 = vsel %vm2966_vm3, %v2953_v25, %v2956_v48  ;;  %vm2821_vm4 = vcmp.lt.s32.totalorder %v2820_v1, 2  ;;  %vm2822_vm7 = vcmp.eq.s32.totalorder %v2820_v1, 0 }
 0x34c   :  { %vm6158_vm1 = vcmp.lt.s32.totalorder %v10220_v63, 2  ;;  %v2972_v36 = vsel %vm2968_vm6, %v2956_v48, %v2971_v4  ;;  %v2976_v21 = vsel %vm2968_vm6, %v2959_v7, %v2975_v3  ;;  %vm2818_vm8 = vweird.f32 %v9937_v43 }
 0x34d   :  { %v2898_v44 = vclz %v7237_v56  ;;  %vm2967_vm9 = vcmp.lt.s32.totalorder %v10222_v0, 2  ;;  %v2978_v28 = vsel %vm2966_vm3, %v2956_v48, %v2959_v7  ;;  %v2982_v32 = vshll.u32 %v2942_v22, 8 }
 0x34e   :  { %vm2832_vm10 = vcmp.lt.s32.totalorder %v10038_v53, 0  ;;  %v2973_v41 = vsel %vm2967_vm9, %v2970_v23, %v2972_v36  ;;  %v2977_v52 = vsel %vm2967_vm9, %v2974_v11, %v2976_v21  ;;  %v2979_v2 = vsel %vm2969_vm2, %v2965_v58, 1326507024  ;;  %v11106_v21 = vld [vmem:[#allocation13_spill] sm:$0xff] }
 0x34f   :  { %v10291_v16 = vadd.f32 %v399_v51, %v11103_v29  ;;  %v7238_v39 = vadd.s32 4294967294, %v2898_v44  ;;  %v2980_v27 = vsel %vm2968_vm6, %v2962_v6, %v2979_v2  ;;  %vm2825_vm11 = vcmp.eq.s32.totalorder %v2820_v1, 2  ;;  %v352_v2 = vpop.permute.xlu0 %351 }
 0x350   :  { %v10295_v10 = vmul.u32.u64.low %v2982_v32, %v2977_v52  ;;  %v10296_v62 = vmul.u32.u64.high %v2982_v32, %v2977_v52, %v10295_v10  ;;  %v7632_v42 = vpop.eup %7631  ;;  %v2886_v59 = vadd.s32 %v10189_v45, %v10198_v61  ;;  %v2981_v26 = vsel %vm2967_vm9, %v2978_v28, %v2980_v27 }
 0x351   :  { %v400_v12 = vmul.f32 %v9929_v15, %v348_v60  ;;  %v7634_v33 = vpop.eup %7633  ;;  %v2826_v55 = vxor.u32 2147483648, %v7632_v42  ;;  %vm7239_vm12 = vcmp.lt.s32.totalorder %v7238_v39, 0  ;;  %v2916_v20 = vsub.s32 4, %v10241_v14 }
 0x352   :  { %v10302_v8 = vmul.u32.u64.low %v2982_v32, %v2981_v26  ;;  %v10303_v54 = vmul.u32.u64.high %v2982_v32, %v2981_v26, %v10302_v8  ;;  %v2823_v0 = vxor.u32 2147483648, %v7634_v33  ;;  %v2901_v17 = vsel %vm7239_vm12, 0, %v7238_v39 }
 0x353   :  { %v2989_v47 = vmul.u32 %v2982_v32, %v2973_v41  ;;  %v2827_v7 = vsel %vm2825_vm11, %v2826_v55, %v7634_v33  ;;  %v6164_v9 = vsel %vm6162_vm0, %v2826_v55, %v7634_v33  ;;  %v2902_v19 = vsub.s32 32, %v2901_v17 }
 0x354   :  { %v3041_v45 = vand.u32 2139095040, %v10291_v16  ;;  %v2824_v61 = vsel %vm2822_vm7, %v7632_v42, %v2823_v0  ;;  %v6161_v18 = vsel %vm6159_vm5, %v7632_v42, %v2823_v0  ;;  %v2906_v50 = vsub.s32 4294967266, %v2901_v17 }
 0x355   :  { %v2992_v25 = vadd.s32 1, %v10296_v62  ;;  %v2828_v48 = vsel %vm2821_vm4, %v2824_v61, %v2827_v7  ;;  %v6165_v22 = vsel %vm6158_vm1, %v6161_v18, %v6164_v9  ;;  %v2903_v6 = vshll.u32 %v10257_v30, %v2901_v17 }
 0x356   :  { %v2904_v31 = vshrl.u32 %v2886_v59, %v2902_v19  ;;  %v2829_v46 = vsel %vm2818_vm8, nan, %v2828_v48  ;;  %v6166_v57 = vsel %vm2818_vm8, nan, %v6165_v22  ;;  %v2907_v51 = vadd.s32 127, %v2906_v50 }
 0x357   :  { %vm2991_vm13 = vc.u32 %v10303_v54, %v10295_v10  ;;  %3788 = vst [vmem:[#allocation2 + $0x160] sm:$0xff] %v2829_v46  ;;  %7116 = vst [vmem:[#allocation2 + $0x168] sm:$0xff] %v6166_v57  ;;  %v2917_v63 = vsel %vm2832_vm10, %v2916_v20, %v10241_v14  ;;  %v3042_v30 = vshrl.u32 %v3041_v45, 23  ;;  %vm10329_vm14 = vcmp.le.f32.partialorder %v2830_v5, 0.7853982 }
 0x358   :  { %v2993_v1 = vsel %vm2991_vm13, %v2992_v25, %v10296_v62  ;;  %v2905_v58 = vor.u32 %v2904_v31, %v2903_v6  ;;  %v2908_v4 = vshll.u32 %v2907_v51, 23  ;;  %v3038_v56 = vand.u32 2147483647, %v10291_v16 }
 0x359   :  { %v2994_v3 = vadd.s32 %v2993_v1, %v2989_v47  ;;  %v7244_v23 = vadd.s32 4294967169, %v3042_v30  ;;  %v2919_v36 = vsel %vm10329_vm14, 0, %v2917_v63  ;;  %v10337_v44 = vadd.f32 %v400_v12, %v11106_v21 }
 0x35a   :  { %v2909_v11 = vor.u32 4788187, %v2908_v4  ;;  %v2912_v60 = vcvt.s32.f32 %v2905_v58  ;;  %v2923_v52 = vadd.s32 3, %v2919_v36  ;;  %v3045_v5 = vand.u32 8388607, %v3038_v56 }
 0x35b   :  { %v2995_v14 = vadd.s32 536870912, %v2994_v3  ;;  %v3048_v28 = vadd.s32 1, %v7244_v23  ;;  %v3145_v62 = vand.u32 2139095040, %v10337_v44  ;;  %vm2936_vm2 = vcmp.lt.s32.totalorder %v10131_v49, 0 }
 0x35c   :  { %v2910_v32 = vand.u32 2147483647, %v2909_v11  ;;  %v10346_v12 = vmul.f32 %v9929_v15, %v352_v2  ;;  %v10348_v33 = vand.u32 3, %v2923_v52  ;;  %v10350_v55 = vand.u32 3, %v2919_v36 }
 0x35d   :  { %v2996_v41 = vshrl.u32 %v2995_v14, 30  ;;  %vm3049_vm15 = vcmp.gt.s32.totalorder %v3048_v28, 0  ;;  %v3046_v8 = vor.u32 8388608, %v3045_v5  ;;  %v3146_v7 = vshrl.u32 %v3145_v62, 23 }
 0x35e   :  { %v2913_v29 = vmul.f32 %v2912_v60, %v2910_v32  ;;  %v3050_v27 = vsel %vm3049_vm15, %v3048_v28, 0  ;;  %v2990_v15 = vadd.s32 %v10295_v10, %v10303_v54  ;;  %v3142_v50 = vand.u32 2147483647, %v10337_v44 }
 0x35f   :  { %v2997_v39 = vshll.u32 %v2996_v41, 30  ;;  %v3052_v42 = vand.u32 31, %v3050_v27  ;;  %v3020_v47 = vsub.s32 4, %v2996_v41  ;;  %v3051_v25 = vshrl.u32 %v3050_v27, 5 }
 0x360   :  { %v2914_v59 = vxor.u32 2147483648, %v2913_v29  ;;  %v10366_v22 = vshll.u32 %v3046_v8, 8  ;;  %v7248_v31 = vadd.s32 4294967169, %v3146_v7  ;;  %vm10379_vm5 = vcmp.le.f32.partialorder %v2934_v34, 0.7853982 }
 0x361   :  { %v10343_v26 = vsub.s32 %v2994_v3, %v2997_v39  ;;  %v3053_v0 = vsub.s32 32, %v3052_v42  ;;  %v3055_v18 = vshll.u32 %v11041_v40, %v3052_v42  ;;  %v3058_v48 = vshll.u32 %v11042_v38, %v3052_v42 }
 0x362   :  { %v2915_v17 = vsel %vm2832_vm10, %v2914_v59, %v2913_v29  ;;  %v3021_v10 = vsel %vm2936_vm2, %v3020_v47, %v2996_v41  ;;  %v3061_v57 = vshll.u32 %v11043_v13, %v3052_v42  ;;  %v3064_v63 = vshll.u32 %v11044_v37, %v3052_v42 }
 0x363   :  { %v3000_v20 = vsub.s32 0, %v10343_v26  ;;  %v2918_v9 = vsel %vm10329_vm14, %v10038_v53, %v2915_v17  ;;  %v3056_v19 = vshrl.u32 %v11042_v38, %v3053_v0  ;;  %v3059_v45 = vshrl.u32 %v11043_v13, %v3053_v0 }
 0x364   :  { %7635 = vcosq.f32 %v2918_v9  ;;  %v3062_v51 = vshrl.u32 %v11044_v37, %v3053_v0  ;;  %v3065_v30 = vshrl.u32 %v11045_v35, %v3053_v0  ;;  %v3067_v58 = vshll.u32 %v11045_v35, %v3052_v42 }
 0x365   :  { %v7241_v61 = vmin.u32 %v3000_v20, %v10343_v26  ;;  %7637 = vsinq.f32 %v2918_v9  ;;  %v3057_v54 = vor.u32 %v3056_v19, %v3055_v18  ;;  %v3060_v46 = vor.u32 %v3059_v45, %v3058_v48 }
 0x366   :  { %v3068_v4 = vshrl.u32 %v11046_v24, %v3053_v0  ;;  %v3054_v3 = vshrl.u32 %v11041_v40, %v3053_v0  ;;  %v3063_v43 = vor.u32 %v3062_v51, %v3061_v57  ;;  %vm3070_vm0 = vcmp.lt.s32.totalorder %v3051_v25, 1 }
 0x367   :  { %v3002_v6 = vclz %v7241_v61  ;;  %vm3071_vm3 = vcmp.lt.s32.totalorder %v3051_v25, 2  ;;  %v3066_v11 = vor.u32 %v3065_v30, %v3064_v63  ;;  %vm3073_vm4 = vcmp.lt.s32.totalorder %v3051_v25, 4 }
 0x368   :  { %v3069_v36 = vor.u32 %v3068_v4, %v3067_v58  ;;  %vm2929_vm7 = vcmp.eq.s32.totalorder %v10348_v33, 2  ;;  %vm6265_vm1 = vcmp.eq.s32.totalorder %v10350_v55, 2  ;;  %vm3072_vm8 = vcmp.lt.s32.totalorder %v3051_v25, 3 }
 0x369   :  { %v7242_v1 = vadd.s32 4294967294, %v3002_v6  ;;  %v3074_v21 = vsel %vm3070_vm0, %v3054_v3, %v3057_v54  ;;  %v3075_v28 = vsel %vm3073_vm4, %v3063_v43, 2102212464  ;;  %vm2926_vm9 = vcmp.eq.s32.totalorder %v10348_v33, 0  ;;  %v11109_v6 = vld [vmem:[#allocation12_spill] sm:$0xff] }
 0x36a   :  { %vm6262_vm10 = vcmp.eq.s32.totalorder %v10350_v55, 0  ;;  %v3076_v60 = vsel %vm3072_vm8, %v3060_v46, %v3075_v28  ;;  %v3078_v41 = vsel %vm3070_vm0, %v3057_v54, %v3060_v46  ;;  %vm2925_vm11 = vcmp.lt.s32.totalorder %v10348_v33, 2 }
 0x36b   :  { %vm7243_vm6 = vcmp.lt.s32.totalorder %v7242_v1, 0  ;;  %vm6261_vm12 = vcmp.lt.s32.totalorder %v10350_v55, 2  ;;  %v3079_v5 = vsel %vm3073_vm4, %v3066_v11, 920167782  ;;  %v3082_v2 = vsel %vm3070_vm0, %v3060_v46, %v3063_v43 }
 0x36c   :  { %v3005_v14 = vsel %vm7243_vm6, 0, %v7242_v1  ;;  %v3083_v29 = vsel %vm3073_vm4, %v3069_v36, 1326507024  ;;  %vm2922_vm13 = vweird.f32 %v10038_v53  ;;  %v3080_v62 = vsel %vm3072_vm8, %v3063_v43, %v3079_v5 }
 0x36d   :  { %v3006_v34 = vsub.s32 32, %v3005_v14  ;;  %v3010_v32 = vsub.s32 4294967266, %v3005_v14  ;;  %v3007_v52 = vshll.u32 %v10343_v26, %v3005_v14  ;;  %v3084_v42 = vsel %vm3072_vm8, %v3066_v11, %v3083_v29 }
 0x36e   :  { %v3077_v59 = vsel %vm3071_vm3, %v3074_v21, %v3076_v60  ;;  %v3081_v8 = vsel %vm3071_vm3, %v3078_v41, %v3080_v62  ;;  %v3085_v26 = vsel %vm3071_vm3, %v3082_v2, %v3084_v42  ;;  %v3152_v0 = vadd.s32 1, %v7248_v31 }
 0x36f   :  { %v3008_v39 = vshrl.u32 %v2990_v15, %v3006_v34  ;;  %v3011_v27 = vadd.s32 127, %v3010_v32  ;;  %v10404_v47 = vmul.u32.u64.low %v10366_v22, %v3085_v26  ;;  %v10405_v7 = vmul.u32.u64.high %v10366_v22, %v3085_v26, %v10404_v47 }
 0x370   :  { %v10408_v15 = vmul.u32.u64.low %v10366_v22, %v3081_v8  ;;  %v10409_v19 = vmul.u32.u64.high %v10366_v22, %v3081_v8, %v10408_v15  ;;  %v10414_v45 = vand.u32 8388607, %v3142_v50  ;;  %vm3153_vm14 = vcmp.gt.s32.totalorder %v3152_v0, 0  ;;  %v356_v8 = vpop.permute.xlu1 %355 }
 0x371   :  { %v3009_v17 = vor.u32 %v3008_v39, %v3007_v52  ;;  %v3012_v20 = vshll.u32 %v3011_v27, 23  ;;  %v7636_v9 = vpop.eup %7635  ;;  %v3154_v48 = vsel %vm3153_vm14, %v3152_v0, 0  ;;  %v10418_v54 = vadd.f32 %v10346_v12, %v11109_v6 }
 0x372   :  { %v7638_v61 = vpop.eup %7637  ;;  %v2930_v18 = vxor.u32 2147483648, %v7636_v9  ;;  %v3023_v46 = vsel %vm10379_vm5, 0, %v3021_v10  ;;  %v3093_v57 = vmul.u32 %v10366_v22, %v3077_v59  ;;  %v3156_v51 = vand.u32 31, %v3154_v48 }
 0x373   :  { %v3013_v25 = vor.u32 4788187, %v3012_v20  ;;  %v2927_v31 = vxor.u32 2147483648, %v7638_v61  ;;  %v3016_v58 = vcvt.s32.f32 %v3009_v17  ;;  %vm3095_vm15 = vc.u32 %v10405_v7, %v10408_v15 }
 0x374   :  { %v2931_v63 = vsel %vm2929_vm7, %v2930_v18, %v7638_v61  ;;  %v6267_v1 = vsel %vm6265_vm1, %v2930_v18, %v7638_v61  ;;  %v3096_v22 = vadd.s32 1, %v10409_v19  ;;  %v3157_v11 = vsub.s32 32, %v3156_v51  ;;  %v10465_v61 = vld [vmem:[%s11012_s1 + $0x1] ss:$0 sm:$0xff]  ;;  %s7706_s1 = smov [#allocation2]  }
 0x375   :  { %v3014_v30 = vand.u32 2147483647, %v3013_v25  ;;  %v2928_v4 = vsel %vm2926_vm9, %v7636_v9, %v2927_v31  ;;  %v6264_v12 = vsel %vm6262_vm10, %v7636_v9, %v2927_v31  ;;  %v3249_v28 = vand.u32 2139095040, %v10418_v54  ;;  %s7131_s30 = sshll.u32 %s7706_s1, 4  ;;  %s7132_s30 = int_to_ptr.vmem [resolvable:$true] %s7131_s30 }
 0x376   :  { %v2932_v10 = vsel %vm2925_vm11, %v2928_v4, %v2931_v63  ;;  %v6268_v3 = vsel %vm6261_vm12, %v6264_v12, %v6267_v1  ;;  %v3097_v21 = vsel %vm3095_vm15, %v3096_v22, %v10409_v19  ;;  %v3159_v32 = vshll.u32 %v11041_v40, %v3156_v51  ;;  %s7676_s3 = scalar_lea.vmem %s7132_s30, 8192  ;;  %p7681_p1 = scmp.lt.s32.totalorder %s7132_s30, %s7132_s30 }
 0x377   :  { %v3017_v43 = vmul.f32 %v3016_v58, %v3014_v30  ;;  %v2933_v36 = vsel %vm2922_vm13, nan, %v2932_v10  ;;  %v6269_v14 = vsel %vm2922_vm13, nan, %v6268_v3  ;;  %v3098_v33 = vadd.s32 %v3097_v21, %v3093_v57  ;;  %p7677_p0 = scmp.ne.s32.totalorder %s7132_s30, %s7676_s3  ;;  %p7682_p2 = scmp.lt.s32.totalorder %s7676_s3, %s7676_s3 }
 0x378   :  { %3789 = vst [vmem:[#allocation2 + $0x170] sm:$0xff] %v2933_v36  ;;  %7117 = vst [vmem:[#allocation2 + $0x178] sm:$0xff] %v6269_v14  ;;  %v3160_v55 = vshrl.u32 %v11042_v38, %v3157_v11  ;;  %v10446_v60 = vshrl.u32 %v3154_v48, 5  ;;  %v3162_v41 = vshll.u32 %v11042_v38, %v3156_v51  ;;  %v3163_v52 = vshrl.u32 %v11043_v13, %v3157_v11 }
 0x379   :  { %v3018_v34 = vxor.u32 2147483648, %v3017_v43  ;;  %v3166_v53 = vshrl.u32 %v11044_v37, %v3157_v11  ;;  %v3099_v2 = vadd.s32 536870912, %v3098_v33  ;;  %v3165_v39 = vshll.u32 %v11043_v13, %v3156_v51  ;;  %p7683_p3 = por %p7682_p2, %p7681_p1 }
 0x37a   :  { %v3161_v29 = vor.u32 %v3160_v55, %v3159_v32  ;;  %v3164_v62 = vor.u32 %v3163_v52, %v3162_v41  ;;  %v3168_v42 = vshll.u32 %v11044_v37, %v3156_v51  ;;  %v3169_v59 = vshrl.u32 %v11045_v35, %v3157_v11 }
 0x37b   :  { %v3019_v5 = vsel %vm2936_vm2, %v3018_v34, %v3017_v43  ;;  %v3100_v26 = vshrl.u32 %v3099_v2, 30  ;;  %v3171_v0 = vshll.u32 %v11045_v35, %v3156_v51  ;;  %v3172_v17 = vshrl.u32 %v11046_v24, %v3157_v11  ;;  %p7684_p4 = pnand %p7683_p3, %p7677_p0 }
 0x37c   :  { %v3022_v27 = vsel %vm10379_vm5, %v10131_v49, %v3019_v5  ;;  %v3167_v20 = vor.u32 %v3166_v53, %v3165_v39  ;;  %v3170_v47 = vor.u32 %v3169_v59, %v3168_v42  ;;  %v3150_v19 = vor.u32 8388608, %v10414_v45 }
 0x37d   :  { %7639 = vcosq.f32 %v3022_v27  ;;  %v3101_v9 = vshll.u32 %v3100_v26, 30  ;;  %v3173_v23 = vor.u32 %v3172_v17, %v3171_v0  ;;  %v10468_v18 = vmul.f32 %v10465_v61, %v356_v8 }
 0x37e   :  { %7641 = vsinq.f32 %v3022_v27  ;;  %v3027_v25 = vadd.s32 3, %v3023_v46  ;;  %vm3174_vm2 = vcmp.lt.s32.totalorder %v10446_v60, 1  ;;  %vm3177_vm0 = vcmp.lt.s32.totalorder %v10446_v60, 4 }
 0x37f   :  { %v3250_v48 = vshrl.u32 %v3249_v28, 23  ;;  %v10472_v6 = vsub.s32 %v3098_v33, %v3101_v9  ;;  %vm3176_vm3 = vcmp.lt.s32.totalorder %v10446_v60, 3  ;;  %v3182_v45 = vsel %vm3174_vm2, %v3161_v29, %v3164_v62 }
 0x380   :  { %v3183_v31 = vsel %vm3177_vm0, %v3170_v47, 920167782  ;;  %v6363_v57 = vand.u32 3, %v3023_v46  ;;  %v3158_v51 = vshrl.u32 %v11041_v40, %v3157_v11  ;;  %v3187_v1 = vsel %vm3177_vm0, %v3173_v23, 1326507024 }
 0x381   :  { %v3184_v63 = vsel %vm3176_vm3, %v3167_v20, %v3183_v31  ;;  %v3104_v30 = vsub.s32 0, %v10472_v6  ;;  %vm3175_vm5 = vcmp.lt.s32.totalorder %v10446_v60, 2  ;;  %v3179_v58 = vsel %vm3177_vm0, %v3167_v20, 2102212464 }
 0x382   :  { %v3186_v4 = vsel %vm3174_vm2, %v3164_v62, %v3167_v20  ;;  %v3185_v12 = vsel %vm3175_vm5, %v3182_v45, %v3184_v63  ;;  %v3188_v46 = vsel %vm3176_vm3, %v3170_v47, %v3187_v1  ;;  %v3190_v22 = vshll.u32 %v3150_v19, 8 }
 0x383   :  { %v7252_v10 = vadd.s32 4294967169, %v3250_v48  ;;  %v3028_v3 = vand.u32 3, %v3027_v25  ;;  %vm3040_vm6 = vcmp.lt.s32.totalorder %v10291_v16, 0  ;;  %v7245_v43 = vmin.u32 %v3104_v30, %v10472_v6 }
 0x384   :  { %v3178_v11 = vsel %vm3174_vm2, %v3158_v51, %v3161_v29  ;;  %v3180_v36 = vsel %vm3176_vm3, %v3164_v62, %v3179_v58  ;;  %v3189_v14 = vsel %vm3175_vm5, %v3186_v4, %v3188_v46  ;;  %vm3026_vm4 = vweird.f32 %v10131_v49 }
 0x385   :  { %v10496_v21 = vmul.u32.u64.low %v3190_v22, %v3185_v12  ;;  %v10497_v28 = vmul.u32.u64.high %v3190_v22, %v3185_v12, %v10496_v21  ;;  %vm6364_vm7 = vcmp.lt.s32.totalorder %v6363_v57, 2  ;;  %v3106_v34 = vclz %v7245_v43 }
 0x386   :  { %v3124_v33 = vsub.s32 4, %v3100_v26  ;;  %v3246_v32 = vand.u32 2147483647, %v10418_v54  ;;  %vm6365_vm1 = vcmp.eq.s32.totalorder %v6363_v57, 0  ;;  %v3256_v52 = vadd.s32 1, %v7252_v10  ;;  %v11112_v10 = vld [vmem:[#allocation15_spill] sm:$0xff] }
 0x387   :  { %v10502_v55 = vmul.u32.u64.low %v3190_v22, %v3189_v14  ;;  %v10503_v41 = vmul.u32.u64.high %v3190_v22, %v3189_v14, %v10502_v55  ;;  %vm3029_vm8 = vcmp.lt.s32.totalorder %v3028_v3, 2  ;;  %vm6368_vm9 = vcmp.eq.s32.totalorder %v6363_v57, 2 }
 0x388   :  { %v7246_v53 = vadd.s32 4294967294, %v3106_v34  ;;  %v3181_v5 = vsel %vm3175_vm5, %v3178_v11, %v3180_v36  ;;  %vm3030_vm10 = vcmp.eq.s32.totalorder %v3028_v3, 0  ;;  %vm3033_vm11 = vcmp.eq.s32.totalorder %v3028_v3, 2 }
 0x389   :  { %v3200_v29 = vadd.s32 1, %v10497_v28  ;;  %vm3257_vm12 = vcmp.gt.s32.totalorder %v3256_v52, 0  ;;  %v3094_v62 = vadd.s32 %v10408_v15, %v10405_v7  ;;  %v3125_v42 = vsel %vm3040_vm6, %v3124_v33, %v3100_v26 }
 0x38a   :  { %v7640_v2 = vpop.eup %7639  ;;  %vm7247_vm13 = vcmp.lt.s32.totalorder %v7246_v53, 0  ;;  %v3197_v0 = vmul.u32 %v3190_v22, %v3181_v5  ;;  %vm3199_vm14 = vc.u32 %v10503_v41, %v10496_v21  ;;  %v3258_v47 = vsel %vm3257_vm12, %v3256_v52, 0 }
 0x38b   :  { %v7642_v39 = vpop.eup %7641  ;;  %v3034_v27 = vxor.u32 2147483648, %v7640_v2  ;;  %v3109_v8 = vsel %vm7247_vm13, 0, %v7246_v53  ;;  %v3201_v15 = vsel %vm3199_vm14, %v3200_v29, %v10497_v28  ;;  %vm10527_vm15 = vcmp.le.f32.partialorder %v3038_v56, 0.7853982 }
 0x38c   :  { %v3031_v59 = vxor.u32 2147483648, %v7642_v39  ;;  %v3110_v20 = vsub.s32 32, %v3109_v8  ;;  %v3114_v7 = vsub.s32 4294967266, %v3109_v8  ;;  %v3202_v48 = vadd.s32 %v3201_v15, %v3197_v0 }
 0x38d   :  { %v3035_v60 = vsel %vm3033_vm11, %v3034_v27, %v7642_v39  ;;  %v6370_v17 = vsel %vm6368_vm9, %v3034_v27, %v7642_v39  ;;  %v3111_v51 = vshll.u32 %v10472_v6, %v3109_v8  ;;  %v3253_v30 = vand.u32 8388607, %v3246_v32 }
 0x38e   :  { %v3032_v9 = vsel %vm3030_vm10, %v7640_v2, %v3031_v59  ;;  %v6367_v19 = vsel %vm6365_vm1, %v7640_v2, %v3031_v59  ;;  %v3112_v25 = vshrl.u32 %v3094_v62, %v3110_v20  ;;  %v3115_v63 = vadd.s32 127, %v3114_v7 }
 0x38f   :  { %v3036_v26 = vsel %vm3029_vm8, %v3032_v9, %v3035_v60  ;;  %v6371_v23 = vsel %vm6364_vm7, %v6367_v19, %v6370_v17  ;;  %v3203_v57 = vadd.s32 536870912, %v3202_v48  ;;  %v3260_v58 = vand.u32 31, %v3258_v47 }
 0x390   :  { %v3037_v45 = vsel %vm3026_vm4, nan, %v3036_v26  ;;  %v6372_v31 = vsel %vm3026_vm4, nan, %v6371_v23  ;;  %v3113_v4 = vor.u32 %v3112_v25, %v3111_v51  ;;  %v3116_v12 = vshll.u32 %v3115_v63, 23 }
 0x391   :  { %3790 = vst [vmem:[#allocation2 + $0x180] sm:$0xff] %v3037_v45  ;;  %7118 = vst [vmem:[#allocation2 + $0x188] sm:$0xff] %v6372_v31  ;;  %v10535_v49 = vsel %vm10527_vm15, 0, %v3125_v42  ;;  %v10537_v6 = vshrl.u32 %v3203_v57, 30  ;;  %v3261_v46 = vsub.s32 32, %v3260_v58  ;;  %v10541_v56 = vadd.f32 %v10468_v18, %v11112_v10 }
 0x392   :  { %v3117_v22 = vor.u32 4788187, %v3116_v12  ;;  %v10544_v3 = vadd.s32 3, %v10535_v49  ;;  %v3254_v11 = vor.u32 8388608, %v3253_v30  ;;  %v3120_v28 = vcvt.s32.f32 %v3113_v4 }
 0x393   :  { %v3205_v43 = vshll.u32 %v10537_v6, 30  ;;  %v3264_v36 = vshrl.u32 %v11042_v38, %v3261_v46  ;;  %v3267_v34 = vshrl.u32 %v11043_v13, %v3261_v46  ;;  %v3270_v33 = vshrl.u32 %v11044_v37, %v3261_v46 }
 0x394   :  { %v3118_v14 = vand.u32 2147483647, %v3117_v22  ;;  %v3263_v52 = vshll.u32 %v11041_v40, %v3260_v58  ;;  %v3269_v18 = vshll.u32 %v11043_v13, %v3260_v58  ;;  %v3273_v53 = vshrl.u32 %v11045_v35, %v3261_v46 }
 0x395   :  { %v10550_v55 = vsub.s32 %v3202_v48, %v3205_v43  ;;  %v3259_v2 = vshrl.u32 %v3258_v47, 5  ;;  %v3266_v29 = vshll.u32 %v11042_v38, %v3260_v58  ;;  %v3353_v39 = vand.u32 2139095040, %v10541_v56 }
 0x396   :  { %v3121_v5 = vmul.f32 %v3120_v28, %v3118_v14  ;;  %v3265_v62 = vor.u32 %v3264_v36, %v3263_v52  ;;  %v3271_v42 = vor.u32 %v3270_v33, %v3269_v18  ;;  %v3272_v59 = vshll.u32 %v11044_v37, %v3260_v58 }
 0x397   :  { %v3208_v27 = vsub.s32 0, %v10550_v55  ;;  %v3268_v0 = vor.u32 %v3267_v34, %v3266_v29  ;;  %v3275_v60 = vshll.u32 %v11045_v35, %v3260_v58  ;;  %v3276_v17 = vshrl.u32 %v11046_v24, %v3261_v46 }
 0x398   :  { %v3122_v8 = vxor.u32 2147483648, %v3121_v5  ;;  %v3198_v20 = vadd.s32 %v10496_v21, %v10503_v41  ;;  %v3274_v9 = vor.u32 %v3273_v53, %v3272_v59  ;;  %v3294_v19 = vshll.u32 %v3254_v11, 8 }
 0x399   :  { %v7249_v47 = vmin.u32 %v3208_v27, %v10550_v55  ;;  %v3277_v15 = vor.u32 %v3276_v17, %v3275_v60  ;;  %vm3278_vm2 = vcmp.lt.s32.totalorder %v3259_v2, 1  ;;  %vm3281_vm0 = vcmp.lt.s32.totalorder %v3259_v2, 4 }
 0x39a   :  { %v3123_v7 = vsel %vm3040_vm6, %v3122_v8, %v3121_v5  ;;  %v3262_v25 = vshrl.u32 %v11041_v40, %v3261_v46  ;;  %v3283_v48 = vsel %vm3281_vm0, %v3271_v42, 2102212464  ;;  %vm3279_vm3 = vcmp.lt.s32.totalorder %v3259_v2, 2 }
 0x39b   :  { %v3126_v26 = vsel %vm10527_vm15, %v10291_v16, %v3123_v7  ;;  %v3210_v23 = vclz %v7249_v47  ;;  %vm3280_vm5 = vcmp.lt.s32.totalorder %v3259_v2, 3  ;;  %v3286_v21 = vsel %vm3278_vm2, %v3265_v62, %v3268_v0 }
 0x39c   :  { %7643 = vcosq.f32 %v3126_v26  ;;  %v3282_v45 = vsel %vm3278_vm2, %v3262_v25, %v3265_v62  ;;  %v3287_v31 = vsel %vm3281_vm0, %v3274_v9, 920167782  ;;  %v3284_v51 = vsel %vm3280_vm5, %v3268_v0, %v3283_v48 }
 0x39d   :  { %7645 = vsinq.f32 %v3126_v26  ;;  %v7250_v41 = vadd.s32 4294967294, %v3210_v23  ;;  %v3288_v63 = vsel %vm3280_vm5, %v3271_v42, %v3287_v31  ;;  %v3290_v1 = vsel %vm3278_vm2, %v3268_v0, %v3271_v42  ;;  %v360_v26 = vpop.permute.xlu0 %359 }
 0x39e   :  { %v3291_v57 = vsel %vm3281_vm0, %v3277_v15, 1326507024  ;;  %v3289_v30 = vsel %vm3279_vm3, %v3286_v21, %v3288_v63  ;;  %v3354_v4 = vshrl.u32 %v3353_v39, 23  ;;  %v3228_v36 = vsub.s32 4, %v10537_v6 }
 0x39f   :  { %vm7251_vm6 = vcmp.lt.s32.totalorder %v7250_v41, 0  ;;  %v3292_v58 = vsel %vm3280_vm5, %v3274_v9, %v3291_v57  ;;  %v10578_v22 = vmul.u32.u64.low %v3294_v19, %v3289_v30  ;;  %v10579_v10 = vmul.u32.u64.high %v3294_v19, %v3289_v30, %v10578_v22 }
 0x3a0   :  { %v3213_v12 = vsel %vm7251_vm6, 0, %v7250_v41  ;;  %v3293_v46 = vsel %vm3279_vm3, %v3290_v1, %v3292_v58  ;;  %v7256_v14 = vadd.s32 4294967169, %v3354_v4  ;;  %v6466_v28 = vand.u32 3, %v10535_v49 }
 0x3a1   :  { %v3214_v43 = vsub.s32 32, %v3213_v12  ;;  %v3218_v11 = vsub.s32 4294967266, %v3213_v12  ;;  %v3285_v34 = vsel %vm3279_vm3, %v3282_v45, %v3284_v51  ;;  %v3215_v18 = vshll.u32 %v10550_v55, %v3213_v12 }
 0x3a2   :  { %v10585_v33 = vmul.u32.u64.low %v3294_v19, %v3293_v46  ;;  %v10586_v52 = vmul.u32.u64.high %v3294_v19, %v3293_v46, %v10585_v33  ;;  %v3360_v29 = vadd.s32 1, %v7256_v14  ;;  %v3132_v39 = vand.u32 3, %v10544_v3 }
 0x3a3   :  { %v3216_v53 = vshrl.u32 %v3198_v20, %v3214_v43  ;;  %v3219_v5 = vadd.s32 127, %v3218_v11  ;;  %vm10592_vm4 = vcmp.le.f32.partialorder %v3142_v50, 0.7853982  ;;  %vm3144_vm7 = vcmp.lt.s32.totalorder %v10337_v44, 0 }
 0x3a4   :  { %v3304_v49 = vadd.s32 1, %v10579_v10  ;;  %v3229_v55 = vsel %vm3144_vm7, %v3228_v36, %v10537_v6  ;;  %vm3361_vm1 = vcmp.gt.s32.totalorder %v3360_v29, 0  ;;  %vm3130_vm8 = vweird.f32 %v10291_v16 }
 0x3a5   :  { %v3217_v2 = vor.u32 %v3216_v53, %v3215_v18  ;;  %v3220_v62 = vshll.u32 %v3219_v5, 23  ;;  %vm6467_vm9 = vcmp.lt.s32.totalorder %v6466_v28, 2  ;;  %v3301_v3 = vmul.u32 %v3294_v19, %v3285_v34 }
 0x3a6   :  { %vm3303_vm10 = vc.u32 %v10586_v52, %v10578_v22  ;;  %v3362_v50 = vsel %vm3361_vm1, %v3360_v29, 0  ;;  %vm6468_vm11 = vcmp.eq.s32.totalorder %v6466_v28, 0  ;;  %v3350_v8 = vand.u32 2147483647, %v10541_v56 }
 0x3a7   :  { %v3221_v42 = vor.u32 4788187, %v3220_v62  ;;  %v3305_v59 = vsel %vm3303_vm10, %v3304_v49, %v10579_v10  ;;  %vm6471_vm12 = vcmp.eq.s32.totalorder %v6466_v28, 2  ;;  %v3231_v0 = vsel %vm10592_vm4, 0, %v3229_v55 }
 0x3a8   :  { %v3306_v6 = vadd.s32 %v3305_v59, %v3301_v3  ;;  %v3364_v60 = vand.u32 31, %v3362_v50  ;;  %vm3133_vm13 = vcmp.lt.s32.totalorder %v3132_v39, 2  ;;  %vm3134_vm14 = vcmp.eq.s32.totalorder %v3132_v39, 0  ;;  %v11115_v59 = vld [vmem:[#allocation14_spill] sm:$0xff] }
 0x3a9   :  { %v7644_v17 = vpop.eup %7643  ;;  %v3222_v20 = vand.u32 2147483647, %v3221_v42  ;;  %v3224_v47 = vcvt.s32.f32 %v3217_v2  ;;  %vm3137_vm15 = vcmp.eq.s32.totalorder %v3132_v39, 2  ;;  %v3235_v48 = vadd.s32 3, %v3231_v0 }
 0x3aa   :  { %v7646_v9 = vpop.eup %7645  ;;  %v3138_v19 = vxor.u32 2147483648, %v7644_v17  ;;  %v3307_v7 = vadd.s32 536870912, %v3306_v6  ;;  %v3365_v15 = vsub.s32 32, %v3364_v60  ;;  %v3357_v21 = vand.u32 8388607, %v3350_v8 }
 0x3ab   :  { %v3135_v23 = vxor.u32 2147483648, %v7646_v9  ;;  %v3225_v25 = vmul.f32 %v3224_v47, %v3222_v20  ;;  %v10611_v31 = vand.u32 3, %v3231_v0  ;;  %v403_v30 = vmul.f32 %v10465_v61, %v360_v26 }
 0x3ac   :  { %v3139_v41 = vsel %vm3137_vm15, %v3138_v19, %v7646_v9  ;;  %v6473_v45 = vsel %vm6471_vm12, %v3138_v19, %v7646_v9  ;;  %v10613_v51 = vshrl.u32 %v3307_v7, 30  ;;  %v3368_v46 = vshrl.u32 %v11042_v38, %v3365_v15 }
 0x3ad   :  { %v3136_v63 = vsel %vm3134_vm14, %v7644_v17, %v3135_v23  ;;  %v6470_v1 = vsel %vm6468_vm11, %v7644_v17, %v3135_v23  ;;  %v3226_v57 = vxor.u32 2147483648, %v3225_v25  ;;  %v3358_v36 = vor.u32 8388608, %v3357_v21 }
 0x3ae   :  { %v3140_v58 = vsel %vm3133_vm13, %v3136_v63, %v3139_v41  ;;  %v6474_v4 = vsel %vm6467_vm9, %v6470_v1, %v6473_v45  ;;  %v3309_v12 = vshll.u32 %v10613_v51, 30  ;;  %v3367_v34 = vshll.u32 %v11041_v40, %v3364_v60  ;;  %v364_v63 = vpop.permute.xlu1 %363 }
 0x3af   :  { %v3141_v10 = vsel %vm3130_vm8, nan, %v3140_v58  ;;  %v6475_v43 = vsel %vm3130_vm8, nan, %v6474_v4  ;;  %v3227_v11 = vsel %vm3144_vm7, %v3226_v57, %v3225_v25  ;;  %v3371_v33 = vshrl.u32 %v11043_v13, %v3365_v15 }
 0x3b0   :  { %3791 = vst [vmem:[#allocation2 + $0x190] sm:$0xff] %v3141_v10  ;;  %7119 = vst [vmem:[#allocation2 + $0x198] sm:$0xff] %v6475_v43  ;;  %v3230_v14 = vsel %vm10592_vm4, %v10337_v44, %v3227_v11  ;;  %v10631_v28 = vsub.s32 %v3306_v6, %v3309_v12  ;;  %v3370_v16 = vshll.u32 %v11042_v38, %v3364_v60  ;;  %v3363_v29 = vshrl.u32 %v3362_v50, 5 }
 0x3b1   :  { %7647 = vcosq.f32 %v3230_v14  ;;  %v3373_v18 = vshll.u32 %v11043_v13, %v3364_v60  ;;  %v3374_v53 = vshrl.u32 %v11044_v37, %v3365_v15  ;;  %v3369_v39 = vor.u32 %v3368_v46, %v3367_v34 }
 0x3b2   :  { %7649 = vsinq.f32 %v3230_v14  ;;  %v3312_v5 = vsub.s32 0, %v10631_v28  ;;  %vm3248_vm2 = vcmp.lt.s32.totalorder %v10418_v54, 0  ;;  %v3372_v27 = vor.u32 %v3371_v33, %v3370_v16 }
 0x3b3   :  { %v3375_v49 = vor.u32 %v3374_v53, %v3373_v18  ;;  %v3376_v2 = vshll.u32 %v11044_v37, %v3364_v60  ;;  %v3377_v62 = vshrl.u32 %v11045_v35, %v3365_v15  ;;  %v10642_v55 = vand.u32 3, %v3235_v48 }
 0x3b4   :  { %v3302_v3 = vadd.s32 %v10578_v22, %v10586_v52  ;;  %v7253_v42 = vmin.u32 %v3312_v5, %v10631_v28  ;;  %v10648_v0 = vadd.f32 %v403_v30, %v11115_v59  ;;  %v3379_v6 = vshll.u32 %v11045_v35, %v3364_v60 }
 0x3b5   :  { %v3378_v50 = vor.u32 %v3377_v62, %v3376_v2  ;;  %v3380_v17 = vshrl.u32 %v11046_v24, %v3365_v15  ;;  %v10652_v20 = vshll.u32 %v3358_v36, 8  ;;  %vm10656_vm0 = vcmp.le.f32.partialorder %v3246_v32, 0.7853982 }
 0x3b6   :  { %v3314_v9 = vclz %v7253_v42  ;;  %vm3382_vm3 = vcmp.lt.s32.totalorder %v3363_v29, 1  ;;  %vm3384_vm5 = vcmp.lt.s32.totalorder %v3363_v29, 3  ;;  %vm3385_vm6 = vcmp.lt.s32.totalorder %v3363_v29, 4 }
 0x3b7   :  { %v3366_v22 = vshrl.u32 %v11041_v40, %v3365_v15  ;;  %v3381_v52 = vor.u32 %v3380_v17, %v3379_v6  ;;  %v3387_v19 = vsel %vm3385_vm6, %v3375_v49, 2102212464  ;;  %v3390_v60 = vsel %vm3382_vm3, %v3369_v39, %v3372_v27 }
 0x3b8   :  { %vm3241_vm4 = vcmp.eq.s32.totalorder %v10642_v55, 2  ;;  %vm6574_vm7 = vcmp.eq.s32.totalorder %v10611_v31, 2  ;;  %v7254_v7 = vadd.s32 4294967294, %v3314_v9  ;;  %v3332_v32 = vsub.s32 4, %v10613_v51 }
 0x3b9   :  { %v3391_v26 = vsel %vm3385_vm6, %v3378_v50, 920167782  ;;  %v3394_v23 = vsel %vm3382_vm3, %v3372_v27, %v3375_v49  ;;  %vm3238_vm1 = vcmp.eq.s32.totalorder %v10642_v55, 0  ;;  %vm6571_vm8 = vcmp.eq.s32.totalorder %v10611_v31, 0 }
 0x3ba   :  { %vm3383_vm9 = vcmp.lt.s32.totalorder %v3363_v29, 2  ;;  %v3386_v15 = vsel %vm3382_vm3, %v3366_v22, %v3369_v39  ;;  %v3392_v25 = vsel %vm3384_vm5, %v3375_v49, %v3391_v26  ;;  %v3395_v48 = vsel %vm3385_vm6, %v3381_v52, 1326507024 }
 0x3bb   :  { %vm3237_vm10 = vcmp.lt.s32.totalorder %v10642_v55, 2  ;;  %vm6570_vm11 = vcmp.lt.s32.totalorder %v10611_v31, 2  ;;  %vm7255_vm12 = vcmp.lt.s32.totalorder %v7254_v7, 0  ;;  %v3388_v21 = vsel %vm3384_vm5, %v3372_v27, %v3387_v19 }
 0x3bc   :  { %v3393_v41 = vsel %vm3383_vm9, %v3390_v60, %v3392_v25  ;;  %v3396_v45 = vsel %vm3384_vm5, %v3378_v50, %v3395_v48  ;;  %vm3234_vm13 = vweird.f32 %v10337_v44  ;;  %v3317_v1 = vsel %vm7255_vm12, 0, %v7254_v7 }
 0x3bd   :  { %v3397_v57 = vsel %vm3383_vm9, %v3394_v23, %v3396_v45  ;;  %v10681_v30 = vmul.u32.u64.low %v10652_v20, %v3393_v41  ;;  %v10682_v58 = vmul.u32.u64.high %v10652_v20, %v3393_v41, %v10681_v30  ;;  %v3318_v4 = vsub.s32 32, %v3317_v1 }
 0x3be   :  { %v3322_v12 = vsub.s32 4294967266, %v3317_v1  ;;  %v3333_v46 = vsel %vm3248_vm2, %v3332_v32, %v10613_v51  ;;  %v3457_v10 = vand.u32 2139095040, %v10648_v0  ;;  %v3389_v43 = vsel %vm3383_vm9, %v3386_v15, %v3388_v21  ;;  %v7648_v34 = vpop.eup %7647  ;;  %v11118_v21 = vld [vmem:[#allocation17_spill] sm:$0xff] }
 0x3bf   :  { %v10691_v11 = vmul.u32.u64.low %v10652_v20, %v3397_v57  ;;  %v10692_v36 = vmul.u32.u64.high %v10652_v20, %v3397_v57, %v10691_v11  ;;  %v404_v14 = vmul.f32 %v10465_v61, %v364_v63  ;;  %v3319_v33 = vshll.u32 %v10631_v28, %v3317_v1  ;;  %v7650_v5 = vpop.eup %7649 }
 0x3c0   :  { %v3320_v16 = vshrl.u32 %v3302_v3, %v3318_v4  ;;  %v3323_v18 = vadd.s32 127, %v3322_v12  ;;  %v3458_v53 = vshrl.u32 %v3457_v10, 23  ;;  %v3242_v39 = vxor.u32 2147483648, %v7648_v34 }
 0x3c1   :  { %v3335_v51 = vsel %vm10656_vm0, 0, %v3333_v46  ;;  %v3408_v29 = vadd.s32 1, %v10682_v58  ;;  %v3454_v27 = vand.u32 2147483647, %v10648_v0  ;;  %v3239_v49 = vxor.u32 2147483648, %v7650_v5 }
 0x3c2   :  { %v3321_v2 = vor.u32 %v3320_v16, %v3319_v33  ;;  %v3324_v62 = vshll.u32 %v3323_v18, 23  ;;  %v7260_v42 = vadd.s32 4294967169, %v3458_v53  ;;  %v3243_v59 = vsel %vm3241_vm4, %v3242_v39, %v7650_v5  ;;  %v368_v53 = vpop.permute.xlu0 %367 }
 0x3c3   :  { %v6576_v28 = vsel %vm6574_vm7, %v3242_v39, %v7650_v5  ;;  %v3405_v3 = vmul.u32 %v10652_v20, %v3389_v43  ;;  %vm3407_vm14 = vc.u32 %v10692_v36, %v10681_v30  ;;  %v3240_v50 = vsel %vm3238_vm1, %v7648_v34, %v3239_v49 }
 0x3c4   :  { %v6573_v6 = vsel %vm6571_vm8, %v7648_v34, %v3239_v49  ;;  %v3325_v17 = vor.u32 4788187, %v3324_v62  ;;  %v3328_v9 = vcvt.s32.f32 %v3321_v2  ;;  %v3244_v22 = vsel %vm3237_vm10, %v3240_v50, %v3243_v59 }
 0x3c5   :  { %v6577_v52 = vsel %vm6570_vm11, %v6573_v6, %v6576_v28  ;;  %v3409_v19 = vsel %vm3407_vm14, %v3408_v29, %v10682_v58  ;;  %v3464_v20 = vadd.s32 1, %v7260_v42  ;;  %v3245_v60 = vsel %vm3234_vm13, nan, %v3244_v22 }
 0x3c6   :  { %v6578_v7 = vsel %vm3234_vm13, nan, %v6577_v52  ;;  %v3326_v32 = vand.u32 2147483647, %v3325_v17  ;;  %v3410_v26 = vadd.s32 %v3409_v19, %v3405_v3  ;;  %3792 = vst [vmem:[#allocation2 + $0x1a0] sm:$0xff] %v3245_v60  ;;  %v3339_v23 = vadd.s32 3, %v3335_v51 }
 0x3c7   :  { %7120 = vst [vmem:[#allocation2 + $0x1a8] sm:$0xff] %v6578_v7  ;;  %vm3465_vm15 = vcmp.gt.s32.totalorder %v3464_v20, 0  ;;  %v3461_v31 = vand.u32 8388607, %v3454_v27  ;;  %v10723_v41 = vadd.f32 %v404_v14, %v11118_v21  ;;  %v10727_v44 = vand.u32 3, %v3335_v51 }
 0x3c8   :  { %v3329_v55 = vmul.f32 %v3328_v9, %v3326_v32  ;;  %v3411_v15 = vadd.s32 536870912, %v3410_v26  ;;  %v3466_v25 = vsel %vm3465_vm15, %v3464_v20, 0  ;;  %v10731_v58 = vand.u32 3, %v3339_v23 }
 0x3c9   :  { %v3468_v48 = vand.u32 31, %v3466_v25  ;;  %v3462_v12 = vor.u32 8388608, %v3461_v31  ;;  %v3558_v11 = vand.u32 2147483647, %v10723_v41  ;;  %v10744_v16 = vshrl.u32 %v3466_v25, 5 }
 0x3ca   :  { %v3330_v45 = vxor.u32 2147483648, %v3329_v55  ;;  %v10725_v63 = vshrl.u32 %v3411_v15, 30  ;;  %v3561_v47 = vand.u32 2139095040, %v10723_v41  ;;  %v10757_v3 = vmul.f32 %v10465_v61, %v368_v53 }
 0x3cb   :  { %v3469_v1 = vsub.s32 32, %v3468_v48  ;;  %v3471_v34 = vshll.u32 %v11041_v40, %v3468_v48  ;;  %v3474_v18 = vshll.u32 %v11042_v38, %v3468_v48  ;;  %v3477_v51 = vshll.u32 %v11043_v13, %v3468_v48 }
 0x3cc   :  { %v3331_v57 = vsel %vm3248_vm2, %v3330_v45, %v3329_v55  ;;  %v3413_v4 = vshll.u32 %v10725_v63, 30  ;;  %v3480_v29 = vshll.u32 %v11044_v37, %v3468_v48  ;;  %v3483_v62 = vshll.u32 %v11045_v35, %v3468_v48 }
 0x3cd   :  { %v3334_v46 = vsel %vm10656_vm0, %v10418_v54, %v3331_v57  ;;  %v3472_v10 = vshrl.u32 %v11042_v38, %v3469_v1  ;;  %v3475_v43 = vshrl.u32 %v11043_v13, %v3469_v1  ;;  %v3478_v33 = vshrl.u32 %v11044_v37, %v3469_v1 }
 0x3ce   :  { %7651 = vcosq.f32 %v3334_v46  ;;  %v10740_v14 = vsub.s32 %v3410_v26, %v3413_v4  ;;  %v3481_v2 = vshrl.u32 %v11045_v35, %v3469_v1  ;;  %v3484_v42 = vshrl.u32 %v11046_v24, %v3469_v1 }
 0x3cf   :  { %7653 = vsinq.f32 %v3334_v46  ;;  %v3473_v39 = vor.u32 %v3472_v10, %v3471_v34  ;;  %v3476_v49 = vor.u32 %v3475_v43, %v3474_v18  ;;  %vm3352_vm2 = vcmp.lt.s32.totalorder %v10541_v56, 0 }
 0x3d0   :  { %v3416_v5 = vsub.s32 0, %v10740_v14  ;;  %v3479_v28 = vor.u32 %v3478_v33, %v3477_v51  ;;  %v3406_v50 = vadd.s32 %v10681_v30, %v10692_v36  ;;  %v3482_v6 = vor.u32 %v3481_v2, %v3480_v29 }
 0x3d1   :  { %v3485_v17 = vor.u32 %v3484_v42, %v3483_v62  ;;  %v3562_v9 = vshrl.u32 %v3561_v47, 23  ;;  %vm3486_vm0 = vcmp.lt.s32.totalorder %v10744_v16, 1  ;;  %v10762_v52 = vshll.u32 %v3462_v12, 8 }
 0x3d2   :  { %v7257_v59 = vmin.u32 %v3416_v5, %v10740_v14  ;;  %v10766_v19 = vand.u32 8388607, %v3558_v11  ;;  %vm3345_vm3 = vcmp.eq.s32.totalorder %v10731_v58, 2  ;;  %vm6677_vm5 = vcmp.eq.s32.totalorder %v10727_v44, 2 }
 0x3d3   :  { %v3436_v61 = vsub.s32 4, %v10725_v63  ;;  %vm3487_vm6 = vcmp.lt.s32.totalorder %v10744_v16, 2  ;;  %vm3489_vm4 = vcmp.lt.s32.totalorder %v10744_v16, 4  ;;  %v3494_v30 = vsel %vm3486_vm0, %v3473_v39, %v3476_v49 }
 0x3d4   :  { %v3418_v22 = vclz %v7257_v59  ;;  %vm3342_vm7 = vcmp.eq.s32.totalorder %v10731_v58, 0  ;;  %vm6674_vm1 = vcmp.eq.s32.totalorder %v10727_v44, 0  ;;  %vm10779_vm8 = vcmp.le.f32.partialorder %v3350_v8, 0.7853982 }
 0x3d5   :  { %vm3488_vm9 = vcmp.lt.s32.totalorder %v10744_v16, 3  ;;  %v3495_v60 = vsel %vm3489_vm4, %v3482_v6, 920167782  ;;  %v3498_v7 = vsel %vm3486_vm0, %v3476_v49, %v3479_v28  ;;  %vm3341_vm10 = vcmp.lt.s32.totalorder %v10731_v58, 2 }
 0x3d6   :  { %v7258_v20 = vadd.s32 4294967294, %v3418_v22  ;;  %vm6673_vm11 = vcmp.lt.s32.totalorder %v10727_v44, 2  ;;  %v3491_v32 = vsel %vm3489_vm4, %v3479_v28, 2102212464  ;;  %v3496_v26 = vsel %vm3488_vm9, %v3479_v28, %v3495_v60 }
 0x3d7   :  { %v3499_v23 = vsel %vm3489_vm4, %v3485_v17, 1326507024  ;;  %v7264_v8 = vadd.s32 4294967169, %v3562_v9  ;;  %vm3338_vm12 = vweird.f32 %v10418_v54  ;;  %v3470_v55 = vshrl.u32 %v11041_v40, %v3469_v1 }
 0x3d8   :  { %vm7259_vm13 = vcmp.lt.s32.totalorder %v7258_v20, 0  ;;  %v3497_v15 = vsel %vm3487_vm6, %v3494_v30, %v3496_v26  ;;  %v3500_v31 = vsel %vm3488_vm9, %v3482_v6, %v3499_v23  ;;  %v3492_v12 = vsel %vm3488_vm9, %v3476_v49, %v3491_v32 }
 0x3d9   :  { %v3421_v25 = vsel %vm7259_vm13, 0, %v7258_v20  ;;  %v3501_v48 = vsel %vm3487_vm6, %v3498_v7, %v3500_v31  ;;  %v10799_v21 = vmul.u32.u64.low %v10762_v52, %v3497_v15  ;;  %v10800_v45 = vmul.u32.u64.high %v10762_v52, %v3497_v15, %v10799_v21  ;;  %v11121_v7 = vld [vmem:[#allocation16_spill] sm:$0xff] }
 0x3da   :  { %v3422_v57 = vsub.s32 32, %v3421_v25  ;;  %v3426_v4 = vsub.s32 4294967266, %v3421_v25  ;;  %v3490_v1 = vsel %vm3486_vm0, %v3470_v55, %v3473_v39  ;;  %v3437_v10 = vsel %vm3352_vm2, %v3436_v61, %v10725_v63 }
 0x3db   :  { %v7652_v46 = vpop.eup %7651  ;;  %v10811_v43 = vmul.u32.u64.low %v10762_v52, %v3501_v48  ;;  %v10812_v34 = vmul.u32.u64.high %v10762_v52, %v3501_v48, %v10811_v43  ;;  %v3568_v33 = vadd.s32 1, %v7264_v8  ;;  %v3423_v53 = vshll.u32 %v10740_v14, %v3421_v25 }
 0x3dc   :  { %v7654_v18 = vpop.eup %7653  ;;  %v3346_v47 = vxor.u32 2147483648, %v7652_v46  ;;  %v3424_v5 = vshrl.u32 %v3406_v50, %v3422_v57  ;;  %v3427_v51 = vadd.s32 127, %v3426_v4  ;;  %v3493_v29 = vsel %vm3487_vm6, %v3490_v1, %v3492_v12 }
 0x3dd   :  { %v3343_v39 = vxor.u32 2147483648, %v7654_v18  ;;  %v3512_v49 = vadd.s32 1, %v10800_v45  ;;  %vm3569_vm14 = vcmp.gt.s32.totalorder %v3568_v33, 0  ;;  %v3439_v16 = vsel %vm10779_vm8, 0, %v3437_v10 }
 0x3de   :  { %v3347_v63 = vsel %vm3345_vm3, %v3346_v47, %v7654_v18  ;;  %v6679_v2 = vsel %vm6677_vm5, %v3346_v47, %v7654_v18  ;;  %v3425_v62 = vor.u32 %v3424_v5, %v3423_v53  ;;  %v3428_v42 = vshll.u32 %v3427_v51, 23 }
 0x3df   :  { %v3344_v14 = vsel %vm3342_vm7, %v7652_v46, %v3343_v39  ;;  %v6676_v59 = vsel %vm6674_vm1, %v7652_v46, %v3343_v39  ;;  %vm3511_vm15 = vc.u32 %v10812_v34, %v10799_v21  ;;  %v3509_v17 = vmul.u32 %v10762_v52, %v3493_v29 }
 0x3e0   :  { %v3348_v28 = vsel %vm3341_vm10, %v3344_v14, %v3347_v63  ;;  %v6680_v50 = vsel %vm6673_vm11, %v6676_v59, %v6679_v2  ;;  %v3429_v6 = vor.u32 4788187, %v3428_v42  ;;  %v3513_v61 = vsel %vm3511_vm15, %v3512_v49, %v10800_v45 }
 0x3e1   :  { %v3349_v9 = vsel %vm3338_vm12, nan, %v3348_v28  ;;  %v6681_v22 = vsel %vm3338_vm12, nan, %v6680_v50  ;;  %v3570_v30 = vsel %vm3569_vm14, %v3568_v33, 0  ;;  %v3432_v20 = vcvt.s32.f32 %v3425_v62 }
 0x3e2   :  { %3793 = vst [vmem:[#allocation2 + $0x1b0] sm:$0xff] %v3349_v9  ;;  %7121 = vst [vmem:[#allocation2 + $0x1b8] sm:$0xff] %v6681_v22  ;;  %v3430_v58 = vand.u32 2147483647, %v3429_v6  ;;  %v3514_v60 = vadd.s32 %v3513_v61, %v3509_v17  ;;  %v3572_v44 = vand.u32 31, %v3570_v30  ;;  %v10843_v32 = vadd.f32 %v10757_v3, %v11121_v7 }
 0x3e3   :  { %v3443_v8 = vadd.s32 3, %v3439_v16  ;;  %v3566_v15 = vor.u32 8388608, %v10766_v19  ;;  %v10848_v31 = vshrl.u32 %v3570_v30, 5  ;;  %v10872_v49 = vand.u32 3, %v3439_v16 }
 0x3e4   :  { %v3433_v52 = vmul.f32 %v3432_v20, %v3430_v58  ;;  %v3515_v26 = vadd.s32 536870912, %v3514_v60  ;;  %v3573_v23 = vsub.s32 32, %v3572_v44  ;;  %v3665_v3 = vand.u32 2139095040, %v10843_v32 }
 0x3e5   :  { %v3575_v1 = vshll.u32 %v11041_v40, %v3572_v44  ;;  %v3578_v46 = vshll.u32 %v11042_v38, %v3572_v44  ;;  %v3584_v10 = vshll.u32 %v11044_v37, %v3572_v44  ;;  %v3581_v18 = vshll.u32 %v11043_v13, %v3572_v44 }
 0x3e6   :  { %v3434_v54 = vxor.u32 2147483648, %v3433_v52  ;;  %v10845_v55 = vshrl.u32 %v3515_v26, 30  ;;  %v3576_v25 = vshrl.u32 %v11042_v38, %v3573_v23  ;;  %v3579_v48 = vshrl.u32 %v11043_v13, %v3573_v23 }
 0x3e7   :  { %v3585_v45 = vshrl.u32 %v11045_v35, %v3573_v23  ;;  %v3582_v12 = vshrl.u32 %v11044_v37, %v3573_v23  ;;  %v3588_v43 = vshrl.u32 %v11046_v24, %v3573_v23  ;;  %v3587_v47 = vshll.u32 %v11045_v35, %v3572_v44 }
 0x3e8   :  { %v3435_v57 = vsel %vm3352_vm2, %v3434_v54, %v3433_v52  ;;  %v3517_v4 = vshll.u32 %v10845_v55, 30  ;;  %v3577_v53 = vor.u32 %v3576_v25, %v3575_v1  ;;  %v3580_v5 = vor.u32 %v3579_v48, %v3578_v46 }
 0x3e9   :  { %v3438_v19 = vsel %vm10779_vm8, %v10541_v56, %v3435_v57  ;;  %v3586_v51 = vor.u32 %v3585_v45, %v3584_v10  ;;  %v3583_v39 = vor.u32 %v3582_v12, %v3581_v18  ;;  %v10870_v29 = vand.u32 3, %v3443_v8 }
 0x3ea   :  { %7655 = vcosq.f32 %v3438_v19  ;;  %v10865_v33 = vsub.s32 %v3514_v60, %v3517_v4  ;;  %v3589_v63 = vor.u32 %v3588_v43, %v3587_v47  ;;  %vm3590_vm2 = vcmp.lt.s32.totalorder %v10848_v31, 1 }
 0x3eb   :  { %7657 = vsinq.f32 %v3438_v19  ;;  %vm3593_vm0 = vcmp.lt.s32.totalorder %v10848_v31, 4  ;;  %v10877_v62 = vshll.u32 %v3566_v15, 8  ;;  %v3574_v42 = vshrl.u32 %v11041_v40, %v3573_v23 }
 0x3ec   :  { %v3520_v36 = vsub.s32 0, %v10865_v33  ;;  %v3598_v14 = vsel %vm3590_vm2, %v3577_v53, %v3580_v5  ;;  %v3599_v59 = vsel %vm3593_vm0, %v3586_v51, 920167782  ;;  %v3666_v28 = vshrl.u32 %v3665_v3, 23 }
 0x3ed   :  { %vm3591_vm3 = vcmp.lt.s32.totalorder %v10848_v31, 2  ;;  %vm3592_vm5 = vcmp.lt.s32.totalorder %v10848_v31, 3  ;;  %v3602_v16 = vsel %vm3590_vm2, %v3580_v5, %v3583_v39  ;;  %v3595_v6 = vsel %vm3593_vm0, %v3583_v39, 2102212464 }
 0x3ee   :  { %v7261_v2 = vmin.u32 %v3520_v36, %v10865_v33  ;;  %v3600_v17 = vsel %vm3592_vm5, %v3583_v39, %v3599_v59  ;;  %v3603_v9 = vsel %vm3593_vm0, %v3589_v63, 1326507024  ;;  %v7268_v22 = vadd.s32 4294967169, %v3666_v28 }
 0x3ef   :  { %vm6777_vm6 = vcmp.eq.s32.totalorder %v10872_v49, 0  ;;  %v3601_v30 = vsel %vm3591_vm3, %v3598_v14, %v3600_v17  ;;  %v3604_v58 = vsel %vm3592_vm5, %v3586_v51, %v3603_v9  ;;  %vm6776_vm4 = vcmp.lt.s32.totalorder %v10872_v49, 2 }
 0x3f0   :  { %v3522_v50 = vclz %v7261_v2  ;;  %v3594_v20 = vsel %vm3590_vm2, %v3574_v42, %v3577_v53  ;;  %v3605_v60 = vsel %vm3591_vm3, %v3602_v16, %v3604_v58  ;;  %vm3442_vm7 = vweird.f32 %v10541_v56 }
 0x3f1   :  { %v10899_v44 = vmul.u32.u64.low %v10877_v62, %v3601_v30  ;;  %v10900_v7 = vmul.u32.u64.high %v10877_v62, %v3601_v30, %v10899_v44  ;;  %v3596_v52 = vsel %vm3592_vm5, %v3580_v5, %v3595_v6  ;;  %vm3445_vm8 = vcmp.lt.s32.totalorder %v10870_v29, 2 }
 0x3f2   :  { %v7262_v61 = vadd.s32 4294967294, %v3522_v50  ;;  %v10907_v26 = vmul.u32.u64.low %v10877_v62, %v3605_v60  ;;  %v10908_v23 = vmul.u32.u64.high %v10877_v62, %v3605_v60, %v10907_v26  ;;  %vm6780_vm9 = vcmp.eq.s32.totalorder %v10872_v49, 2 }
 0x3f3   :  { %v3672_v54 = vadd.s32 1, %v7268_v22  ;;  %vm3446_vm10 = vcmp.eq.s32.totalorder %v10870_v29, 0  ;;  %v3510_v15 = vadd.s32 %v10799_v21, %v10812_v34  ;;  %vm3449_vm11 = vcmp.eq.s32.totalorder %v10870_v29, 2 }
 0x3f4   :  { %vm7263_vm1 = vcmp.lt.s32.totalorder %v7262_v61, 0  ;;  %v3597_v3 = vsel %vm3591_vm3, %v3594_v20, %v3596_v52  ;;  %v3616_v57 = vadd.s32 1, %v10900_v7  ;;  %vm3615_vm13 = vc.u32 %v10908_v23, %v10899_v44 }
 0x3f5   :  { %v3525_v8 = vsel %vm7263_vm1, 0, %v7262_v61  ;;  %vm3673_vm12 = vcmp.gt.s32.totalorder %v3672_v54, 0  ;;  %v3662_v21 = vand.u32 2147483647, %v10843_v32  ;;  %v3613_v5 = vmul.u32 %v10877_v62, %v3597_v3 }
 0x3f6   :  { %v3526_v25 = vsub.s32 32, %v3525_v8  ;;  %v3530_v48 = vsub.s32 4294967266, %v3525_v8  ;;  %v3527_v12 = vshll.u32 %v10865_v33, %v3525_v8  ;;  %v3674_v34 = vsel %vm3673_vm12, %v3672_v54, 0 }
 0x3f7   :  { %v7656_v45 = vpop.eup %7655  ;;  %v3617_v51 = vsel %vm3615_vm13, %v3616_v57, %v10900_v7  ;;  %v3540_v2 = vsub.s32 4, %v10845_v55  ;;  %v3676_v28 = vand.u32 31, %v3674_v34  ;;  %vm10942_vm14 = vcmp.le.f32.partialorder %v3454_v27, 0.7853982 }
 0x3f8   :  { %v7658_v4 = vpop.eup %7657  ;;  %v3450_v1 = vxor.u32 2147483648, %v7656_v45  ;;  %v3528_v19 = vshrl.u32 %v3510_v15, %v3526_v25  ;;  %v3531_v46 = vadd.s32 127, %v3530_v48  ;;  %v3618_v59 = vadd.s32 %v3617_v51, %v3613_v5 }
 0x3f9   :  { %v3447_v10 = vxor.u32 2147483648, %v7658_v4  ;;  %vm3456_vm15 = vcmp.lt.s32.totalorder %v10648_v0, 0  ;;  %v3677_v16 = vsub.s32 32, %v3676_v28  ;;  %v3669_v17 = vand.u32 8388607, %v3662_v21 }
 0x3fa   :  { %v3451_v43 = vsel %vm3449_vm11, %v3450_v1, %v7658_v4  ;;  %v6782_v31 = vsel %vm6780_vm9, %v3450_v1, %v7658_v4  ;;  %v3529_v18 = vor.u32 %v3528_v19, %v3527_v12  ;;  %v3532_v47 = vshll.u32 %v3531_v46, 23 }
 0x3fb   :  { %v3448_v53 = vsel %vm3446_vm10, %v7656_v45, %v3447_v10  ;;  %v6779_v33 = vsel %vm6777_vm6, %v7656_v45, %v3447_v10  ;;  %v3619_v49 = vadd.s32 536870912, %v3618_v59  ;;  %v3541_v56 = vsel %vm3456_vm15, %v3540_v2, %v10845_v55 }
 0x3fc   :  { %v3452_v36 = vsel %vm3445_vm8, %v3448_v53, %v3451_v43  ;;  %v6783_v39 = vsel %vm6776_vm4, %v6779_v33, %v6782_v31  ;;  %v3533_v63 = vor.u32 4788187, %v3532_v47  ;;  %v3536_v50 = vcvt.s32.f32 %v3529_v18 }
 0x3fd   :  { %v3453_v42 = vsel %vm3442_vm7, nan, %v3452_v36  ;;  %v6784_v14 = vsel %vm3442_vm7, nan, %v6783_v39  ;;  %v3679_v9 = vshll.u32 %v11041_v40, %v3676_v28  ;;  %v10953_v22 = vshrl.u32 %v3619_v49, 30 }
 0x3fe   :  { %3794 = vst [vmem:[#allocation2 + $0x1c0] sm:$0xff] %v3453_v42  ;;  %7122 = vst [vmem:[#allocation2 + $0x1c8] sm:$0xff] %v6784_v14  ;;  %v3534_v62 = vand.u32 2147483647, %v3533_v63  ;;  %v3680_v27 = vshrl.u32 %v11042_v38, %v3677_v16  ;;  %v3683_v61 = vshrl.u32 %v11043_v13, %v3677_v16  ;;  %v3688_v30 = vshll.u32 %v11044_v37, %v3676_v28 }
 0x3ff   :  { %v3686_v20 = vshrl.u32 %v11044_v37, %v3677_v16  ;;  %v3689_v60 = vshrl.u32 %v11045_v35, %v3677_v16  ;;  %v3692_v55 = vshrl.u32 %v11046_v24, %v3677_v16  ;;  %v3621_v7 = vshll.u32 %v10953_v22, 30 }
 0x400   :  { %v3537_v6 = vmul.f32 %v3536_v50, %v3534_v62  ;;  %v3675_v52 = vshrl.u32 %v3674_v34, 5  ;;  %v3682_v26 = vshll.u32 %v11042_v38, %v3676_v28  ;;  %v3685_v8 = vshll.u32 %v11043_v13, %v3676_v28 }
 0x401   :  { %v3681_v15 = vor.u32 %v3680_v27, %v3679_v9  ;;  %v3690_v25 = vor.u32 %v3689_v60, %v3688_v30  ;;  %v3691_v48 = vshll.u32 %v11045_v35, %v3676_v28  ;;  %v3622_v45 = vsub.s32 %v3618_v59, %v3621_v7 }
 0x402   :  { %v3538_v58 = vxor.u32 2147483648, %v3537_v6  ;;  %v3684_v24 = vor.u32 %v3683_v61, %v3682_v26  ;;  %v3687_v3 = vor.u32 %v3686_v20, %v3685_v8  ;;  %v3670_v4 = vor.u32 8388608, %v3669_v17 }
 0x403   :  { %v3693_v57 = vor.u32 %v3692_v55, %v3691_v48  ;;  %v3624_v38 = vsub.s32 0, %v3622_v45  ;;  %vm3697_vm2 = vcmp.lt.s32.totalorder %v3675_v52, 4  ;;  %v3543_v13 = vsel %vm10942_vm14, 0, %v3541_v56 }
 0x404   :  { %v3539_v54 = vsel %vm3456_vm15, %v3538_v58, %v3537_v6  ;;  %vm3694_vm0 = vcmp.lt.s32.totalorder %v3675_v52, 1  ;;  %v3703_v1 = vsel %vm3697_vm2, %v3690_v25, 920167782  ;;  %vm3696_vm3 = vcmp.lt.s32.totalorder %v3675_v52, 3 }
 0x405   :  { %v3542_v37 = vsel %vm10942_vm14, %v10648_v0, %v3539_v54  ;;  %v7265_v12 = vmin.u32 %v3624_v38, %v3622_v45  ;;  %v3699_v35 = vsel %vm3697_vm2, %v3687_v3, 2102212464  ;;  %v3702_v19 = vsel %vm3694_vm0, %v3681_v15, %v3684_v24 }
 0x406   :  { %7659 = vcosq.f32 %v3542_v37  ;;  %v3678_v46 = vshrl.u32 %v11041_v40, %v3677_v16  ;;  %v3704_v10 = vsel %vm3696_vm3, %v3687_v3, %v3703_v1  ;;  %v3706_v34 = vsel %vm3694_vm0, %v3684_v24, %v3687_v3 }
 0x407   :  { %7661 = vsinq.f32 %v3542_v37  ;;  %v3707_v43 = vsel %vm3697_vm2, %v3693_v57, 1326507024  ;;  %v3547_v31 = vadd.s32 3, %v3543_v13  ;;  %v3626_v18 = vclz %v7265_v12 }
 0x408   :  { %vm3695_vm5 = vcmp.lt.s32.totalorder %v3675_v52, 2  ;;  %v3710_v47 = vshll.u32 %v3670_v4, 8  ;;  %v3698_v53 = vsel %vm3694_vm0, %v3678_v46, %v3681_v15  ;;  %v3700_v33 = vsel %vm3696_vm3, %v3684_v24, %v3699_v35 }
 0x409   :  { %v3705_v5 = vsel %vm3695_vm5, %v3702_v19, %v3704_v10  ;;  %v3708_v51 = vsel %vm3696_vm3, %v3690_v25, %v3707_v43  ;;  %v7266_v36 = vadd.s32 4294967294, %v3626_v18  ;;  %v6878_v42 = vand.u32 3, %v3543_v13 }
 0x40a   :  { %v3709_v39 = vsel %vm3695_vm5, %v3706_v34, %v3708_v51  ;;  %v10973_v63 = vmul.u32.u64.low %v3710_v47, %v3705_v5  ;;  %v10974_v2 = vmul.u32.u64.high %v3710_v47, %v3705_v5, %v10973_v63  ;;  %v3701_v59 = vsel %vm3695_vm5, %v3698_v53, %v3700_v33 }
 0x40b   :  { %v10977_v14 = vmul.u32.u64.low %v3710_v47, %v3709_v39  ;;  %v10978_v40 = vmul.u32.u64.high %v3710_v47, %v3709_v39, %v10977_v14  ;;  %vm7267_vm6 = vcmp.lt.s32.totalorder %v7266_v36, 0  ;;  %v3548_v28 = vand.u32 3, %v3547_v31 }
 0x40c   :  { %v3629_v62 = vsel %vm7267_vm6, 0, %v7266_v36  ;;  %v3614_v50 = vadd.s32 %v10899_v44, %v10908_v23  ;;  %v3720_v16 = vadd.s32 1, %v10974_v2  ;;  %vm6879_vm4 = vcmp.lt.s32.totalorder %v6878_v42, 2 }
 0x40d   :  { %v3630_v29 = vsub.s32 32, %v3629_v62  ;;  %v3634_v49 = vsub.s32 4294967266, %v3629_v62  ;;  %v3717_v6 = vmul.u32 %v3710_v47, %v3701_v59  ;;  %vm3719_vm7 = vc.u32 %v10978_v40, %v10973_v63 }
 0x40e   :  { %v3631_v17 = vshll.u32 %v3622_v45, %v3629_v62  ;;  %v3721_v61 = vsel %vm3719_vm7, %v3720_v16, %v10974_v2  ;;  %vm6880_vm1 = vcmp.eq.s32.totalorder %v6878_v42, 0  ;;  %vm6883_vm8 = vcmp.eq.s32.totalorder %v6878_v42, 2 }
 0x40f   :  { %v3632_v9 = vshrl.u32 %v3614_v50, %v3630_v29  ;;  %v3635_v27 = vadd.s32 127, %v3634_v49  ;;  %v3722_v44 = vadd.s32 %v3721_v61, %v3717_v6  ;;  %vm3553_vm9 = vcmp.eq.s32.totalorder %v3548_v28, 2 }
 0x410   :  { %vm3550_vm10 = vcmp.eq.s32.totalorder %v3548_v28, 0  ;;  %vm3549_vm11 = vcmp.lt.s32.totalorder %v3548_v28, 2  ;;  %vm3546_vm12 = vweird.f32 %v10648_v0  ;;  %vm3560_vm13 = vcmp.lt.s32.totalorder %v10723_v41, 0 }
 0x411   :  { %v3633_v20 = vor.u32 %v3632_v9, %v3631_v17  ;;  %v3636_v60 = vshll.u32 %v3635_v27, 23  ;;  %v3723_v52 = vadd.s32 536870912, %v3722_v44  ;;  %v3644_v0 = vsub.s32 4, %v10953_v22 }
 0x412   :  { %vm3559_vm14 = vcmp.le.f32.partialorder %v3558_v11, 0.7853982  ;;  %v3718_v47 = vadd.s32 %v10973_v63, %v10978_v40  ;;  %vm3650_vm7 = vweird.f32 %v10723_v41 }
 0x413   :  { %v7660_v56 = vpop.eup %7659  ;;  %v3637_v54 = vor.u32 4788187, %v3636_v60  ;;  %v10988_v48 = vshrl.u32 %v3723_v52, 30  ;;  %v3640_v3 = vcvt.s32.f32 %v3633_v20  ;;  %v3645_v46 = vsel %vm3560_vm13, %v3644_v0, %v10953_v22 }
 0x414   :  { %v7662_v30 = vpop.eup %7661  ;;  %v3554_v58 = vxor.u32 2147483648, %v7660_v56  ;;  %v3647_v43 = vsel %vm3559_vm14, 0, %v3645_v46 }
 0x415   :  { %v3551_v23 = vxor.u32 2147483648, %v7662_v30  ;;  %v3638_v24 = vand.u32 2147483647, %v3637_v54  ;;  %v3725_v57 = vshll.u32 %v10988_v48, 30  ;;  %v3651_v18 = vadd.s32 3, %v3647_v43 }
 0x416   :  { %v3555_v55 = vsel %vm3553_vm9, %v3554_v58, %v7662_v30  ;;  %v6885_v7 = vsel %vm6883_vm8, %v3554_v58, %v7662_v30  ;;  %v6981_v36 = vand.u32 3, %v3647_v43  ;;  %v3748_v30 = vsub.s32 4, %v10988_v48 }
 0x417   :  { %v3552_v26 = vsel %vm3550_vm10, %v7660_v56, %v3551_v23  ;;  %v6882_v8 = vsel %vm6880_vm1, %v7660_v56, %v3551_v23  ;;  %v3641_v38 = vmul.f32 %v3640_v3, %v3638_v24  ;;  %v3726_v4 = vsub.s32 %v3722_v44, %v3725_v57 }
 0x418   :  { %v3556_v15 = vsel %vm3549_vm11, %v3552_v26, %v3555_v55  ;;  %v6886_v25 = vsel %vm6879_vm4, %v6882_v8, %v6885_v7  ;;  %v3652_v39 = vand.u32 3, %v3651_v18  ;;  %vm6982_vm2 = vcmp.lt.s32.totalorder %v6981_v36, 2 }
 0x419   :  { %v3557_v37 = vsel %vm3546_vm12, nan, %v3556_v15  ;;  %v6887_v45 = vsel %vm3546_vm12, nan, %v6886_v25  ;;  %v3642_v13 = vxor.u32 2147483648, %v3641_v38  ;;  %v3728_v1 = vsub.s32 0, %v3726_v4 }
 0x41a   :  { %3795 = vst [vmem:[#allocation2 + $0x1d0] sm:$0xff] %v3557_v37  ;;  %7123 = vst [vmem:[#allocation2 + $0x1d8] sm:$0xff] %v6887_v45  ;;  %vm6986_vm0 = vcmp.eq.s32.totalorder %v6981_v36, 2  ;;  %vm3657_vm3 = vcmp.eq.s32.totalorder %v3652_v39, 2  ;;  %vm3654_vm5 = vcmp.eq.s32.totalorder %v3652_v39, 0  ;;  %vm6983_vm6 = vcmp.eq.s32.totalorder %v6981_v36, 0 }
 0x41b   :  { %v3643_v12 = vsel %vm3560_vm13, %v3642_v13, %v3641_v38  ;;  %v7269_v19 = vmin.u32 %v3728_v1, %v3726_v4  ;;  %vm3653_vm4 = vcmp.lt.s32.totalorder %v3652_v39, 2  ;;  %vm3664_vm1 = vcmp.lt.s32.totalorder %v10843_v32, 0 }
 0x41c   :  { %v3646_v35 = vsel %vm3559_vm14, %v10723_v41, %v3643_v12  ;;  %vm3663_vm8 = vcmp.le.f32.partialorder %v3662_v21, 0.7853982  ;;  %v3749_v41 = vsel %vm3664_vm1, %v3748_v30, %v10988_v48 }
 0x41d   :  { %7663 = vcosq.f32 %v3646_v35  ;;  %v3730_v10 = vclz %v7269_v19  ;;  %v3751_v23 = vsel %vm3663_vm8, 0, %v3749_v41 }
 0x41e   :  { %7665 = vsinq.f32 %v3646_v35  ;;  %v3755_v20 = vadd.s32 3, %v3751_v23  ;;  %v7084_v55 = vand.u32 3, %v3751_v23 }
 0x41f   :  { %v7270_v34 = vadd.s32 4294967294, %v3730_v10 }
 0x420   :  { %v3756_v60 = vand.u32 3, %v3755_v20  ;;  %vm7089_vm10 = vcmp.eq.s32.totalorder %v7084_v55, 2  ;;  %vm7086_vm12 = vcmp.eq.s32.totalorder %v7084_v55, 0  ;;  %vm7085_vm14 = vcmp.lt.s32.totalorder %v7084_v55, 2 }
 0x421   :  { %vm7271_vm15 = vcmp.lt.s32.totalorder %v7270_v34, 0 }
 0x422   :  { %v3733_v31 = vsel %vm7271_vm15, 0, %v7270_v34  ;;  %vm3761_vm9 = vcmp.eq.s32.totalorder %v3756_v60, 2  ;;  %vm3758_vm11 = vcmp.eq.s32.totalorder %v3756_v60, 0  ;;  %vm3757_vm13 = vcmp.lt.s32.totalorder %v3756_v60, 2 }
 0x423   :  { %v3734_v53 = vsub.s32 32, %v3733_v31  ;;  %v3738_v33 = vsub.s32 4294967266, %v3733_v31  ;;  %v3735_v11 = vshll.u32 %v3726_v4, %v3733_v31  ;;  %vm3754_vm15 = vweird.f32 %v10843_v32 }
 0x425   :  { %v3736_v5 = vshrl.u32 %v3718_v47, %v3734_v53  ;;  %v3739_v51 = vadd.s32 127, %v3738_v33 }
 0x427   :  { %v3737_v2 = vor.u32 %v3736_v5, %v3735_v11  ;;  %v3740_v42 = vshll.u32 %v3739_v51, 23 }
 0x429   :  { %v3741_v14 = vor.u32 4788187, %v3740_v42  ;;  %v3744_v29 = vcvt.s32.f32 %v3737_v2 }
 0x42a   :  { %v7664_v22 = vpop.eup %7663 }
 0x42b   :  { %v7666_v59 = vpop.eup %7665  ;;  %v3658_v28 = vxor.u32 2147483648, %v7664_v22  ;;  %v3742_v50 = vand.u32 2147483647, %v3741_v14 }
 0x42c   :  { %v3655_v62 = vxor.u32 2147483648, %v7666_v59 }
 0x42d   :  { %v3659_v63 = vsel %vm3657_vm3, %v3658_v28, %v7666_v59  ;;  %v6988_v40 = vsel %vm6986_vm0, %v3658_v28, %v7666_v59  ;;  %v3745_v6 = vmul.f32 %v3744_v29, %v3742_v50 }
 0x42e   :  { %v3656_v49 = vsel %vm3654_vm5, %v7664_v22, %v3655_v62  ;;  %v6985_v16 = vsel %vm6983_vm6, %v7664_v22, %v3655_v62 }
 0x42f   :  { %v3660_v56 = vsel %vm3653_vm4, %v3656_v49, %v3659_v63  ;;  %v6989_v17 = vsel %vm6982_vm2, %v6985_v16, %v6988_v40  ;;  %v3746_v61 = vxor.u32 2147483648, %v3745_v6 }
 0x430   :  { %v3661_v9 = vsel %vm3650_vm7, nan, %v3660_v56  ;;  %v6990_v27 = vsel %vm3650_vm7, nan, %v6989_v17 }
 0x431   :  { %3796 = vst [vmem:[#allocation2 + $0x1e0] sm:$0xff] %v3661_v9  ;;  %7124 = vst [vmem:[#allocation2 + $0x1e8] sm:$0xff] %v6990_v27  ;;  %v3747_v58 = vsel %vm3664_vm1, %v3746_v61, %v3745_v6 }
 0x432   :  { %v3750_v44 = vsel %vm3663_vm8, %v10843_v32, %v3747_v58 }
 0x433   :  { %7667 = vcosq.f32 %v3750_v44 }
 0x434   :  { %7669 = vsinq.f32 %v3750_v44 }
 0x440   :  { %v7668_v7 = vpop.eup %7667 }
 0x441   :  { %v7670_v52 = vpop.eup %7669  ;;  %v3762_v26 = vxor.u32 2147483648, %v7668_v7 }
 0x442   :  { %v3759_v8 = vxor.u32 2147483648, %v7670_v52 }
 0x443   :  { %v3763_v21 = vsel %vm3761_vm9, %v3762_v26, %v7670_v52  ;;  %v7091_v54 = vsel %vm7089_vm10, %v3762_v26, %v7670_v52 }
 0x444   :  { %v3760_v15 = vsel %vm3758_vm11, %v7668_v7, %v3759_v8  ;;  %v7088_v25 = vsel %vm7086_vm12, %v7668_v7, %v3759_v8 }
 0x445   :  { %v3764_v48 = vsel %vm3757_vm13, %v3760_v15, %v3763_v21  ;;  %v7092_v37 = vsel %vm7085_vm14, %v7088_v25, %v7091_v54 }
 0x446   :  { %v3765_v45 = vsel %vm3754_vm15, nan, %v3764_v48  ;;  %v7093_v24 = vsel %vm3754_vm15, nan, %v7092_v37 }
 0x447   :  { %3797 = vst [vmem:[#allocation2 + $0x1f0] sm:$0xff] %v3765_v45  ;;  %7125 = vst [vmem:[#allocation2 + $0x1f8] sm:$0xff] %v7093_v24 }
 0x448   :  { %7687 = shalt.err (!%p7684_p4)
}
 0x449   :  { %s7707_s4 = smov 256   ;;  %s7708_s5 = smov 16  }
 0x44a   :  { %7137 = dma.vmem_to_hbm [thread:$0]  %s7132_s30, 8192, %s11013_s2, [#allocation3], %s7707_s4, %s7707_s4, %s7708_s5  }
 0x44b   :  { %7696 = dma.done.wait [#allocation3], 8192  }
 0x44c   :  { %7697 = vsyncadd [#allocation3], 4294959104 }
 0x44d   :  { %7141 = vsyncpa [#allocation3], 1 }

</bundles_post_ra>
